<compile_context>
chip_gen: v7x
topology: tpu7x:2x2x1
jax: 0.10.0
libtpu: 0.0.40
codegen_flags: <defaults>
</compile_context>

<pallas_src>
import functools

import jax
import jax.numpy as jnp
from jax import lax
from jax.experimental import pallas as pl
from jax.experimental.pallas import tpu as pltpu

CP = 128  # lane-aligned channel slots per conv tap (im2col K = 9 * CP)


# ----------------------------------------------------------------------------
# Fused Pallas kernel: conv -> +PE -> conv(+stride2) -> ResConv -> pool -> MLP
# ----------------------------------------------------------------------------
def _fused_kernel(x_ref, pe_ref,
                  w1_ref, b1_ref, w2_ref, b2_ref, w3_ref, b3_ref,
                  sel_ref, pool_ref, tile_ref, mask_ref,
                  wl1_ref, bl1_ref, wl2_ref, bl2_ref,
                  o_ref,
                  pad_a, pad_b, col,
                  *, H, W, C1, C2):
    Hd, Wd = H // 2, W // 2
    f32, bf16 = jnp.float32, jnp.bfloat16

    # Zero the halo-padded activation buffers once per grid step: the 1-pixel border ring and
    # the unused channel slots [C:128) must be zero so the channel-padded im2col is exact.
    pad_a[...] = jnp.zeros(pad_a.shape, f32)
    pad_b[...] = jnp.zeros(pad_b.shape, f32)

    def conv3x3(pref, h, w, w_ref):
        # single im2col matmul: 9 shifted (h*w, 128) slabs staged lane-aligned in VMEM,
        # then one (h*w, 9*128) x (9*128, Cout) bf16 MXU dot, f32 accumulate.
        for k in range(9):
            dy, dx = divmod(k, 3)
            slab = pref[dy:dy + h, dx:dx + w, :].reshape(h * w, CP)
            col[0:h * w, k * CP:(k + 1) * CP] = slab.astype(bf16)
        return jnp.dot(col[0:h * w, :], w_ref[...], preferred_element_type=f32)

    # ---- layer 0: conv3x3(Cin -> C) + ReLU, + positional encoding (eval BatchNorm == identity)
    x = x_ref[0]                                               # (H, W, Cin)
    pad_a[1:H + 1, 1:W + 1, 0:x.shape[-1]] = x
    y1 = conv3x3(pad_a, H, W, w1_ref)                          # (H*W, C1)
    y1 = jnp.maximum(y1 + b1_ref[...], 0.0) + pe_ref[0].reshape(H * W, C1)

    # ---- layer 2: conv3x3(C -> 2C) + ReLU, keep 1/4 of the points (stride-2 via 0/1 matmul)
    # TODO(synk): down_ratio=0.25 of the continuous op is interpreted as stride-2 subsampling.
    pad_a[1:H + 1, 1:W + 1, 0:C1] = y1.reshape(H, W, C1)
    y2 = jnp.maximum(conv3x3(pad_a, H, W, w2_ref) + b2_ref[...], 0.0)          # (H*W, C2)
    y2d = jnp.dot(sel_ref[...], y2.astype(bf16), preferred_element_type=f32)   # (Hd*Wd, C2)

    # ---- layer 3: ResConv(2C): relu(x + conv3x3(x) + b)
    pad_b[1:Hd + 1, 1:Wd + 1, 0:C2] = y2d.reshape(Hd, Wd, C2)
    y3 = conv3x3(pad_b, Hd, Wd, w3_ref)                                        # (Hd*Wd, C2)
    y3 = jnp.maximum(y3 + b3_ref[...] + y2d, 0.0)

    # ---- layer 4: AdaptiveAvgPool(4,4) + Linear(2C*16,128) + ReLU + Linear(128,out_dims)
    pooled = jnp.dot(pool_ref[...], y3.astype(bf16), preferred_element_type=f32)   # (16, C2)
    # Fold pool -> flatten -> Linear into matmuls: block-diagonalize `pooled` (one C2-wide
    # block per pooled cell) and hit the full (16*C2, 128) weight with one MXU pass; the 16
    # partial rows are summed on the XLU (cross-sublane reduce).
    bd = jnp.dot(pooled.astype(bf16), tile_ref[...], preferred_element_type=f32)   # (16, 16*C2)
    bd = bd * mask_ref[...]
    hp = jnp.dot(bd.astype(bf16), wl1_ref[...], preferred_element_type=f32)        # (16, 128)
    z = jnp.maximum(jnp.sum(hp, axis=0, keepdims=True) + bl1_ref[...], 0.0)        # (1, 128)
    logits = jnp.dot(z.astype(bf16), wl2_ref[...], preferred_element_type=f32) + bl2_ref[...]
    o_ref[0] = logits.astype(o_ref.dtype)


def aap_inr_cls4_forward(x, params):
    """x: (B, H, W, Cin) float32 NHWC.  Returns (B, out_dims) float32 logits."""
    B, H, W, Cin = x.shape
    C = params["C"]
    C1, C2 = C, 2 * C
    out_dims = params["b2"].shape[-1]
    consts = make_kernel_consts(params, H, W)

    kern = functools.partial(_fused_kernel, H=H, W=W, C1=C1, C2=C2)

    def full(shape):
        return pl.BlockSpec(shape, lambda b, _n=len(shape): (0,) * _n)

    out = pl.pallas_call(
        kern,
        out_shape=jax.ShapeDtypeStruct((B, 1, out_dims), jnp.float32),
        grid=(B,),
        in_specs=[
            pl.BlockSpec((1, H, W, Cin), lambda b: (b, 0, 0, 0)),    # x (per-batch block)
            full((1, H, W, C1)),                                     # positional encoding (shared)
            full((9 * CP, C1)), full((1, C1)),                       # conv1 w (padded im2col), b
            full((9 * CP, C2)), full((1, C2)),                       # conv2 w, b
            full((9 * CP, C2)), full((1, C2)),                       # conv3 w, b
            full((H * W // 4, H * W)),                               # stride-2 selection matrix
            full((16, (H // 2) * (W // 2))),                         # 4x4 avg-pool matrix
            full((C2, 16 * C2)),                                     # block-diag tiling helper
            full((16, 16 * C2)),                                     # block-diag mask
            full((16 * C2, 128)), full((1, 128)),                    # Linear1 w, b
            full((128, out_dims)), full((1, out_dims)),              # Linear2 w, b
        ],
        out_specs=pl.BlockSpec((1, 1, out_dims), lambda b: (b, 0, 0)),
        scratch_shapes=[
            pltpu.VMEM((H + 2, W + 2, CP), jnp.float32),             # halo-padded act (layers 1-2)
            pltpu.VMEM((H // 2 + 2, W // 2 + 2, CP), jnp.float32),   # halo-padded act (layer 3)
            pltpu.VMEM((H * W, 9 * CP), jnp.bfloat16),               # im2col staging buffer
        ],
        compiler_params=pltpu.CompilerParams(dimension_semantics=("parallel",)),
    )(x, *consts)
    return out.reshape(B, out_dims)


# ----------------------------------------------------------------------------
# Host-side constants / parameters
# ----------------------------------------------------------------------------
def positional_encoding(H, W, C):
    # TODO(synk): exact inrnet PositionalEncoding frequency scaling / channel ordering is
    # library-internal; using standard additive [sin,cos] x [x,y] at N=C//4 octave freqs.
    N = C // 4
    ys = (jnp.arange(H, dtype=jnp.float32) + 0.5) / H * 2.0 - 1.0
    xs = (jnp.arange(W, dtype=jnp.float32) + 0.5) / W * 2.0 - 1.0
    yy, xx = jnp.meshgrid(ys, xs, indexing="ij")
    feats = []
    for k in range(N):
        f = (2.0 ** k) * jnp.pi
        feats += [jnp.sin(f * xx), jnp.cos(f * xx), jnp.sin(f * yy), jnp.cos(f * yy)]
    return jnp.stack(feats, axis=-1)                  # (H, W, C)


def kaiming_uniform(key, shape, fan_in):
    bound = (6.0 / fan_in) ** 0.5
    return jax.random.uniform(key, shape, jnp.float32, -bound, bound)


def make_params(key, in_channels, C, out_dims):
    ks = jax.random.split(key, 5)
    C2 = 2 * C
    p = {"C": C}
    # conv weights stored as (9, Cin, Cout) == flattened 3x3 taps, HWIO-style
    p["w1c"] = kaiming_uniform(ks[0], (9, in_channels, C), 9 * in_channels)
    p["b1c"] = jnp.zeros((1, C), jnp.float32)
    p["w2c"] = kaiming_uniform(ks[1], (9, C, C2), 9 * C)
    p["b2c"] = jnp.zeros((1, C2), jnp.float32)
    p["w3c"] = kaiming_uniform(ks[2], (9, C2, C2), 9 * C2)
    p["b3c"] = jnp.zeros((1, C2), jnp.float32)
    # out_layers: nn.Linear weights in PyTorch layout (out,in), kaiming_uniform, zero bias.
    W1_pt = kaiming_uniform(ks[3], (128, C2 * 16), C2 * 16)               # (128, 1024)
    W2_pt = kaiming_uniform(ks[4], (out_dims, 128), 128)                  # (out_dims, 128)
    # PyTorch flattens the pooled NCHW map as idx = c*16 + ph*4 + pw.
    W1t = W1_pt.T                                                         # (C2*16, 128), row c*16+q
    p["w1r"] = W1t.reshape(C2, 4, 4, 128).transpose(1, 2, 0, 3)           # (4,4,C2,128) for ref
    p["w1fold"] = W1t.reshape(C2, 16, 128).transpose(1, 0, 2).reshape(16 * C2, 128)  # row q*C2+c
    p["b1"] = jnp.zeros((1, 128), jnp.float32)
    p["w2t"] = W2_pt.T                                                    # (128, out_dims)
    p["b2"] = jnp.zeros((1, out_dims), jnp.float32)
    return p


def make_kernel_consts(params, H, W):
    """Kernel-side constant tensors (bf16 matmul operands, 0/1 selection matrices)."""
    C = params["C"]
    C1, C2 = C, 2 * C
    Hd, Wd = H // 2, W // 2
    bf16 = jnp.bfloat16

    pe = positional_encoding(H, W, C1)[None]                              # (1,H,W,C1) f32

    def pad_taps(wc):  # (9, Cin, Cout) -> (9*128, Cout), channel-zero-padded, bf16
        cin = wc.shape[1]
        return jnp.pad(wc, ((0, 0), (0, CP - cin), (0, 0))).reshape(9 * CP, -1).astype(bf16)

    w1p, w2p, w3p = pad_taps(params["w1c"]), pad_taps(params["w2c"]), pad_taps(params["w3c"])

    # 0/1 matrix implementing `y[:, ::2, ::2, :]` on row-major flattened (H*W) maps.
    r = jnp.arange(Hd * Wd)
    i, j = r // Wd, r % Wd
    q_full = jnp.arange(H * W)
    hh, ww = q_full // W, q_full % W
    sel = ((hh[None, :] == 2 * i[:, None]) & (ww[None, :] == 2 * j[:, None])).astype(bf16)

    # 4x4 adaptive average pool over the (Hd, Wd) grid as a (16, Hd*Wd) matrix.
    sh, sw = Hd // 4, Wd // 4
    qc = jnp.arange(16)
    ph, pw = qc // 4, qc % 4
    pd = jnp.arange(Hd * Wd)
    hd, wd = pd // Wd, pd % Wd
    pool = ((hd[None, :] // sh == ph[:, None]) & (wd[None, :] // sw == pw[:, None]))
    pool = (pool.astype(jnp.float32) / float(sh * sw)).astype(bf16)

    # Block-diagonalization helpers: bd[q, q'*C2 + c] = pooled[q, c] * (q == q').
    tile = jnp.tile(jnp.eye(C2, dtype=jnp.float32), (1, 16)).astype(bf16)   # (C2, 16*C2)
    mask = jnp.repeat(jnp.eye(16, dtype=jnp.float32), C2, axis=1)           # (16, 16*C2) f32

    return (pe, w1p, params["b1c"], w2p, params["b2c"], w3p, params["b3c"],
            sel, pool, tile, mask,
            params["w1fold"].astype(bf16), params["b1"],
            params["w2t"].astype(bf16), params["b2"])


# ----------------------------------------------------------------------------
# Pure-JAX reference (same discretization, HIGHEST precision) for validation
# ----------------------------------------------------------------------------
def _conv3x3_ref(x, w, b):
    B, H, W, Cin = x.shape
    Cout = w.shape[-1]
    xp = jnp.pad(x, ((0, 0), (1, 1), (1, 1), (0, 0)))
    y = jnp.zeros((B, H, W, Cout), jnp.float32)
    for k in range(9):
        dy, dx = divmod(k, 3)
        y = y + jnp.einsum("bhwi,io->bhwo", xp[:, dy:dy + H, dx:dx + W, :], w[k],
                           precision=lax.Precision.HIGHEST)
    return y + b


def forward_ref(x, params):
    B, H, W, _ = x.shape
    C = params["C"]
    pe = positional_encoding(H, W, C)[None]
    y = jnp.maximum(_conv3x3_ref(x, params["w1c"], params["b1c"]), 0.0) + pe
    y = jnp.maximum(_conv3x3_ref(y, params["w2c"], params["b2c"]), 0.0)
    y = y[:, ::2, ::2, :]
    y = jnp.maximum(y + _conv3x3_ref(y, params["w3c"], params["b3c"]), 0.0)
    Hd, Wd, Cf = y.shape[1:]
    pooled = y.reshape(B, 4, Hd // 4, 4, Wd // 4, Cf).mean(axis=(2, 4))
    acc = jnp.einsum("bhwc,hwco->bo", pooled, params["w1r"],
                     precision=lax.Precision.HIGHEST)
    z = jnp.maximum(acc + params["b1"], 0.0)
    return jnp.dot(z, params["w2t"], precision=lax.Precision.HIGHEST) + params["b2"]


# ----------------------------------------------------------------------------
if __name__ == "__main__":
    key = jax.random.PRNGKey(0)
    k_params, k_x = jax.random.split(key)

    in_channels, C, out_dims = 4, 32, 10
    B, H, W = 2, 16, 16

    params = make_params(k_params, in_channels, C, out_dims)
    x = jax.random.normal(k_x, (B, H, W, in_channels), jnp.float32)   # NHWC

    out = jax.block_until_ready(aap_inr_cls4_forward(x, params))
    ref = jax.block_until_ready(forward_ref(x, params))

    assert out.shape == (B, out_dims), out.shape
    # bf16 MXU operands (f32 accumulate) vs HIGHEST-precision reference -> modest tolerance.
    assert jnp.allclose(out, ref, rtol=2e-2, atol=5e-2), (
        "max abs diff = %g" % float(jnp.max(jnp.abs(out - ref))))

    print("KERNEL_OK")
</pallas_src>

<mosaic_0001>
module attributes {stable_mosaic.version = 11 : i64} {
  func.func @_fused_kernel(%arg0: i32, %arg1: memref<1x16x16x4xf32, #tpu.memory_space<vmem>>, %arg2: memref<1x16x16x32xf32, #tpu.memory_space<vmem>>, %arg3: memref<1152x32xbf16, #tpu.memory_space<vmem>>, %arg4: memref<1x32xf32, #tpu.memory_space<vmem>>, %arg5: memref<1152x64xbf16, #tpu.memory_space<vmem>>, %arg6: memref<1x64xf32, #tpu.memory_space<vmem>>, %arg7: memref<1152x64xbf16, #tpu.memory_space<vmem>>, %arg8: memref<1x64xf32, #tpu.memory_space<vmem>>, %arg9: memref<64x256xbf16, #tpu.memory_space<vmem>>, %arg10: memref<16x64xbf16, #tpu.memory_space<vmem>>, %arg11: memref<64x1024xbf16, #tpu.memory_space<vmem>>, %arg12: memref<16x1024xf32, #tpu.memory_space<vmem>>, %arg13: memref<1024x128xbf16, #tpu.memory_space<vmem>>, %arg14: memref<1x128xf32, #tpu.memory_space<vmem>>, %arg15: memref<128x10xbf16, #tpu.memory_space<vmem>>, %arg16: memref<1x10xf32, #tpu.memory_space<vmem>>, %arg17: memref<1x1x10xf32, #tpu.memory_space<vmem>>, %arg18: memref<18x18x128xf32, #tpu.memory_space<vmem>>, %arg19: memref<10x10x128xf32, #tpu.memory_space<vmem>>, %arg20: memref<256x1152xbf16, #tpu.memory_space<vmem>>) attributes {dimension_semantics = [#tpu.dimension_semantics<parallel>], iteration_bounds = array<i64: 2>, scalar_prefetch = 0 : i64, scratch_operands = 3 : i64, tpu.core_type = #tpu.core_type<tc>, window_params = [{transform_indices = @transform_0, window_bounds = array<i64: 1, 16, 16, 4>}, {pipeline_mode = #tpu.pipeline_mode<synchronous>, transform_indices = @transform_1, window_bounds = array<i64: 1, 16, 16, 32>}, {pipeline_mode = #tpu.pipeline_mode<synchronous>, transform_indices = @transform_2, window_bounds = array<i64: 1152, 32>}, {pipeline_mode = #tpu.pipeline_mode<synchronous>, transform_indices = @transform_3, window_bounds = array<i64: 1, 32>}, {pipeline_mode = #tpu.pipeline_mode<synchronous>, transform_indices = @transform_4, window_bounds = array<i64: 1152, 64>}, {pipeline_mode = #tpu.pipeline_mode<synchronous>, transform_indices = @transform_5, window_bounds = array<i64: 1, 64>}, {pipeline_mode = #tpu.pipeline_mode<synchronous>, transform_indices = @transform_6, window_bounds = array<i64: 1152, 64>}, {pipeline_mode = #tpu.pipeline_mode<synchronous>, transform_indices = @transform_7, window_bounds = array<i64: 1, 64>}, {pipeline_mode = #tpu.pipeline_mode<synchronous>, transform_indices = @transform_8, window_bounds = array<i64: 64, 256>}, {pipeline_mode = #tpu.pipeline_mode<synchronous>, transform_indices = @transform_9, window_bounds = array<i64: 16, 64>}, {pipeline_mode = #tpu.pipeline_mode<synchronous>, transform_indices = @transform_10, window_bounds = array<i64: 64, 1024>}, {pipeline_mode = #tpu.pipeline_mode<synchronous>, transform_indices = @transform_11, window_bounds = array<i64: 16, 1024>}, {pipeline_mode = #tpu.pipeline_mode<synchronous>, transform_indices = @transform_12, window_bounds = array<i64: 1024, 128>}, {pipeline_mode = #tpu.pipeline_mode<synchronous>, transform_indices = @transform_13, window_bounds = array<i64: 1, 128>}, {pipeline_mode = #tpu.pipeline_mode<synchronous>, transform_indices = @transform_14, window_bounds = array<i64: 128, 10>}, {pipeline_mode = #tpu.pipeline_mode<synchronous>, transform_indices = @transform_15, window_bounds = array<i64: 1, 10>}, {transform_indices = @transform_16, window_bounds = array<i64: 1, 1, 10>}]} {
    %cst = arith.constant 0.000000e+00 : f32
    %0 = vector.broadcast %cst : f32 to vector<18x18x128xf32>
    %c0 = arith.constant 0 : index
    %c0_0 = arith.constant 0 : index
    %c0_1 = arith.constant 0 : index
    %1 = vector.load %arg18[%c0, %c0_0, %c0_1] : memref<18x18x128xf32, #tpu.memory_space<vmem>>, vector<18x18x128xf32>
    tpu.vector_store %arg18[%c0, %c0_0, %c0_1], %0 {strides = array<i32>} : memref<18x18x128xf32, #tpu.memory_space<vmem>>, vector<18x18x128xf32>,
    %cst_2 = arith.constant 0.000000e+00 : f32
    %2 = vector.broadcast %cst_2 : f32 to vector<10x10x128xf32>
    %c0_3 = arith.constant 0 : index
    %c0_4 = arith.constant 0 : index
    %c0_5 = arith.constant 0 : index
    %3 = vector.load %arg19[%c0_3, %c0_4, %c0_5] : memref<10x10x128xf32, #tpu.memory_space<vmem>>, vector<10x10x128xf32>
    tpu.vector_store %arg19[%c0_3, %c0_4, %c0_5], %2 {strides = array<i32>} : memref<10x10x128xf32, #tpu.memory_space<vmem>>, vector<10x10x128xf32>,
    %c0_6 = arith.constant 0 : index
    %c0_7 = arith.constant 0 : index
    %c0_8 = arith.constant 0 : index
    %c0_9 = arith.constant 0 : index
    %4 = vector.load %arg1[%c0_6, %c0_7, %c0_8, %c0_9] : memref<1x16x16x4xf32, #tpu.memory_space<vmem>>, vector<1x16x16x4xf32>
    %5 = vector.shape_cast %4 : vector<1x16x16x4xf32> to vector<16x16x4xf32>
    %c1 = arith.constant 1 : index
    %c1_10 = arith.constant 1 : index
    %c0_11 = arith.constant 0 : index
    %6 = vector.load %arg18[%c1, %c1_10, %c0_11] : memref<18x18x128xf32, #tpu.memory_space<vmem>>, vector<16x16x4xf32>
    tpu.vector_store %arg18[%c1, %c1_10, %c0_11], %5 {strides = array<i32>} : memref<18x18x128xf32, #tpu.memory_space<vmem>>, vector<16x16x4xf32>,
    %c0_12 = arith.constant 0 : index
    %c0_13 = arith.constant 0 : index
    %c0_14 = arith.constant 0 : index
    %7 = vector.load %arg18[%c0_12, %c0_13, %c0_14] : memref<18x18x128xf32, #tpu.memory_space<vmem>>, vector<16x16x128xf32>
    %8 = vector.shape_cast %7 : vector<16x16x128xf32> to vector<256x128xf32>
    %9 = arith.truncf %8 : vector<256x128xf32> to vector<256x128xbf16>
    %c0_15 = arith.constant 0 : index
    %c0_16 = arith.constant 0 : index
    %10 = vector.load %arg20[%c0_15, %c0_16] : memref<256x1152xbf16, #tpu.memory_space<vmem>>, vector<256x128xbf16>
    tpu.vector_store %arg20[%c0_15, %c0_16], %9 {strides = array<i32>} : memref<256x1152xbf16, #tpu.memory_space<vmem>>, vector<256x128xbf16>,
    %c0_17 = arith.constant 0 : index
    %c1_18 = arith.constant 1 : index
    %c0_19 = arith.constant 0 : index
    %11 = vector.load %arg18[%c0_17, %c1_18, %c0_19] : memref<18x18x128xf32, #tpu.memory_space<vmem>>, vector<16x16x128xf32>
    %12 = vector.shape_cast %11 : vector<16x16x128xf32> to vector<256x128xf32>
    %13 = arith.truncf %12 : vector<256x128xf32> to vector<256x128xbf16>
    %c0_20 = arith.constant 0 : index
    %c128 = arith.constant 128 : index
    %14 = vector.load %arg20[%c0_20, %c128] : memref<256x1152xbf16, #tpu.memory_space<vmem>>, vector<256x128xbf16>
    tpu.vector_store %arg20[%c0_20, %c128], %13 {strides = array<i32>} : memref<256x1152xbf16, #tpu.memory_space<vmem>>, vector<256x128xbf16>,
    %c0_21 = arith.constant 0 : index
    %c2 = arith.constant 2 : index
    %c0_22 = arith.constant 0 : index
    %15 = vector.load %arg18[%c0_21, %c2, %c0_22] : memref<18x18x128xf32, #tpu.memory_space<vmem>>, vector<16x16x128xf32>
    %16 = vector.shape_cast %15 : vector<16x16x128xf32> to vector<256x128xf32>
    %17 = arith.truncf %16 : vector<256x128xf32> to vector<256x128xbf16>
    %c0_23 = arith.constant 0 : index
    %c256 = arith.constant 256 : index
    %18 = vector.load %arg20[%c0_23, %c256] : memref<256x1152xbf16, #tpu.memory_space<vmem>>, vector<256x128xbf16>
    tpu.vector_store %arg20[%c0_23, %c256], %17 {strides = array<i32>} : memref<256x1152xbf16, #tpu.memory_space<vmem>>, vector<256x128xbf16>,
    %c1_24 = arith.constant 1 : index
    %c0_25 = arith.constant 0 : index
    %c0_26 = arith.constant 0 : index
    %19 = vector.load %arg18[%c1_24, %c0_25, %c0_26] : memref<18x18x128xf32, #tpu.memory_space<vmem>>, vector<16x16x128xf32>
    %20 = vector.shape_cast %19 : vector<16x16x128xf32> to vector<256x128xf32>
    %21 = arith.truncf %20 : vector<256x128xf32> to vector<256x128xbf16>
    %c0_27 = arith.constant 0 : index
    %c384 = arith.constant 384 : index
    %22 = vector.load %arg20[%c0_27, %c384] : memref<256x1152xbf16, #tpu.memory_space<vmem>>, vector<256x128xbf16>
    tpu.vector_store %arg20[%c0_27, %c384], %21 {strides = array<i32>} : memref<256x1152xbf16, #tpu.memory_space<vmem>>, vector<256x128xbf16>,
    %c1_28 = arith.constant 1 : index
    %c1_29 = arith.constant 1 : index
    %c0_30 = arith.constant 0 : index
    %23 = vector.load %arg18[%c1_28, %c1_29, %c0_30] : memref<18x18x128xf32, #tpu.memory_space<vmem>>, vector<16x16x128xf32>
    %24 = vector.shape_cast %23 : vector<16x16x128xf32> to vector<256x128xf32>
    %25 = arith.truncf %24 : vector<256x128xf32> to vector<256x128xbf16>
    %c0_31 = arith.constant 0 : index
    %c512 = arith.constant 512 : index
    %26 = vector.load %arg20[%c0_31, %c512] : memref<256x1152xbf16, #tpu.memory_space<vmem>>, vector<256x128xbf16>
    tpu.vector_store %arg20[%c0_31, %c512], %25 {strides = array<i32>} : memref<256x1152xbf16, #tpu.memory_space<vmem>>, vector<256x128xbf16>,
    %c1_32 = arith.constant 1 : index
    %c2_33 = arith.constant 2 : index
    %c0_34 = arith.constant 0 : index
    %27 = vector.load %arg18[%c1_32, %c2_33, %c0_34] : memref<18x18x128xf32, #tpu.memory_space<vmem>>, vector<16x16x128xf32>
    %28 = vector.shape_cast %27 : vector<16x16x128xf32> to vector<256x128xf32>
    %29 = arith.truncf %28 : vector<256x128xf32> to vector<256x128xbf16>
    %c0_35 = arith.constant 0 : index
    %c640 = arith.constant 640 : index
    %30 = vector.load %arg20[%c0_35, %c640] : memref<256x1152xbf16, #tpu.memory_space<vmem>>, vector<256x128xbf16>
    tpu.vector_store %arg20[%c0_35, %c640], %29 {strides = array<i32>} : memref<256x1152xbf16, #tpu.memory_space<vmem>>, vector<256x128xbf16>,
    %c2_36 = arith.constant 2 : index
    %c0_37 = arith.constant 0 : index
    %c0_38 = arith.constant 0 : index
    %31 = vector.load %arg18[%c2_36, %c0_37, %c0_38] : memref<18x18x128xf32, #tpu.memory_space<vmem>>, vector<16x16x128xf32>
    %32 = vector.shape_cast %31 : vector<16x16x128xf32> to vector<256x128xf32>
    %33 = arith.truncf %32 : vector<256x128xf32> to vector<256x128xbf16>
    %c0_39 = arith.constant 0 : index
    %c768 = arith.constant 768 : index
    %34 = vector.load %arg20[%c0_39, %c768] : memref<256x1152xbf16, #tpu.memory_space<vmem>>, vector<256x128xbf16>
    tpu.vector_store %arg20[%c0_39, %c768], %33 {strides = array<i32>} : memref<256x1152xbf16, #tpu.memory_space<vmem>>, vector<256x128xbf16>,
    %c2_40 = arith.constant 2 : index
    %c1_41 = arith.constant 1 : index
    %c0_42 = arith.constant 0 : index
    %35 = vector.load %arg18[%c2_40, %c1_41, %c0_42] : memref<18x18x128xf32, #tpu.memory_space<vmem>>, vector<16x16x128xf32>
    %36 = vector.shape_cast %35 : vector<16x16x128xf32> to vector<256x128xf32>
    %37 = arith.truncf %36 : vector<256x128xf32> to vector<256x128xbf16>
    %c0_43 = arith.constant 0 : index
    %c896 = arith.constant 896 : index
    %38 = vector.load %arg20[%c0_43, %c896] : memref<256x1152xbf16, #tpu.memory_space<vmem>>, vector<256x128xbf16>
    tpu.vector_store %arg20[%c0_43, %c896], %37 {strides = array<i32>} : memref<256x1152xbf16, #tpu.memory_space<vmem>>, vector<256x128xbf16>,
    %c2_44 = arith.constant 2 : index
    %c2_45 = arith.constant 2 : index
    %c0_46 = arith.constant 0 : index
    %39 = vector.load %arg18[%c2_44, %c2_45, %c0_46] : memref<18x18x128xf32, #tpu.memory_space<vmem>>, vector<16x16x128xf32>
    %40 = vector.shape_cast %39 : vector<16x16x128xf32> to vector<256x128xf32>
    %41 = arith.truncf %40 : vector<256x128xf32> to vector<256x128xbf16>
    %c0_47 = arith.constant 0 : index
    %c1024 = arith.constant 1024 : index
    %42 = vector.load %arg20[%c0_47, %c1024] : memref<256x1152xbf16, #tpu.memory_space<vmem>>, vector<256x128xbf16>
    tpu.vector_store %arg20[%c0_47, %c1024], %41 {strides = array<i32>} : memref<256x1152xbf16, #tpu.memory_space<vmem>>, vector<256x128xbf16>,
    %c0_48 = arith.constant 0 : index
    %c0_49 = arith.constant 0 : index
    %43 = vector.load %arg20[%c0_48, %c0_49] : memref<256x1152xbf16, #tpu.memory_space<vmem>>, vector<256x1152xbf16>
    %c0_50 = arith.constant 0 : index
    %c0_51 = arith.constant 0 : index
    %44 = vector.load %arg3[%c0_50, %c0_51] : memref<1152x32xbf16, #tpu.memory_space<vmem>>, vector<1152x32xbf16>
    %cst_52 = arith.constant dense<0.000000e+00> : vector<256x32xf32>
    %45 = tpu.matmul %43, %44, %cst_52 {dimension_numbers = #tpu.dot_dimension_numbers<[1], [0], [0], [1], [0, 0, 1, 1], [], []>} : vector<256x1152xbf16>, vector<1152x32xbf16>, vector<256x32xf32> -> vector<256x32xf32>
    %c0_53 = arith.constant 0 : index
    %c0_54 = arith.constant 0 : index
    %46 = vector.load %arg4[%c0_53, %c0_54] : memref<1x32xf32, #tpu.memory_space<vmem>>, vector<1x32xf32>
    %47 = vector.broadcast %46 : vector<1x32xf32> to vector<256x32xf32>
    %48 = arith.addf %45, %47 : vector<256x32xf32>
    %cst_55 = arith.constant 0.000000e+00 : f32
    %49 = vector.broadcast %cst_55 : f32 to vector<256x32xf32>
    %50 = arith.maximumf %48, %49 : vector<256x32xf32>
    %c0_56 = arith.constant 0 : index
    %c0_57 = arith.constant 0 : index
    %c0_58 = arith.constant 0 : index
    %c0_59 = arith.constant 0 : index
    %51 = vector.load %arg2[%c0_56, %c0_57, %c0_58, %c0_59] : memref<1x16x16x32xf32, #tpu.memory_space<vmem>>, vector<1x16x16x32xf32>
    %52 = vector.shape_cast %51 : vector<1x16x16x32xf32> to vector<16x16x32xf32>
    %53 = vector.shape_cast %52 : vector<16x16x32xf32> to vector<256x32xf32>
    %54 = arith.addf %50, %53 : vector<256x32xf32>
    %55 = vector.shape_cast %54 : vector<256x32xf32> to vector<16x16x32xf32>
    %c1_60 = arith.constant 1 : index
    %c1_61 = arith.constant 1 : index
    %c0_62 = arith.constant 0 : index
    %56 = vector.load %arg18[%c1_60, %c1_61, %c0_62] : memref<18x18x128xf32, #tpu.memory_space<vmem>>, vector<16x16x32xf32>
    tpu.vector_store %arg18[%c1_60, %c1_61, %c0_62], %55 {strides = array<i32>} : memref<18x18x128xf32, #tpu.memory_space<vmem>>, vector<16x16x32xf32>,
    %c0_63 = arith.constant 0 : index
    %c0_64 = arith.constant 0 : index
    %c0_65 = arith.constant 0 : index
    %57 = vector.load %arg18[%c0_63, %c0_64, %c0_65] : memref<18x18x128xf32, #tpu.memory_space<vmem>>, vector<16x16x128xf32>
    %58 = vector.shape_cast %57 : vector<16x16x128xf32> to vector<256x128xf32>
    %59 = arith.truncf %58 : vector<256x128xf32> to vector<256x128xbf16>
    %c0_66 = arith.constant 0 : index
    %c0_67 = arith.constant 0 : index
    %60 = vector.load %arg20[%c0_66, %c0_67] : memref<256x1152xbf16, #tpu.memory_space<vmem>>, vector<256x128xbf16>
    tpu.vector_store %arg20[%c0_66, %c0_67], %59 {strides = array<i32>} : memref<256x1152xbf16, #tpu.memory_space<vmem>>, vector<256x128xbf16>,
    %c0_68 = arith.constant 0 : index
    %c1_69 = arith.constant 1 : index
    %c0_70 = arith.constant 0 : index
    %61 = vector.load %arg18[%c0_68, %c1_69, %c0_70] : memref<18x18x128xf32, #tpu.memory_space<vmem>>, vector<16x16x128xf32>
    %62 = vector.shape_cast %61 : vector<16x16x128xf32> to vector<256x128xf32>
    %63 = arith.truncf %62 : vector<256x128xf32> to vector<256x128xbf16>
    %c0_71 = arith.constant 0 : index
    %c128_72 = arith.constant 128 : index
    %64 = vector.load %arg20[%c0_71, %c128_72] : memref<256x1152xbf16, #tpu.memory_space<vmem>>, vector<256x128xbf16>
    tpu.vector_store %arg20[%c0_71, %c128_72], %63 {strides = array<i32>} : memref<256x1152xbf16, #tpu.memory_space<vmem>>, vector<256x128xbf16>,
    %c0_73 = arith.constant 0 : index
    %c2_74 = arith.constant 2 : index
    %c0_75 = arith.constant 0 : index
    %65 = vector.load %arg18[%c0_73, %c2_74, %c0_75] : memref<18x18x128xf32, #tpu.memory_space<vmem>>, vector<16x16x128xf32>
    %66 = vector.shape_cast %65 : vector<16x16x128xf32> to vector<256x128xf32>
    %67 = arith.truncf %66 : vector<256x128xf32> to vector<256x128xbf16>
    %c0_76 = arith.constant 0 : index
    %c256_77 = arith.constant 256 : index
    %68 = vector.load %arg20[%c0_76, %c256_77] : memref<256x1152xbf16, #tpu.memory_space<vmem>>, vector<256x128xbf16>
    tpu.vector_store %arg20[%c0_76, %c256_77], %67 {strides = array<i32>} : memref<256x1152xbf16, #tpu.memory_space<vmem>>, vector<256x128xbf16>,
    %c1_78 = arith.constant 1 : index
    %c0_79 = arith.constant 0 : index
    %c0_80 = arith.constant 0 : index
    %69 = vector.load %arg18[%c1_78, %c0_79, %c0_80] : memref<18x18x128xf32, #tpu.memory_space<vmem>>, vector<16x16x128xf32>
    %70 = vector.shape_cast %69 : vector<16x16x128xf32> to vector<256x128xf32>
    %71 = arith.truncf %70 : vector<256x128xf32> to vector<256x128xbf16>
    %c0_81 = arith.constant 0 : index
    %c384_82 = arith.constant 384 : index
    %72 = vector.load %arg20[%c0_81, %c384_82] : memref<256x1152xbf16, #tpu.memory_space<vmem>>, vector<256x128xbf16>
    tpu.vector_store %arg20[%c0_81, %c384_82], %71 {strides = array<i32>} : memref<256x1152xbf16, #tpu.memory_space<vmem>>, vector<256x128xbf16>,
    %c1_83 = arith.constant 1 : index
    %c1_84 = arith.constant 1 : index
    %c0_85 = arith.constant 0 : index
    %73 = vector.load %arg18[%c1_83, %c1_84, %c0_85] : memref<18x18x128xf32, #tpu.memory_space<vmem>>, vector<16x16x128xf32>
    %74 = vector.shape_cast %73 : vector<16x16x128xf32> to vector<256x128xf32>
    %75 = arith.truncf %74 : vector<256x128xf32> to vector<256x128xbf16>
    %c0_86 = arith.constant 0 : index
    %c512_87 = arith.constant 512 : index
    %76 = vector.load %arg20[%c0_86, %c512_87] : memref<256x1152xbf16, #tpu.memory_space<vmem>>, vector<256x128xbf16>
    tpu.vector_store %arg20[%c0_86, %c512_87], %75 {strides = array<i32>} : memref<256x1152xbf16, #tpu.memory_space<vmem>>, vector<256x128xbf16>,
    %c1_88 = arith.constant 1 : index
    %c2_89 = arith.constant 2 : index
    %c0_90 = arith.constant 0 : index
    %77 = vector.load %arg18[%c1_88, %c2_89, %c0_90] : memref<18x18x128xf32, #tpu.memory_space<vmem>>, vector<16x16x128xf32>
    %78 = vector.shape_cast %77 : vector<16x16x128xf32> to vector<256x128xf32>
    %79 = arith.truncf %78 : vector<256x128xf32> to vector<256x128xbf16>
    %c0_91 = arith.constant 0 : index
    %c640_92 = arith.constant 640 : index
    %80 = vector.load %arg20[%c0_91, %c640_92] : memref<256x1152xbf16, #tpu.memory_space<vmem>>, vector<256x128xbf16>
    tpu.vector_store %arg20[%c0_91, %c640_92], %79 {strides = array<i32>} : memref<256x1152xbf16, #tpu.memory_space<vmem>>, vector<256x128xbf16>,
    %c2_93 = arith.constant 2 : index
    %c0_94 = arith.constant 0 : index
    %c0_95 = arith.constant 0 : index
    %81 = vector.load %arg18[%c2_93, %c0_94, %c0_95] : memref<18x18x128xf32, #tpu.memory_space<vmem>>, vector<16x16x128xf32>
    %82 = vector.shape_cast %81 : vector<16x16x128xf32> to vector<256x128xf32>
    %83 = arith.truncf %82 : vector<256x128xf32> to vector<256x128xbf16>
    %c0_96 = arith.constant 0 : index
    %c768_97 = arith.constant 768 : index
    %84 = vector.load %arg20[%c0_96, %c768_97] : memref<256x1152xbf16, #tpu.memory_space<vmem>>, vector<256x128xbf16>
    tpu.vector_store %arg20[%c0_96, %c768_97], %83 {strides = array<i32>} : memref<256x1152xbf16, #tpu.memory_space<vmem>>, vector<256x128xbf16>,
    %c2_98 = arith.constant 2 : index
    %c1_99 = arith.constant 1 : index
    %c0_100 = arith.constant 0 : index
    %85 = vector.load %arg18[%c2_98, %c1_99, %c0_100] : memref<18x18x128xf32, #tpu.memory_space<vmem>>, vector<16x16x128xf32>
    %86 = vector.shape_cast %85 : vector<16x16x128xf32> to vector<256x128xf32>
    %87 = arith.truncf %86 : vector<256x128xf32> to vector<256x128xbf16>
    %c0_101 = arith.constant 0 : index
    %c896_102 = arith.constant 896 : index
    %88 = vector.load %arg20[%c0_101, %c896_102] : memref<256x1152xbf16, #tpu.memory_space<vmem>>, vector<256x128xbf16>
    tpu.vector_store %arg20[%c0_101, %c896_102], %87 {strides = array<i32>} : memref<256x1152xbf16, #tpu.memory_space<vmem>>, vector<256x128xbf16>,
    %c2_103 = arith.constant 2 : index
    %c2_104 = arith.constant 2 : index
    %c0_105 = arith.constant 0 : index
    %89 = vector.load %arg18[%c2_103, %c2_104, %c0_105] : memref<18x18x128xf32, #tpu.memory_space<vmem>>, vector<16x16x128xf32>
    %90 = vector.shape_cast %89 : vector<16x16x128xf32> to vector<256x128xf32>
    %91 = arith.truncf %90 : vector<256x128xf32> to vector<256x128xbf16>
    %c0_106 = arith.constant 0 : index
    %c1024_107 = arith.constant 1024 : index
    %92 = vector.load %arg20[%c0_106, %c1024_107] : memref<256x1152xbf16, #tpu.memory_space<vmem>>, vector<256x128xbf16>
    tpu.vector_store %arg20[%c0_106, %c1024_107], %91 {strides = array<i32>} : memref<256x1152xbf16, #tpu.memory_space<vmem>>, vector<256x128xbf16>,
    %c0_108 = arith.constant 0 : index
    %c0_109 = arith.constant 0 : index
    %93 = vector.load %arg20[%c0_108, %c0_109] : memref<256x1152xbf16, #tpu.memory_space<vmem>>, vector<256x1152xbf16>
    %c0_110 = arith.constant 0 : index
    %c0_111 = arith.constant 0 : index
    %94 = vector.load %arg5[%c0_110, %c0_111] : memref<1152x64xbf16, #tpu.memory_space<vmem>>, vector<1152x64xbf16>
    %cst_112 = arith.constant dense<0.000000e+00> : vector<256x64xf32>
    %95 = tpu.matmul %93, %94, %cst_112 {dimension_numbers = #tpu.dot_dimension_numbers<[1], [0], [0], [1], [0, 0, 1, 1], [], []>} : vector<256x1152xbf16>, vector<1152x64xbf16>, vector<256x64xf32> -> vector<256x64xf32>
    %c0_113 = arith.constant 0 : index
    %c0_114 = arith.constant 0 : index
    %96 = vector.load %arg6[%c0_113, %c0_114] : memref<1x64xf32, #tpu.memory_space<vmem>>, vector<1x64xf32>
    %97 = vector.broadcast %96 : vector<1x64xf32> to vector<256x64xf32>
    %98 = arith.addf %95, %97 : vector<256x64xf32>
    %cst_115 = arith.constant 0.000000e+00 : f32
    %99 = vector.broadcast %cst_115 : f32 to vector<256x64xf32>
    %100 = arith.maximumf %98, %99 : vector<256x64xf32>
    %c0_116 = arith.constant 0 : index
    %c0_117 = arith.constant 0 : index
    %101 = vector.load %arg9[%c0_116, %c0_117] : memref<64x256xbf16, #tpu.memory_space<vmem>>, vector<64x256xbf16>
    %102 = arith.truncf %100 : vector<256x64xf32> to vector<256x64xbf16>
    %cst_118 = arith.constant dense<0.000000e+00> : vector<64x64xf32>
    %103 = tpu.matmul %101, %102, %cst_118 {dimension_numbers = #tpu.dot_dimension_numbers<[1], [0], [0], [1], [0, 0, 1, 1], [], []>} : vector<64x256xbf16>, vector<256x64xbf16>, vector<64x64xf32> -> vector<64x64xf32>
    %104 = vector.shape_cast %103 : vector<64x64xf32> to vector<8x8x64xf32>
    %c1_119 = arith.constant 1 : index
    %c1_120 = arith.constant 1 : index
    %c0_121 = arith.constant 0 : index
    %105 = vector.load %arg19[%c1_119, %c1_120, %c0_121] : memref<10x10x128xf32, #tpu.memory_space<vmem>>, vector<8x8x64xf32>
    tpu.vector_store %arg19[%c1_119, %c1_120, %c0_121], %104 {strides = array<i32>} : memref<10x10x128xf32, #tpu.memory_space<vmem>>, vector<8x8x64xf32>,
    %c0_122 = arith.constant 0 : index
    %c0_123 = arith.constant 0 : index
    %c0_124 = arith.constant 0 : index
    %106 = vector.load %arg19[%c0_122, %c0_123, %c0_124] : memref<10x10x128xf32, #tpu.memory_space<vmem>>, vector<8x8x128xf32>
    %107 = vector.shape_cast %106 : vector<8x8x128xf32> to vector<64x128xf32>
    %108 = arith.truncf %107 : vector<64x128xf32> to vector<64x128xbf16>
    %c0_125 = arith.constant 0 : index
    %c0_126 = arith.constant 0 : index
    %109 = vector.load %arg20[%c0_125, %c0_126] : memref<256x1152xbf16, #tpu.memory_space<vmem>>, vector<64x128xbf16>
    tpu.vector_store %arg20[%c0_125, %c0_126], %108 {strides = array<i32>} : memref<256x1152xbf16, #tpu.memory_space<vmem>>, vector<64x128xbf16>,
    %c0_127 = arith.constant 0 : index
    %c1_128 = arith.constant 1 : index
    %c0_129 = arith.constant 0 : index
    %110 = vector.load %arg19[%c0_127, %c1_128, %c0_129] : memref<10x10x128xf32, #tpu.memory_space<vmem>>, vector<8x8x128xf32>
    %111 = vector.shape_cast %110 : vector<8x8x128xf32> to vector<64x128xf32>
    %112 = arith.truncf %111 : vector<64x128xf32> to vector<64x128xbf16>
    %c0_130 = arith.constant 0 : index
    %c128_131 = arith.constant 128 : index
    %113 = vector.load %arg20[%c0_130, %c128_131] : memref<256x1152xbf16, #tpu.memory_space<vmem>>, vector<64x128xbf16>
    tpu.vector_store %arg20[%c0_130, %c128_131], %112 {strides = array<i32>} : memref<256x1152xbf16, #tpu.memory_space<vmem>>, vector<64x128xbf16>,
    %c0_132 = arith.constant 0 : index
    %c2_133 = arith.constant 2 : index
    %c0_134 = arith.constant 0 : index
    %114 = vector.load %arg19[%c0_132, %c2_133, %c0_134] : memref<10x10x128xf32, #tpu.memory_space<vmem>>, vector<8x8x128xf32>
    %115 = vector.shape_cast %114 : vector<8x8x128xf32> to vector<64x128xf32>
    %116 = arith.truncf %115 : vector<64x128xf32> to vector<64x128xbf16>
    %c0_135 = arith.constant 0 : index
    %c256_136 = arith.constant 256 : index
    %117 = vector.load %arg20[%c0_135, %c256_136] : memref<256x1152xbf16, #tpu.memory_space<vmem>>, vector<64x128xbf16>
    tpu.vector_store %arg20[%c0_135, %c256_136], %116 {strides = array<i32>} : memref<256x1152xbf16, #tpu.memory_space<vmem>>, vector<64x128xbf16>,
    %c1_137 = arith.constant 1 : index
    %c0_138 = arith.constant 0 : index
    %c0_139 = arith.constant 0 : index
    %118 = vector.load %arg19[%c1_137, %c0_138, %c0_139] : memref<10x10x128xf32, #tpu.memory_space<vmem>>, vector<8x8x128xf32>
    %119 = vector.shape_cast %118 : vector<8x8x128xf32> to vector<64x128xf32>
    %120 = arith.truncf %119 : vector<64x128xf32> to vector<64x128xbf16>
    %c0_140 = arith.constant 0 : index
    %c384_141 = arith.constant 384 : index
    %121 = vector.load %arg20[%c0_140, %c384_141] : memref<256x1152xbf16, #tpu.memory_space<vmem>>, vector<64x128xbf16>
    tpu.vector_store %arg20[%c0_140, %c384_141], %120 {strides = array<i32>} : memref<256x1152xbf16, #tpu.memory_space<vmem>>, vector<64x128xbf16>,
    %c1_142 = arith.constant 1 : index
    %c1_143 = arith.constant 1 : index
    %c0_144 = arith.constant 0 : index
    %122 = vector.load %arg19[%c1_142, %c1_143, %c0_144] : memref<10x10x128xf32, #tpu.memory_space<vmem>>, vector<8x8x128xf32>
    %123 = vector.shape_cast %122 : vector<8x8x128xf32> to vector<64x128xf32>
    %124 = arith.truncf %123 : vector<64x128xf32> to vector<64x128xbf16>
    %c0_145 = arith.constant 0 : index
    %c512_146 = arith.constant 512 : index
    %125 = vector.load %arg20[%c0_145, %c512_146] : memref<256x1152xbf16, #tpu.memory_space<vmem>>, vector<64x128xbf16>
    tpu.vector_store %arg20[%c0_145, %c512_146], %124 {strides = array<i32>} : memref<256x1152xbf16, #tpu.memory_space<vmem>>, vector<64x128xbf16>,
    %c1_147 = arith.constant 1 : index
    %c2_148 = arith.constant 2 : index
    %c0_149 = arith.constant 0 : index
    %126 = vector.load %arg19[%c1_147, %c2_148, %c0_149] : memref<10x10x128xf32, #tpu.memory_space<vmem>>, vector<8x8x128xf32>
    %127 = vector.shape_cast %126 : vector<8x8x128xf32> to vector<64x128xf32>
    %128 = arith.truncf %127 : vector<64x128xf32> to vector<64x128xbf16>
    %c0_150 = arith.constant 0 : index
    %c640_151 = arith.constant 640 : index
    %129 = vector.load %arg20[%c0_150, %c640_151] : memref<256x1152xbf16, #tpu.memory_space<vmem>>, vector<64x128xbf16>
    tpu.vector_store %arg20[%c0_150, %c640_151], %128 {strides = array<i32>} : memref<256x1152xbf16, #tpu.memory_space<vmem>>, vector<64x128xbf16>,
    %c2_152 = arith.constant 2 : index
    %c0_153 = arith.constant 0 : index
    %c0_154 = arith.constant 0 : index
    %130 = vector.load %arg19[%c2_152, %c0_153, %c0_154] : memref<10x10x128xf32, #tpu.memory_space<vmem>>, vector<8x8x128xf32>
    %131 = vector.shape_cast %130 : vector<8x8x128xf32> to vector<64x128xf32>
    %132 = arith.truncf %131 : vector<64x128xf32> to vector<64x128xbf16>
    %c0_155 = arith.constant 0 : index
    %c768_156 = arith.constant 768 : index
    %133 = vector.load %arg20[%c0_155, %c768_156] : memref<256x1152xbf16, #tpu.memory_space<vmem>>, vector<64x128xbf16>
    tpu.vector_store %arg20[%c0_155, %c768_156], %132 {strides = array<i32>} : memref<256x1152xbf16, #tpu.memory_space<vmem>>, vector<64x128xbf16>,
    %c2_157 = arith.constant 2 : index
    %c1_158 = arith.constant 1 : index
    %c0_159 = arith.constant 0 : index
    %134 = vector.load %arg19[%c2_157, %c1_158, %c0_159] : memref<10x10x128xf32, #tpu.memory_space<vmem>>, vector<8x8x128xf32>
    %135 = vector.shape_cast %134 : vector<8x8x128xf32> to vector<64x128xf32>
    %136 = arith.truncf %135 : vector<64x128xf32> to vector<64x128xbf16>
    %c0_160 = arith.constant 0 : index
    %c896_161 = arith.constant 896 : index
    %137 = vector.load %arg20[%c0_160, %c896_161] : memref<256x1152xbf16, #tpu.memory_space<vmem>>, vector<64x128xbf16>
    tpu.vector_store %arg20[%c0_160, %c896_161], %136 {strides = array<i32>} : memref<256x1152xbf16, #tpu.memory_space<vmem>>, vector<64x128xbf16>,
    %c2_162 = arith.constant 2 : index
    %c2_163 = arith.constant 2 : index
    %c0_164 = arith.constant 0 : index
    %138 = vector.load %arg19[%c2_162, %c2_163, %c0_164] : memref<10x10x128xf32, #tpu.memory_space<vmem>>, vector<8x8x128xf32>
    %139 = vector.shape_cast %138 : vector<8x8x128xf32> to vector<64x128xf32>
    %140 = arith.truncf %139 : vector<64x128xf32> to vector<64x128xbf16>
    %c0_165 = arith.constant 0 : index
    %c1024_166 = arith.constant 1024 : index
    %141 = vector.load %arg20[%c0_165, %c1024_166] : memref<256x1152xbf16, #tpu.memory_space<vmem>>, vector<64x128xbf16>
    tpu.vector_store %arg20[%c0_165, %c1024_166], %140 {strides = array<i32>} : memref<256x1152xbf16, #tpu.memory_space<vmem>>, vector<64x128xbf16>,
    %c0_167 = arith.constant 0 : index
    %c0_168 = arith.constant 0 : index
    %142 = vector.load %arg20[%c0_167, %c0_168] : memref<256x1152xbf16, #tpu.memory_space<vmem>>, vector<64x1152xbf16>
    %c0_169 = arith.constant 0 : index
    %c0_170 = arith.constant 0 : index
    %143 = vector.load %arg7[%c0_169, %c0_170] : memref<1152x64xbf16, #tpu.memory_space<vmem>>, vector<1152x64xbf16>
    %cst_171 = arith.constant dense<0.000000e+00> : vector<64x64xf32>
    %144 = tpu.matmul %142, %143, %cst_171 {dimension_numbers = #tpu.dot_dimension_numbers<[1], [0], [0], [1], [0, 0, 1, 1], [], []>} : vector<64x1152xbf16>, vector<1152x64xbf16>, vector<64x64xf32> -> vector<64x64xf32>
    %c0_172 = arith.constant 0 : index
    %c0_173 = arith.constant 0 : index
    %145 = vector.load %arg8[%c0_172, %c0_173] : memref<1x64xf32, #tpu.memory_space<vmem>>, vector<1x64xf32>
    %146 = vector.broadcast %145 : vector<1x64xf32> to vector<64x64xf32>
    %147 = arith.addf %144, %146 : vector<64x64xf32>
    %148 = arith.addf %147, %103 : vector<64x64xf32>
    %cst_174 = arith.constant 0.000000e+00 : f32
    %149 = vector.broadcast %cst_174 : f32 to vector<64x64xf32>
    %150 = arith.maximumf %148, %149 : vector<64x64xf32>
    %c0_175 = arith.constant 0 : index
    %c0_176 = arith.constant 0 : index
    %151 = vector.load %arg10[%c0_175, %c0_176] : memref<16x64xbf16, #tpu.memory_space<vmem>>, vector<16x64xbf16>
    %152 = arith.truncf %150 : vector<64x64xf32> to vector<64x64xbf16>
    %cst_177 = arith.constant dense<0.000000e+00> : vector<16x64xf32>
    %153 = tpu.matmul %151, %152, %cst_177 {dimension_numbers = #tpu.dot_dimension_numbers<[1], [0], [0], [1], [0, 0, 1, 1], [], []>} : vector<16x64xbf16>, vector<64x64xbf16>, vector<16x64xf32> -> vector<16x64xf32>
    %154 = arith.truncf %153 : vector<16x64xf32> to vector<16x64xbf16>
    %c0_178 = arith.constant 0 : index
    %c0_179 = arith.constant 0 : index
    %155 = vector.load %arg11[%c0_178, %c0_179] : memref<64x1024xbf16, #tpu.memory_space<vmem>>, vector<64x1024xbf16>
    %cst_180 = arith.constant dense<0.000000e+00> : vector<16x1024xf32>
    %156 = tpu.matmul %154, %155, %cst_180 {dimension_numbers = #tpu.dot_dimension_numbers<[1], [0], [0], [1], [0, 0, 1, 1], [], []>} : vector<16x64xbf16>, vector<64x1024xbf16>, vector<16x1024xf32> -> vector<16x1024xf32>
    %c0_181 = arith.constant 0 : index
    %c0_182 = arith.constant 0 : index
    %157 = vector.load %arg12[%c0_181, %c0_182] : memref<16x1024xf32, #tpu.memory_space<vmem>>, vector<16x1024xf32>
    %158 = arith.mulf %156, %157 : vector<16x1024xf32>
    %159 = arith.truncf %158 : vector<16x1024xf32> to vector<16x1024xbf16>
    %c0_183 = arith.constant 0 : index
    %c0_184 = arith.constant 0 : index
    %160 = vector.load %arg13[%c0_183, %c0_184] : memref<1024x128xbf16, #tpu.memory_space<vmem>>, vector<1024x128xbf16>
    %cst_185 = arith.constant dense<0.000000e+00> : vector<16x128xf32>
    %161 = tpu.matmul %159, %160, %cst_185 {dimension_numbers = #tpu.dot_dimension_numbers<[1], [0], [0], [1], [0, 0, 1, 1], [], []>} : vector<16x1024xbf16>, vector<1024x128xbf16>, vector<16x128xf32> -> vector<16x128xf32>
    %cst_186 = arith.constant dense<0.000000e+00> : vector<128xf32>
    %162 = vector.multi_reduction <add>, %161, %cst_186 [0] : vector<16x128xf32> to vector<128xf32>
    %163 = vector.shape_cast %162 : vector<128xf32> to vector<1x128xf32>
    %c0_187 = arith.constant 0 : index
    %c0_188 = arith.constant 0 : index
    %164 = vector.load %arg14[%c0_187, %c0_188] : memref<1x128xf32, #tpu.memory_space<vmem>>, vector<1x128xf32>
    %165 = arith.addf %163, %164 : vector<1x128xf32>
    %cst_189 = arith.constant 0.000000e+00 : f32
    %166 = vector.broadcast %cst_189 : f32 to vector<1x128xf32>
    %167 = arith.maximumf %165, %166 : vector<1x128xf32>
    %168 = arith.truncf %167 : vector<1x128xf32> to vector<1x128xbf16>
    %c0_190 = arith.constant 0 : index
    %c0_191 = arith.constant 0 : index
    %169 = vector.load %arg15[%c0_190, %c0_191] : memref<128x10xbf16, #tpu.memory_space<vmem>>, vector<128x10xbf16>
    %cst_192 = arith.constant dense<0.000000e+00> : vector<1x10xf32>
    %170 = tpu.matmul %168, %169, %cst_192 {dimension_numbers = #tpu.dot_dimension_numbers<[1], [0], [0], [1], [0, 0, 1, 1], [], []>} : vector<1x128xbf16>, vector<128x10xbf16>, vector<1x10xf32> -> vector<1x10xf32>
    %c0_193 = arith.constant 0 : index
    %c0_194 = arith.constant 0 : index
    %171 = vector.load %arg16[%c0_193, %c0_194] : memref<1x10xf32, #tpu.memory_space<vmem>>, vector<1x10xf32>
    %172 = arith.addf %170, %171 : vector<1x10xf32>
    %c0_195 = arith.constant 0 : index
    %c0_196 = arith.constant 0 : index
    %c0_197 = arith.constant 0 : index
    %173 = vector.load %arg17[%c0_195, %c0_196, %c0_197] : memref<1x1x10xf32, #tpu.memory_space<vmem>>, vector<1x1x10xf32>
    %174 = vector.shape_cast %173 : vector<1x1x10xf32> to vector<1x10xf32>
    %175 = vector.shape_cast %172 : vector<1x10xf32> to vector<1x1x10xf32>
    tpu.vector_store %arg17[%c0_195, %c0_196, %c0_197], %175 {strides = array<i32>} : memref<1x1x10xf32, #tpu.memory_space<vmem>>, vector<1x1x10xf32>,
    return
  }
  func.func @transform_0(%arg0: i32) -> (i32, i32, i32, i32) {
    %c0_i32 = arith.constant 0 : i32
    %c0_i32_0 = arith.constant 0 : i32
    %c0_i32_1 = arith.constant 0 : i32
    %c0_i32_2 = arith.constant 0 : i32
    return %arg0, %c0_i32, %c0_i32_0, %c0_i32_1 : i32, i32, i32, i32
  }
  func.func @transform_1(%arg0: i32) -> (i32, i32, i32, i32) {
    %c0_i32 = arith.constant 0 : i32
    %c0_i32_0 = arith.constant 0 : i32
    %c0_i32_1 = arith.constant 0 : i32
    %c0_i32_2 = arith.constant 0 : i32
    %c0_i32_3 = arith.constant 0 : i32
    return %c0_i32, %c0_i32_0, %c0_i32_1, %c0_i32_2 : i32, i32, i32, i32
  }
  func.func @transform_2(%arg0: i32) -> (i32, i32) {
    %c0_i32 = arith.constant 0 : i32
    %c0_i32_0 = arith.constant 0 : i32
    %c0_i32_1 = arith.constant 0 : i32
    return %c0_i32, %c0_i32_0 : i32, i32
  }
  func.func @transform_3(%arg0: i32) -> (i32, i32) {
    %c0_i32 = arith.constant 0 : i32
    %c0_i32_0 = arith.constant 0 : i32
    %c0_i32_1 = arith.constant 0 : i32
    return %c0_i32, %c0_i32_0 : i32, i32
  }
  func.func @transform_4(%arg0: i32) -> (i32, i32) {
    %c0_i32 = arith.constant 0 : i32
    %c0_i32_0 = arith.constant 0 : i32
    %c0_i32_1 = arith.constant 0 : i32
    return %c0_i32, %c0_i32_0 : i32, i32
  }
  func.func @transform_5(%arg0: i32) -> (i32, i32) {
    %c0_i32 = arith.constant 0 : i32
    %c0_i32_0 = arith.constant 0 : i32
    %c0_i32_1 = arith.constant 0 : i32
    return %c0_i32, %c0_i32_0 : i32, i32
  }
  func.func @transform_6(%arg0: i32) -> (i32, i32) {
    %c0_i32 = arith.constant 0 : i32
    %c0_i32_0 = arith.constant 0 : i32
    %c0_i32_1 = arith.constant 0 : i32
    return %c0_i32, %c0_i32_0 : i32, i32
  }
  func.func @transform_7(%arg0: i32) -> (i32, i32) {
    %c0_i32 = arith.constant 0 : i32
    %c0_i32_0 = arith.constant 0 : i32
    %c0_i32_1 = arith.constant 0 : i32
    return %c0_i32, %c0_i32_0 : i32, i32
  }
  func.func @transform_8(%arg0: i32) -> (i32, i32) {
    %c0_i32 = arith.constant 0 : i32
    %c0_i32_0 = arith.constant 0 : i32
    %c0_i32_1 = arith.constant 0 : i32
    return %c0_i32, %c0_i32_0 : i32, i32
  }
  func.func @transform_9(%arg0: i32) -> (i32, i32) {
    %c0_i32 = arith.constant 0 : i32
    %c0_i32_0 = arith.constant 0 : i32
    %c0_i32_1 = arith.constant 0 : i32
    return %c0_i32, %c0_i32_0 : i32, i32
  }
  func.func @transform_10(%arg0: i32) -> (i32, i32) {
    %c0_i32 = arith.constant 0 : i32
    %c0_i32_0 = arith.constant 0 : i32
    %c0_i32_1 = arith.constant 0 : i32
    return %c0_i32, %c0_i32_0 : i32, i32
  }
  func.func @transform_11(%arg0: i32) -> (i32, i32) {
    %c0_i32 = arith.constant 0 : i32
    %c0_i32_0 = arith.constant 0 : i32
    %c0_i32_1 = arith.constant 0 : i32
    return %c0_i32, %c0_i32_0 : i32, i32
  }
  func.func @transform_12(%arg0: i32) -> (i32, i32) {
    %c0_i32 = arith.constant 0 : i32
    %c0_i32_0 = arith.constant 0 : i32
    %c0_i32_1 = arith.constant 0 : i32
    return %c0_i32, %c0_i32_0 : i32, i32
  }
  func.func @transform_13(%arg0: i32) -> (i32, i32) {
    %c0_i32 = arith.constant 0 : i32
    %c0_i32_0 = arith.constant 0 : i32
    %c0_i32_1 = arith.constant 0 : i32
    return %c0_i32, %c0_i32_0 : i32, i32
  }
  func.func @transform_14(%arg0: i32) -> (i32, i32) {
    %c0_i32 = arith.constant 0 : i32
    %c0_i32_0 = arith.constant 0 : i32
    %c0_i32_1 = arith.constant 0 : i32
    return %c0_i32, %c0_i32_0 : i32, i32
  }
  func.func @transform_15(%arg0: i32) -> (i32, i32) {
    %c0_i32 = arith.constant 0 : i32
    %c0_i32_0 = arith.constant 0 : i32
    %c0_i32_1 = arith.constant 0 : i32
    return %c0_i32, %c0_i32_0 : i32, i32
  }
  func.func @transform_16(%arg0: i32) -> (i32, i32, i32) {
    %c0_i32 = arith.constant 0 : i32
    %c0_i32_0 = arith.constant 0 : i32
    %c0_i32_1 = arith.constant 0 : i32
    return %arg0, %c0_i32, %c0_i32_0 : i32, i32, i32
  }
}

</mosaic_0001>

<bundles_post_ra>
// kernel: tpu_custom_call.1
= control target key start
LH: loop header
LB: loop body
LE: loop exit
PB: predicated region body
PF: predicated region fallthrough
CT: control target
= control target key end

     0   :  { %s12344_s0 = inlined_call_operand.vmem [shape: f32[2,16,16,4], index: 0, kind: input, shape index: {}]   ;;  %s12345_s1 = inlined_call_operand.vmem [shape: f32[1,16,16,32], index: 1, kind: input, shape index: {}]   ;;  %s12346_s2 = inlined_call_operand.vmem [shape: bf16[1152,32], index: 2, kind: input, shape index: {}]   ;;  %s12347_s3 = inlined_call_operand.vmem [shape: f32[1,32], index: 3, kind: input, shape index: {}]   ;;  %s12348_s4 = inlined_call_operand.vmem [shape: bf16[1152,64], index: 4, kind: input, shape index: {}]   ;;  %s12349_s5 = inlined_call_operand.vmem [shape: f32[1,64], index: 5, kind: input, shape index: {}]   ;;  %s12350_s6 = inlined_call_operand.vmem [shape: bf16[1152,64], index: 6, kind: input, shape index: {}]   ;;  %s12351_s7 = inlined_call_operand.vmem [shape: f32[1,64], index: 7, kind: input, shape index: {}]   ;;  %s12352_s8 = inlined_call_operand.vmem [shape: bf16[64,256], index: 8, kind: input, shape index: {}]   ;;  %s12353_s9 = inlined_call_operand.vmem [shape: bf16[16,64], index: 9, kind: input, shape index: {}]   ;;  %s12354_s10 = inlined_call_operand.vmem [shape: bf16[64,1024], index: 10, kind: input, shape index: {}]   ;;  %s12355_s11 = inlined_call_operand.vmem [shape: f32[16,1024], index: 11, kind: input, shape index: {}]   ;;  %s12356_s12 = inlined_call_operand.vmem [shape: bf16[1024,128], index: 12, kind: input, shape index: {}]   ;;  %s12357_s13 = inlined_call_operand.vmem [shape: f32[1,128], index: 13, kind: input, shape index: {}]   ;;  %s12358_s14 = inlined_call_operand.vmem [shape: bf16[128,10], index: 14, kind: input, shape index: {}]   ;;  %s12359_s15 = inlined_call_operand.vmem [shape: f32[1,10], index: 15, kind: input, shape index: {}]   ;;  %s12360_s16 = inlined_call_operand.hbm [shape: f32[2,1,10], index: 16, kind: output, shape index: {}]  }
   0x1   :  { %12367 = sst [smem:[#allocation14_spill]] %s12344_s0 }
   0x2   :  { %21 = vsyncpa [#allocation6], 0 }
   0x3   :  { %23 = vsyncpa [#allocation6 + $0x1], 0  ;;  %s9865_s21 = smov 0   ;;  %s9867_s22 = smov 0  }
   0x4   :  { %s9869_s23 = smov 0   ;;  %s9871_s24 = smov 0  }
   0x5 LB: > { %12368 = sst [smem:[#allocation8_spill]] %s9761_s21  ;;  %s9886_s25 = sadd.s32 4294967295, %s9773_s24   ;;  %s9773_s24 = sphi %s9871_s24, %s12380_s24   ;;  %s9769_s23 = sphi %s9869_s23, %s12382_s23   ;;  %s9765_s22 = sphi %s9867_s22, %s12384_s22   ;;  %s9761_s21 = sphi %s9865_s21, %s12383_s21  }
   0x6   : > { %12369 = sst [smem:[#allocation9_spill]] %s9769_s23  ;;  %s7607_s26 = sadd.s32 4294967294, %s9773_s24  }
   0x7   : > { %12370 = sst [smem:[#allocation10_spill]] %s9773_s24  ;;  %s9890_s27 = sadd.s32 1, %s9773_s24  }
   0x8   : > { %12371 = sst [smem:[#allocation11_spill]] %s9890_s27  ;;  %s377_s28 = sadd.s32 1, %s9769_s23 }
   0x9   : > { %s374_s29 = ssub.s32 %s9773_s24, %s9890_s27  ;;  %p387_p0 = scmp.ne.s32.totalorder %s9769_s23, %s9765_s22 }
   0xa   : > { %p375_p1 = scmp.eq.s32.totalorder %s374_s29, 0  ;;  %p388_p2 = scmp.eq.s32.totalorder %s9886_s25, 1 }
   0xb   : > { %p393_p3 = scmp.ne.s32.totalorder %s9765_s22, %s9761_s21  ;;  %p394_p4 = scmp.eq.s32.totalorder %s7607_s26, 1 }
   0xc   : > { %s9901_s30 = scalar_select %p375_p1, %s9769_s23, %s377_s28  }
   0xd   : > { %p9903_p5 = por %p388_p2, %p387_p0  ;;  %p9907_p6 = por %p394_p4, %p393_p3 }
   0xe   : > { %12372 = sst [smem:[#allocation12_spill]] %s9901_s30  ;;  %p7610_p7 = scmp.ge.s32.totalorder %s9773_s24, 1 }
   0xf   : > { %s12374_s17 = scalar_select %p9907_p6, 1, 0 }
  0x10   : > { %p465_p8 = scmp.lt.s32.totalorder %s9773_s24, 3 }
  0x11   : > { %12375 = sst [smem:[#allocation13_spill]] %s12374_s17 }
  0x12   : > { %p466_p9 = pnand %p7610_p7, %p465_p8 }
  0x13   : > { %v9916_v0 = vld [vmem:[%s12346_s2 + $0x40] sm:$0xff] (!%p466_p9)   ;;  %v9775_v2 = vmov (!%p466_p9), 0.0   ;;  %v9410_v5 = vld [vmem:[%s12346_s2 + $0x48] sm:$0xff] (!%p466_p9)   ;;  %v9414_v9 = vld [vmem:[%s12346_s2 + $0x50] sm:$0xff] (!%p466_p9)   ;;  %p514_p10 = scmp.lt.s32.totalorder (!%p466_p9), %s9886_s25, 1  ;;  %s12376_s28 = sld [smem:[#allocation14_spill]] (!%p466_p9) }
  0x14   : > { %469 = sbr.rel (%p466_p9) target bundleno = 2562 (0xa02), region = 84  ;;  %v9921_v1 = vld [vmem:[%s12346_s2] sm:$0xff] (!%p466_p9)   ;;  %520 = vst [vmem:[#allocation2] sm:$0xff] (!%p466_p9), %v9775_v2  ;;  %521 = vst [vmem:[#allocation2 + $0x8] sm:$0xff] (!%p466_p9), %v9775_v2  ;;  %7954 = vmatprep.subr.bf16.mxu0 (!%p466_p9), %v9916_v0  ;;  %v9411_v6 = vld [vmem:[%s12346_s2 + $0x8] sm:$0xff] (!%p466_p9)   ;;  %vm627_vm0 = vcmask (!%p466_p9), 31744  }
  0x15   : > { %522 = vst [vmem:[#allocation2 + $0x10] sm:$0x3] (!%p466_p9), %v9775_v2  ;;  %523 = vst [vmem:[#allocation2 + $0x18] sm:$0xff] (!%p466_p9), %v9775_v2  ;;  %v9408_v3 = vld [vmem:[%s12346_s2 + $0xc0] sm:$0xff] (!%p466_p9)   ;;  %7955 = vmatpush3.bf16.msra.mxu0 (!%p466_p9), %v9921_v1  ;;  %v9412_v7 = vld [vmem:[%s12346_s2 + $0xc8] sm:$0xff] (!%p466_p9)   ;;  %v9776_v41 = vmov (!%p466_p9), 0.0|0.0  }
  0x16   : > { %524 = vst [vmem:[#allocation2 + $0x20] sm:$0xff] (!%p466_p9), %v9775_v2  ;;  %525 = vst [vmem:[#allocation2 + $0x28] sm:$0x3] (!%p466_p9), %v9775_v2  ;;  %v9409_v4 = vld [vmem:[%s12346_s2 + $0x80] sm:$0xff] (!%p466_p9)   ;;  %8066 = vmatprep.subr.bf16.mxu1 (!%p466_p9), %v9408_v3  ;;  %7956 = vmatprep.subr.bf16.mxu0 (!%p466_p9), %v9410_v5  ;;  %v9413_v8 = vld [vmem:[%s12346_s2 + $0x88] sm:$0xff] (!%p466_p9)   ;;  %vm2865_vm1 = vcmask (!%p466_p9), 261120  }
  0x17   : > { %526 = vst [vmem:[#allocation2 + $0x30] sm:$0xff] (!%p466_p9), %v9775_v2  ;;  %527 = vst [vmem:[#allocation2 + $0x38] sm:$0xff] (!%p466_p9), %v9775_v2  ;;  %8067 = vmatpush3.bf16.msra.mxu1 (!%p466_p9), %v9409_v4  ;;  %v9415_v10 = vld [vmem:[%s12346_s2 + $0x10] sm:$0xff] (!%p466_p9)   ;;  %v9418_v13 = vld [vmem:[%s12346_s2 + $0x58] sm:$0xff] (!%p466_p9)   ;;  %vm5168_vm2 = vcmask (!%p466_p9), 523264   ;;  %vm9777_vm3 = vmmov (!%p466_p9), 0  }
  0x18   : > { %528 = vst [vmem:[#allocation2 + $0x40] sm:$0x3] (!%p466_p9), %v9775_v2  ;;  %529 = vst [vmem:[#allocation2 + $0x48] sm:$0xff] (!%p466_p9), %v9775_v2  ;;  %8068 = vmatprep.subr.bf16.mxu1 (!%p466_p9), %v9412_v7  ;;  %v9416_v11 = vld [vmem:[%s12346_s2 + $0xd0] sm:$0xff] (!%p466_p9)   ;;  %v9419_v14 = vld [vmem:[%s12346_s2 + $0x18] sm:$0xff] (!%p466_p9)   ;;  %s7950_s24 = sshll.u32 (!%p466_p9), %s9886_s25, 4 }
  0x19   : > { %530 = vst [vmem:[#allocation2 + $0x50] sm:$0xff] (!%p466_p9), %v9775_v2  ;;  %531 = vst [vmem:[#allocation2 + $0x58] sm:$0x3] (!%p466_p9), %v9775_v2  ;;  %7957 = vmatpush3.bf16.msra.mxu0 (!%p466_p9), %v9411_v6  ;;  %v9417_v12 = vld [vmem:[%s12346_s2 + $0x90] sm:$0xff] (!%p466_p9)   ;;  %v9420_v15 = vld [vmem:[%s12346_s2 + $0xd8] sm:$0xff] (!%p466_p9)   ;;  %vm7537_vm4 = vcmask (!%p466_p9), 73728   ;;  %s12302_s26 = scalar_lea.hbm (!%p466_p9), %s12360_s16, %s7950_s24 }
  0x1a   : > { %532 = vst [vmem:[#allocation2 + $0x60] sm:$0xff] (!%p466_p9), %v9775_v2  ;;  %533 = vst [vmem:[#allocation2 + $0x68] sm:$0xff] (!%p466_p9), %v9775_v2  ;;  %7958 = vmatprep.subr.bf16.mxu0 (!%p466_p9), %v9414_v9  ;;  %v9421_v16 = vld [vmem:[%s12346_s2 + $0x98] sm:$0xff] (!%p466_p9)   ;;  %v9422_v17 = vld [vmem:[%s12346_s2 + $0x60] sm:$0xff] (!%p466_p9)   ;;  %s9779_s30 = smov (!%p466_p9), [#allocation5]  }
  0x1b   : > { %534 = vst [vmem:[#allocation2 + $0x70] sm:$0x3] %v9775_v2  ;;  %535 = vst [vmem:[#allocation2 + $0x78] sm:$0xff] %v9775_v2  ;;  %8069 = vmatpush3.bf16.msra.mxu1 %v9413_v8  ;;  %v9423_v18 = vld [vmem:[%s12346_s2 + $0x20] sm:$0xff]   ;;  %v9426_v21 = vld [vmem:[%s12346_s2 + $0x68] sm:$0xff]   ;;  %s515_s18 = scalar_select %p514_p10, %s9886_s25, 1 }
  0x1c   : > { %536 = vst [vmem:[#allocation2 + $0x80] sm:$0xff] %v9775_v2  ;;  %537 = vst [vmem:[#allocation2 + $0x88] sm:$0x3] %v9775_v2  ;;  %8070 = vmatprep.subr.bf16.mxu1 %v9416_v11  ;;  %v9424_v19 = vld [vmem:[%s12346_s2 + $0xe0] sm:$0xff]   ;;  %v9427_v22 = vld [vmem:[%s12346_s2 + $0x28] sm:$0xff]   ;;  %s9715_s27 = sshll.u32 %s9779_s30, 4  ;;  %s9716_s27 = int_to_ptr.vmem [resolvable:$false] %s9715_s27 }
  0x1d   : > { %538 = vst [vmem:[#allocation2 + $0x90] sm:$0xff] %v9775_v2  ;;  %539 = vst [vmem:[#allocation2 + $0x98] sm:$0xff] %v9775_v2  ;;  %7959 = vmatpush3.bf16.msra.mxu0 %v9415_v10  ;;  %v9425_v20 = vld [vmem:[%s12346_s2 + $0xa0] sm:$0xff]   ;;  %v9428_v23 = vld [vmem:[%s12346_s2 + $0xe8] sm:$0xff]   ;;  %s7953_s29 = sshll.u32 %s515_s18, 8  ;;  %s9717_s21 = scalar_lea.vmem %s9716_s27, 32 }
  0x1e   : > { %540 = vst [vmem:[#allocation2 + $0xa0] sm:$0x3] %v9775_v2  ;;  %541 = vst [vmem:[#allocation2 + $0xa8] sm:$0xff] %v9775_v2  ;;  %7960 = vmatprep.subr.bf16.mxu0 %v9418_v13  ;;  %v9429_v24 = vld [vmem:[%s12346_s2 + $0xa8] sm:$0xff]   ;;  %v9430_v25 = vld [vmem:[%s12346_s2 + $0x70] sm:$0xff]   ;;  %s10088_s17 = scalar_lea.vmem %s12376_s28, %s7953_s29  ;;  %s512_s28 = sand.u32 1, %s9765_s22  }
  0x1f   : > { %542 = vst [vmem:[#allocation2 + $0xb0] sm:$0xff] %v9775_v2  ;;  %543 = vst [vmem:[#allocation2 + $0xb8] sm:$0x3] %v9775_v2  ;;  %8071 = vmatpush3.bf16.msra.mxu1 %v9417_v12  ;;  %v9431_v26 = vld [vmem:[%s12346_s2 + $0x30] sm:$0xff]   ;;  %v9434_v29 = vld [vmem:[%s12346_s2 + $0x78] sm:$0xff]   ;;  %s7540_s25 = scalar_lea.sflag [#allocation6], %s512_s28 }
  0x20   : > { %544 = vst [vmem:[#allocation2 + $0xc0] sm:$0xff] %v9775_v2  ;;  %545 = vst [vmem:[#allocation2 + $0xc8] sm:$0xff] %v9775_v2  ;;  %8072 = vmatprep.subr.bf16.mxu1 %v9420_v15  ;;  %v9432_v27 = vld [vmem:[%s12346_s2 + $0xf0] sm:$0xff]   ;;  %v9435_v30 = vld [vmem:[%s12346_s2 + $0x38] sm:$0xff]  }
  0x21   : > { %546 = vst [vmem:[#allocation2 + $0xd0] sm:$0x3] %v9775_v2  ;;  %547 = vst [vmem:[#allocation2 + $0xd8] sm:$0xff] %v9775_v2  ;;  %7961 = vmatpush3.bf16.msra.mxu0 %v9419_v14  ;;  %v9433_v28 = vld [vmem:[%s12346_s2 + $0xb0] sm:$0xff]   ;;  %v9436_v31 = vld [vmem:[%s12346_s2 + $0xf8] sm:$0xff]  }
  0x22   : > { %548 = vst [vmem:[#allocation2 + $0xe0] sm:$0xff] %v9775_v2  ;;  %549 = vst [vmem:[#allocation2 + $0xe8] sm:$0x3] %v9775_v2  ;;  %7962 = vmatprep.subr.bf16.mxu0 %v9422_v17  ;;  %v724_v32 = vld [vmem:[#allocation2 + $0x1] sm:$0xff]  ;;  %v725_v33 = vld [vmem:[#allocation2 + $0x9] sm:$0xff] }
  0x23   : > { %550 = vst [vmem:[#allocation2 + $0xf0] sm:$0xff] %v9775_v2  ;;  %551 = vst [vmem:[#allocation2 + $0xf8] sm:$0xff] %v9775_v2  ;;  %8073 = vmatpush3.bf16.msra.mxu1 %v9421_v16  ;;  %v756_v34 = vpack.c.bf16 %v725_v33, %v724_v32  ;;  %v9437_v35 = vld [vmem:[%s12346_s2 + $0xb8] sm:$0xff]   ;;  %v594_v36 = vld [vmem:[%s10088_s17] sm:$0xff] }
  0x24   : > { %552 = vst [vmem:[#allocation2 + $0x100] sm:$0x3] %v9775_v2  ;;  %553 = vst [vmem:[#allocation2 + $0x108] sm:$0xff] %v9775_v2  ;;  %8074 = vmatprep.subr.bf16.mxu1 %v9424_v19  ;;  %v595_v37 = vld [vmem:[%s10088_s17 + $0x8] sm:$0xff]  ;;  %v596_v38 = vld [vmem:[%s10088_s17 + $0x10] sm:$0xff] }
  0x25   : > { %554 = vst [vmem:[#allocation2 + $0x110] sm:$0xff] %v9775_v2  ;;  %555 = vst [vmem:[#allocation2 + $0x118] sm:$0x3] %v9775_v2  ;;  %7963 = vmatpush3.bf16.msra.mxu0 %v9423_v18  ;;  %1996 = vmatprep.mubr.bf16.mxu0 %v756_v34  ;;  %v597_v39 = vld [vmem:[%s10088_s17 + $0x18] sm:$0xff]  ;;  %v598_v40 = vld [vmem:[%s10088_s17 + $0x20] sm:$0xff] }
  0x26   : > { %556 = vst [vmem:[#allocation2 + $0x120] sm:$0xff] %v9775_v2  ;;  %557 = vst [vmem:[#allocation2 + $0x128] sm:$0xff] %v9775_v2  ;;  %7964 = vmatprep.subr.bf16.mxu0 %v9426_v21  ;;  %v599_v42 = vld [vmem:[%s10088_s17 + $0x28] sm:$0xff]  ;;  %v600_v43 = vld [vmem:[%s10088_s17 + $0x30] sm:$0xff] }
  0x27   : > { %558 = vst [vmem:[#allocation2 + $0x130] sm:$0x3] %v9775_v2  ;;  %559 = vst [vmem:[#allocation2 + $0x138] sm:$0xff] %v9775_v2  ;;  %8075 = vmatpush3.bf16.msra.mxu1 %v9425_v20  ;;  %v601_v44 = vld [vmem:[%s10088_s17 + $0x38] sm:$0xff]  ;;  %v788_v45 = vld [vmem:[#allocation2 + $0x2] sm:$0xff] }
  0x28   : > { %560 = vst [vmem:[#allocation2 + $0x140] sm:$0xff] %v9775_v2  ;;  %561 = vst [vmem:[#allocation2 + $0x148] sm:$0x3] %v9775_v2  ;;  %8076 = vmatprep.subr.bf16.mxu1 %v9428_v23  ;;  %v789_v46 = vld [vmem:[#allocation2 + $0xa] sm:$0xff]  ;;  %v602_v47 = vld [vmem:[%s10088_s17 + $0x40] sm:$0xff] }
  0x29   : > { %562 = vst [vmem:[#allocation2 + $0x150] sm:$0xff] %v9775_v2  ;;  %563 = vst [vmem:[#allocation2 + $0x158] sm:$0xff] %v9775_v2  ;;  %7965 = vmatpush3.bf16.msra.mxu0 %v9427_v22  ;;  %v603_v48 = vld [vmem:[%s10088_s17 + $0x48] sm:$0xff]  ;;  %v604_v49 = vld [vmem:[%s10088_s17 + $0x50] sm:$0xff]  ;;  %v820_v63 = vpack.c.bf16 %v789_v46, %v788_v45 }
  0x2a   : > { %564 = vst [vmem:[#allocation2 + $0x160] sm:$0x3] %v9775_v2  ;;  %565 = vst [vmem:[#allocation2 + $0x168] sm:$0xff] %v9775_v2  ;;  %7966 = vmatprep.subr.bf16.mxu0 %v9430_v25  ;;  %v605_v50 = vld [vmem:[%s10088_s17 + $0x58] sm:$0xff]  ;;  %v606_v51 = vld [vmem:[%s10088_s17 + $0x60] sm:$0xff] }
  0x2b   : > { %566 = vst [vmem:[#allocation2 + $0x170] sm:$0xff] %v9775_v2  ;;  %567 = vst [vmem:[#allocation2 + $0x178] sm:$0x3] %v9775_v2  ;;  %8077 = vmatpush3.bf16.msra.mxu1 %v9429_v24  ;;  %v607_v52 = vld [vmem:[%s10088_s17 + $0x68] sm:$0xff]  ;;  %v608_v53 = vld [vmem:[%s10088_s17 + $0x70] sm:$0xff] }
  0x2c   : > { %568 = vst [vmem:[#allocation2 + $0x180] sm:$0xff] %v9775_v2  ;;  %569 = vst [vmem:[#allocation2 + $0x188] sm:$0xff] %v9775_v2  ;;  %8078 = vmatprep.subr.bf16.mxu1 %v9432_v27  ;;  %v609_v54 = vld [vmem:[%s10088_s17 + $0x78] sm:$0xff]  ;;  %v610_v55 = vld [vmem:[%s10088_s17 + $0x80] sm:$0xff] }
  0x2d   : > { %570 = vst [vmem:[#allocation2 + $0x190] sm:$0x3] %v9775_v2  ;;  %571 = vst [vmem:[#allocation2 + $0x198] sm:$0xff] %v9775_v2  ;;  %7967 = vmatpush3.bf16.msra.mxu0 %v9431_v26  ;;  %v611_v56 = vld [vmem:[%s10088_s17 + $0x88] sm:$0xff]  ;;  %v612_v57 = vld [vmem:[%s10088_s17 + $0x90] sm:$0xff] }
  0x2e   : > { %572 = vst [vmem:[#allocation2 + $0x1a0] sm:$0xff] %v9775_v2  ;;  %573 = vst [vmem:[#allocation2 + $0x1a8] sm:$0x3] %v9775_v2  ;;  %7968 = vmatprep.subr.bf16.mxu0 %v9434_v29  ;;  %v613_v58 = vld [vmem:[%s10088_s17 + $0x98] sm:$0xff]  ;;  %v614_v61 = vld [vmem:[%s10088_s17 + $0xa0] sm:$0xff] }
  0x2f   : > { %574 = vst [vmem:[#allocation3] sm:$0xff] %v9775_v2  ;;  %575 = vst [vmem:[#allocation3 + $0x8] sm:$0x3] %v9775_v2  ;;  %8079 = vmatpush3.bf16.msra.mxu1 %v9433_v28  ;;  %v615_v27 = vld [vmem:[%s10088_s17 + $0xa8] sm:$0xff]  ;;  %v616_v34 = vld [vmem:[%s10088_s17 + $0xb0] sm:$0xff] }
  0x30   : > { %576 = vst [vmem:[#allocation3 + $0x10] sm:$0xff] %v9775_v2  ;;  %577 = vst [vmem:[#allocation3 + $0x18] sm:$0x3] %v9775_v2  ;;  %8080 = vmatprep.subr.bf16.mxu1 %v9436_v31  ;;  %v9442_v45 = vld [vmem:[%s12346_s2 + $0x148] sm:$0xff]  }
  0x31   : > { %578 = vst [vmem:[#allocation3 + $0x20] sm:$0xff] %v9775_v2  ;;  %579 = vst [vmem:[#allocation3 + $0x28] sm:$0x3] %v9775_v2  ;;  %7969 = vmatpush3.bf16.msra.mxu0 %v9435_v30 }
  0x32   : > { %580 = vst [vmem:[#allocation3 + $0x30] sm:$0xff] %v9775_v2  ;;  %581 = vst [vmem:[#allocation3 + $0x38] sm:$0x3] %v9775_v2 }
  0x33   : > { %582 = vst [vmem:[#allocation3 + $0x40] sm:$0xff] %v9775_v2  ;;  %583 = vst [vmem:[#allocation3 + $0x48] sm:$0x3] %v9775_v2  ;;  %8081 = vmatpush3.bf16.msra.mxu1 %v9437_v35  ;;  %v617_v35 = vld [vmem:[%s10088_s17 + $0xb8] sm:$0xff] }
  0x34   : > { %584 = vst [vmem:[#allocation3 + $0x50] sm:$0xff] %v9775_v2  ;;  %585 = vst [vmem:[#allocation3 + $0x58] sm:$0x3] %v9775_v2  ;;  %1997 = vmatmul.mubr.bf16.vlgmr.msra.gmra.mrb[0].mxu0 %v9776_v41  ;;  %v9440_v41 = vld [vmem:[%s12346_s2 + $0x1c0] sm:$0xff]  }
  0x35   : > { %586 = vst [vmem:[#allocation3 + $0x60] sm:$0xff] %v9775_v2  ;;  %587 = vst [vmem:[#allocation3 + $0x68] sm:$0x3] %v9775_v2  ;;  %8290 = vmatprep.subr.bf16.mxu1 %v9440_v41 }
  0x36   : > { %588 = vst [vmem:[#allocation3 + $0x70] sm:$0xff] %v9775_v2  ;;  %589 = vst [vmem:[#allocation3 + $0x78] sm:$0x3] %v9775_v2 }
  0x37   : > { %590 = vst [vmem:[#allocation3 + $0x80] sm:$0xff] %v9775_v2  ;;  %591 = vst [vmem:[#allocation3 + $0x88] sm:$0x3] %v9775_v2 }
  0x38   : > { %592 = vst [vmem:[#allocation3 + $0x90] sm:$0xff] %v9775_v2  ;;  %593 = vst [vmem:[#allocation3 + $0x98] sm:$0x3] %v9775_v2 }
  0x39   : > { %628 = vst.msk [vmem:[#allocation2 + $0x19] sm:$0xff] %vm627_vm0, %v594_v36  ;;  %629 = vst.msk [vmem:[#allocation2 + $0x21] sm:$0xff] %vm627_vm0, %v595_v37  ;;  %v9438_v36 = vld [vmem:[%s12346_s2 + $0x140] sm:$0xff]  }
  0x3a   : > { %630 = vst.msk [vmem:[#allocation2 + $0x31] sm:$0xff] %vm627_vm0, %v596_v38  ;;  %631 = vst.msk [vmem:[#allocation2 + $0x39] sm:$0xff] %vm627_vm0, %v597_v39  ;;  %v618_v37 = vld [vmem:[%s10088_s17 + $0xc0] sm:$0xff]  ;;  %v619_v38 = vld [vmem:[%s10088_s17 + $0xc8] sm:$0xff]  ;;  %8178 = vmatprep.subr.bf16.mxu0 %v9438_v36 }
  0x3b   : > { %632 = vst.msk [vmem:[#allocation2 + $0x49] sm:$0xff] %vm627_vm0, %v598_v40  ;;  %633 = vst.msk [vmem:[#allocation2 + $0x51] sm:$0xff] %vm627_vm0, %v599_v42  ;;  %v9439_v39 = vld [vmem:[%s12346_s2 + $0x100] sm:$0xff]  }
  0x3c   : > { %634 = vst.msk [vmem:[#allocation2 + $0x61] sm:$0xff] %vm627_vm0, %v600_v43  ;;  %635 = vst.msk [vmem:[#allocation2 + $0x69] sm:$0xff] %vm627_vm0, %v601_v44  ;;  %8179 = vmatpush3.bf16.msra.mxu0 %v9439_v39  ;;  %v9441_v44 = vld [vmem:[%s12346_s2 + $0x180] sm:$0xff]   ;;  %v9458_v39 = vld [vmem:[%s12346_s2 + $0x168] sm:$0xff]  }
  0x3d   : > { %636 = vst.msk [vmem:[#allocation2 + $0x79] sm:$0xff] %vm627_vm0, %v602_v47  ;;  %637 = vst.msk [vmem:[#allocation2 + $0x81] sm:$0xff] %vm627_vm0, %v603_v48  ;;  %8180 = vmatprep.subr.bf16.mxu0 %v9442_v45  ;;  %v9457_v36 = vld [vmem:[%s12346_s2 + $0x1a0] sm:$0xff]   ;;  %v9460_v45 = vld [vmem:[%s12346_s2 + $0x1e8] sm:$0xff]  }
  0x3e   : > { %638 = vst.msk [vmem:[#allocation2 + $0x91] sm:$0xff] %vm627_vm0, %v604_v49  ;;  %639 = vst.msk [vmem:[#allocation2 + $0x99] sm:$0xff] %vm627_vm0, %v605_v50 }
  0x3f   : > { %640 = vst.msk [vmem:[#allocation2 + $0xa9] sm:$0xff] %vm627_vm0, %v606_v51  ;;  %641 = vst.msk [vmem:[#allocation2 + $0xb1] sm:$0xff] %vm627_vm0, %v607_v52  ;;  %v9443_v52 = vld [vmem:[%s12346_s2 + $0x108] sm:$0xff]  }
  0x40   : > { %642 = vst.msk [vmem:[#allocation2 + $0xc1] sm:$0xff] %vm627_vm0, %v608_v53  ;;  %643 = vst.msk [vmem:[#allocation2 + $0xc9] sm:$0xff] %vm627_vm0, %v609_v54  ;;  %v852_v59 = vld [vmem:[#allocation2 + $0x18] sm:$0xff]  ;;  %v853_v62 = vld [vmem:[#allocation2 + $0x20] sm:$0xff]  ;;  %8181 = vmatpush3.bf16.msra.mxu0 %v9443_v52 }
  0x41   : > { %644 = vst.msk [vmem:[#allocation2 + $0xd9] sm:$0xff] %vm627_vm0, %v610_v55  ;;  %v726_v60 = vld [vmem:[#allocation2 + $0x19] sm:$0xff]  ;;  %645 = vst.msk [vmem:[#allocation2 + $0xe1] sm:$0xff] %vm627_vm0, %v611_v56  ;;  %v727_v0 = vld [vmem:[#allocation2 + $0x21] sm:$0xff]  ;;  %v884_v1 = vpack.c.bf16 %v853_v62, %v852_v59 }
  0x42   : > { %646 = vst.msk [vmem:[#allocation2 + $0xf1] sm:$0xff] %vm627_vm0, %v612_v57  ;;  %647 = vst.msk [vmem:[#allocation2 + $0xf9] sm:$0xff] %vm627_vm0, %v613_v58  ;;  %v10138_v2 = vpack.c.bf16 %v727_v0, %v726_v60  ;;  %v854_v3 = vld [vmem:[#allocation2 + $0x30] sm:$0xff]  ;;  %v855_v4 = vld [vmem:[#allocation2 + $0x38] sm:$0xff] }
  0x43   : > { %648 = vst.msk [vmem:[#allocation2 + $0x109] sm:$0xff] %vm627_vm0, %v614_v61  ;;  %v10140_v5 = vpack.c.bf16 %v855_v4, %v854_v3  ;;  %v728_v6 = vld [vmem:[#allocation2 + $0x31] sm:$0xff]  ;;  %v729_v7 = vld [vmem:[#allocation2 + $0x39] sm:$0xff]  ;;  %2157 = vmatprep.mubr.bf16.mxu1 %v884_v1  ;;  %v791_v10 = vld [vmem:[#allocation2 + $0x22] sm:$0xff] }
  0x44   : > { %2004 = vmatprep.mubr.bf16.mxu0 %v10138_v2  ;;  %v10143_v8 = vpack.c.bf16 %v729_v7, %v728_v6  ;;  %2158 = vmatmul.mubr.bf16.vlgmr.msra.gmra.mrb[0].mxu1 %v820_v63  ;;  %v790_v9 = vld [vmem:[#allocation2 + $0x1a] sm:$0xff]  ;;  %v856_v11 = vld [vmem:[#allocation2 + $0x48] sm:$0xff]  ;;  %v857_v12 = vld [vmem:[#allocation2 + $0x50] sm:$0xff]  ;;  %649 = vst.msk [vmem:[#allocation2 + $0x111] sm:$0xff] %vm627_vm0, %v615_v27 }
  0x45   : > { %2005 = vmatmul.mubr.bf16.gmra.mrb[4].mxu0 %v884_v1  ;;  %2165 = vmatprep.mubr.bf16.mxu1 %v10140_v5  ;;  %v730_v13 = vld [vmem:[#allocation2 + $0x49] sm:$0xff]  ;;  %v731_v14 = vld [vmem:[#allocation2 + $0x51] sm:$0xff]  ;;  %v10147_v15 = vpack.c.bf16 %v791_v10, %v790_v9  ;;  %v10149_v16 = vpack.c.bf16 %v857_v12, %v856_v11  ;;  %v793_v19 = vld [vmem:[#allocation2 + $0x3a] sm:$0xff]  ;;  %650 = vst.msk [vmem:[#allocation2 + $0x121] sm:$0xff] %vm627_vm0, %v616_v34 }
  0x46   : > { %2012 = vmatprep.mubr.bf16.mxu0 %v10143_v8  ;;  %v10151_v17 = vpack.c.bf16 %v731_v14, %v730_v13  ;;  %v792_v18 = vld [vmem:[#allocation2 + $0x32] sm:$0xff]  ;;  %v858_v20 = vld [vmem:[#allocation2 + $0x60] sm:$0xff]  ;;  %v859_v21 = vld [vmem:[#allocation2 + $0x68] sm:$0xff]  ;;  %651 = vst.msk [vmem:[#allocation2 + $0x129] sm:$0xff] %vm627_vm0, %v617_v35  ;;  %8291 = vmatpush3.bf16.msra.mxu1 %v9441_v44 }
  0x47   : > { %v732_v22 = vld [vmem:[#allocation2 + $0x61] sm:$0xff]  ;;  %v733_v23 = vld [vmem:[#allocation2 + $0x69] sm:$0xff]  ;;  %v10157_v24 = vpack.c.bf16 %v793_v19, %v792_v18  ;;  %v10159_v25 = vpack.c.bf16 %v859_v21, %v858_v20  ;;  %v795_v29 = vld [vmem:[#allocation2 + $0x52] sm:$0xff]  ;;  %652 = vst.msk [vmem:[#allocation2 + $0x139] sm:$0xff] %vm627_vm0, %v618_v37 }
  0x48   : > { %v10161_v26 = vpack.c.bf16 %v733_v23, %v732_v22  ;;  %v794_v28 = vld [vmem:[#allocation2 + $0x4a] sm:$0xff]  ;;  %v860_v30 = vld [vmem:[#allocation2 + $0x78] sm:$0xff]  ;;  %v861_v31 = vld [vmem:[#allocation2 + $0x80] sm:$0xff]  ;;  %653 = vst.msk [vmem:[#allocation2 + $0x141] sm:$0xff] %vm627_vm0, %v619_v38 }
  0x49   : > { %v734_v32 = vld [vmem:[#allocation2 + $0x79] sm:$0xff]  ;;  %v735_v33 = vld [vmem:[#allocation2 + $0x81] sm:$0xff]  ;;  %v10183_v40 = vpack.c.bf16 %v795_v29, %v794_v28  ;;  %v10188_v42 = vpack.c.bf16 %v861_v31, %v860_v30  ;;  %v797_v47 = vld [vmem:[#allocation2 + $0x6a] sm:$0xff] }
  0x4a   : > { %v10190_v43 = vpack.c.bf16 %v735_v33, %v734_v32  ;;  %v796_v46 = vld [vmem:[#allocation2 + $0x62] sm:$0xff]  ;;  %v862_v48 = vld [vmem:[#allocation2 + $0x90] sm:$0xff]  ;;  %v863_v49 = vld [vmem:[#allocation2 + $0x98] sm:$0xff] }
  0x4b   : > { %v736_v50 = vld [vmem:[#allocation2 + $0x91] sm:$0xff]  ;;  %v737_v51 = vld [vmem:[#allocation2 + $0x99] sm:$0xff]  ;;  %v10205_v53 = vpack.c.bf16 %v797_v47, %v796_v46  ;;  %v9444_v54 = vld [vmem:[%s12346_s2 + $0x1c8] sm:$0xff]   ;;  %v10210_v55 = vpack.c.bf16 %v863_v49, %v862_v48 }
  0x4c   : > { %2166 = vmatmul.mubr.bf16.gmra.mrb[4].mxu1 %v10147_v15  ;;  %v10212_v56 = vpack.c.bf16 %v737_v51, %v736_v50  ;;  %8292 = vmatprep.subr.bf16.mxu1 %v9444_v54  ;;  %v9445_v57 = vld [vmem:[%s12346_s2 + $0x188] sm:$0xff]   ;;  %v798_v58 = vld [vmem:[#allocation2 + $0x7a] sm:$0xff]  ;;  %v9446_v60 = vld [vmem:[%s12346_s2 + $0x150] sm:$0xff]  }
  0x4d   : > { %2013 = vmatmul.mubr.bf16.gmra.mrb[8].mxu0 %v10140_v5  ;;  %2173 = vmatprep.mubr.bf16.mxu1 %v10149_v16  ;;  %v799_v59 = vld [vmem:[#allocation2 + $0x82] sm:$0xff]  ;;  %v620_v61 = vld [vmem:[%s10088_s17 + $0xd0] sm:$0xff]  ;;  %v621_v62 = vld [vmem:[%s10088_s17 + $0xd8] sm:$0xff] }
  0x4e   : > { %2020 = vmatprep.mubr.bf16.mxu0 %v10151_v17  ;;  %v864_v63 = vld [vmem:[#allocation2 + $0xa8] sm:$0xff]  ;;  %v865_v0 = vld [vmem:[#allocation2 + $0xb0] sm:$0xff]  ;;  %654 = vst.msk [vmem:[#allocation2 + $0x151] sm:$0xff] %vm627_vm0, %v620_v61  ;;  %655 = vst.msk [vmem:[#allocation2 + $0x159] sm:$0xff] %vm627_vm0, %v621_v62  ;;  %8293 = vmatpush3.bf16.msra.mxu1 %v9445_v57  ;;  %v10237_v9 = vpack.c.bf16 %v799_v59, %v798_v58 }
  0x4f   : > { %v9447_v1 = vld [vmem:[%s12346_s2 + $0x110] sm:$0xff]   ;;  %8182 = vmatprep.subr.bf16.mxu0 %v9446_v60  ;;  %v9450_v10 = vld [vmem:[%s12346_s2 + $0x158] sm:$0xff]   ;;  %v10242_v11 = vpack.c.bf16 %v865_v0, %v864_v63  ;;  %v866_v20 = vld [vmem:[#allocation2 + $0xc0] sm:$0xff] }
  0x50   : > { %v738_v3 = vld [vmem:[#allocation2 + $0xa9] sm:$0xff]  ;;  %v739_v4 = vld [vmem:[#allocation2 + $0xb1] sm:$0xff]  ;;  %8183 = vmatpush3.bf16.msra.mxu0 %v9447_v1  ;;  %v801_v19 = vld [vmem:[#allocation2 + $0x9a] sm:$0xff] }
  0x51   : > { %v9448_v6 = vld [vmem:[%s12346_s2 + $0x1d0] sm:$0xff]   ;;  %v10244_v12 = vpack.c.bf16 %v739_v4, %v738_v3  ;;  %v9451_v13 = vld [vmem:[%s12346_s2 + $0x118] sm:$0xff]   ;;  %8184 = vmatprep.subr.bf16.mxu0 %v9450_v10  ;;  %v867_v21 = vld [vmem:[#allocation2 + $0xc8] sm:$0xff] }
  0x52   : > { %v9449_v7 = vld [vmem:[%s12346_s2 + $0x190] sm:$0xff]   ;;  %8294 = vmatprep.subr.bf16.mxu1 %v9448_v6  ;;  %v9452_v14 = vld [vmem:[%s12346_s2 + $0x1d8] sm:$0xff]   ;;  %v740_v22 = vld [vmem:[#allocation2 + $0xc1] sm:$0xff]  ;;  %v10271_v33 = vpack.c.bf16 %v867_v21, %v866_v20 }
  0x53   : > { %8295 = vmatpush3.bf16.msra.mxu1 %v9449_v7  ;;  %v800_v18 = vld [vmem:[#allocation2 + $0x92] sm:$0xff]  ;;  %v741_v23 = vld [vmem:[#allocation2 + $0xc9] sm:$0xff]  ;;  %v9454_v28 = vld [vmem:[%s12346_s2 + $0x160] sm:$0xff]  }
  0x54   : > { %2174 = vmatmul.mubr.bf16.gmra.mrb[8].mxu1 %v10157_v24  ;;  %8185 = vmatpush3.bf16.msra.mxu0 %v9451_v13  ;;  %v9453_v27 = vld [vmem:[%s12346_s2 + $0x198] sm:$0xff]   ;;  %v622_v29 = vld [vmem:[%s10088_s17 + $0xe0] sm:$0xff]  ;;  %v623_v30 = vld [vmem:[%s10088_s17 + $0xe8] sm:$0xff]  ;;  %v10269_v32 = vpack.c.bf16 %v801_v19, %v800_v18  ;;  %v10273_v34 = vpack.c.bf16 %v741_v23, %v740_v22 }
  0x55   : > { %2021 = vmatmul.mubr.bf16.gmra.mrb[12].mxu0 %v10149_v16  ;;  %2181 = vmatprep.mubr.bf16.mxu1 %v10159_v25  ;;  %656 = vst.msk [vmem:[#allocation2 + $0x169] sm:$0xff] %vm627_vm0, %v622_v29  ;;  %657 = vst.msk [vmem:[#allocation2 + $0x171] sm:$0xff] %vm627_vm0, %v623_v30  ;;  %v9455_v31 = vld [vmem:[%s12346_s2 + $0x120] sm:$0xff]   ;;  %v802_v37 = vld [vmem:[#allocation2 + $0xaa] sm:$0xff] }
  0x56   : > { %2028 = vmatprep.mubr.bf16.mxu0 %v10161_v26  ;;  %8296 = vmatprep.subr.bf16.mxu1 %v9452_v14  ;;  %v9456_v35 = vld [vmem:[%s12346_s2 + $0x1e0] sm:$0xff]   ;;  %v803_v38 = vld [vmem:[#allocation2 + $0xb2] sm:$0xff]  ;;  %v9459_v44 = vld [vmem:[%s12346_s2 + $0x128] sm:$0xff]  }
  0x57   : > { %8297 = vmatpush3.bf16.msra.mxu1 %v9453_v27  ;;  %8186 = vmatprep.subr.bf16.mxu0 %v9454_v28  ;;  %v868_v41 = vld [vmem:[#allocation2 + $0xd8] sm:$0xff]  ;;  %v869_v46 = vld [vmem:[#allocation2 + $0xe0] sm:$0xff]  ;;  %v9461_v49 = vld [vmem:[%s12346_s2 + $0x1a8] sm:$0xff]   ;;  %v10297_v50 = vpack.c.bf16 %v803_v38, %v802_v37 }
  0x58   : > { %8187 = vmatpush3.bf16.msra.mxu0 %v9455_v31  ;;  %8298 = vmatprep.subr.bf16.mxu1 %v9456_v35  ;;  %v742_v47 = vld [vmem:[#allocation2 + $0xd9] sm:$0xff]  ;;  %v743_v48 = vld [vmem:[#allocation2 + $0xe1] sm:$0xff]  ;;  %v9462_v51 = vld [vmem:[%s12346_s2 + $0x170] sm:$0xff]   ;;  %v10303_v54 = vpack.c.bf16 %v869_v46, %v868_v41 }
  0x59   : > { %8188 = vmatprep.subr.bf16.mxu0 %v9458_v39  ;;  %v624_v52 = vld [vmem:[%s10088_s17 + $0xf0] sm:$0xff]  ;;  %v10305_v57 = vpack.c.bf16 %v743_v48, %v742_v47  ;;  %v625_v58 = vld [vmem:[%s10088_s17 + $0xf8] sm:$0xff]  ;;  %v804_v60 = vld [vmem:[#allocation2 + $0xc2] sm:$0xff]  ;;  %s513_s17 = scalar_lea.vmem [#allocation5], %s512_s28 }
  0x5a   : > { %658 = vst.msk [vmem:[#allocation2 + $0x181] sm:$0xff] %vm627_vm0, %v624_v52  ;;  %659 = vst.msk [vmem:[#allocation2 + $0x189] sm:$0xff] %vm627_vm0, %v625_v58  ;;  %v9463_v59 = vld [vmem:[%s12346_s2 + $0x130] sm:$0xff]   ;;  %v871_v0 = vld [vmem:[#allocation2 + $0xf8] sm:$0xff]  ;;  %s7552_s29 = sshll.u32 %s513_s17, 4  ;;  %s12304_s29 = int_to_ptr.vmem [resolvable:$true] %s7552_s29 }
  0x5b   : > { %8299 = vmatpush3.bf16.msra.mxu1 %v9457_v36  ;;  %v805_v61 = vld [vmem:[#allocation2 + $0xca] sm:$0xff]  ;;  %v745_v3 = vld [vmem:[#allocation2 + $0xf9] sm:$0xff]  ;;  %v807_v21 = vld [vmem:[#allocation2 + $0xe2] sm:$0xff]  ;;  %s9711_s23 = scalar_lea.vmem %s12304_s29, 16  ;;  %p9718_p0 = scmp.lt.s32.totalorder %s12304_s29, %s9716_s27 }
  0x5c   : > { %2182 = vmatmul.mubr.bf16.gmra.mrb[12].mxu1 %v10183_v40  ;;  %8189 = vmatpush3.bf16.msra.mxu0 %v9459_v44  ;;  %v9464_v62 = vld [vmem:[%s12346_s2 + $0x1f0] sm:$0xff]   ;;  %v9466_v6 = vld [vmem:[%s12346_s2 + $0x178] sm:$0xff]   ;;  %v10332_v13 = vpack.c.bf16 %v805_v61, %v804_v60  ;;  %v872_v22 = vld [vmem:[#allocation2 + $0x108] sm:$0xff]  ;;  %p9712_p11 = scmp.ne.s32.totalorder %s12304_s29, %s9711_s23  ;;  %p9719_p1 = scmp.lt.s32.totalorder %s9717_s21, %s9711_s23 }
  0x5d   : > { %2029 = vmatmul.mubr.bf16.gmra.mrb[16].mxu0 %v10159_v25  ;;  %2189 = vmatprep.mubr.bf16.mxu1 %v10188_v42  ;;  %v870_v63 = vld [vmem:[#allocation2 + $0xf0] sm:$0xff]  ;;  %v9467_v7 = vld [vmem:[%s12346_s2 + $0x138] sm:$0xff]   ;;  %v874_v37 = vld [vmem:[#allocation2 + $0x120] sm:$0xff] }
  0x5e   : > { %2036 = vmatprep.mubr.bf16.mxu0 %v10190_v43  ;;  %8300 = vmatprep.subr.bf16.mxu1 %v9460_v45  ;;  %v744_v1 = vld [vmem:[#allocation2 + $0xf1] sm:$0xff]  ;;  %v10334_v14 = vpack.c.bf16 %v871_v0, %v870_v63  ;;  %v806_v20 = vld [vmem:[#allocation2 + $0xda] sm:$0xff]  ;;  %v746_v27 = vld [vmem:[#allocation2 + $0x109] sm:$0xff]  ;;  %p9713_p12 = pnand %p9712_p11, %p9903_p5  ;;  %p9720_p2 = por %p9719_p1, %p9718_p0 }
  0x5f   : > { %8301 = vmatpush3.bf16.msra.mxu1 %v9461_v49  ;;  %8190 = vmatprep.subr.bf16.mxu0 %v9462_v51  ;;  %v9465_v4 = vld [vmem:[%s12346_s2 + $0x1b0] sm:$0xff]   ;;  %v9468_v10 = vld [vmem:[%s12346_s2 + $0x1f8] sm:$0xff]   ;;  %v10336_v18 = vpack.c.bf16 %v745_v3, %v744_v1  ;;  %v10345_v29 = vpack.c.bf16 %v807_v21, %v806_v20  ;;  %v875_v38 = vld [vmem:[#allocation2 + $0x128] sm:$0xff] }
  0x60   : > { %8191 = vmatpush3.bf16.msra.mxu0 %v9463_v59  ;;  %8302 = vmatprep.subr.bf16.mxu1 %v9464_v62  ;;  %v9469_v19 = vld [vmem:[%s12346_s2 + $0x1b8] sm:$0xff]   ;;  %v873_v23 = vld [vmem:[#allocation2 + $0x110] sm:$0xff]  ;;  %v748_v39 = vld [vmem:[#allocation2 + $0x121] sm:$0xff]  ;;  %v10357_v45 = vpack.c.bf16 %v875_v38, %v874_v37  ;;  %p9714_p13 = pneg %p9713_p12 }
  0x61   : > { %8192 = vmatprep.subr.bf16.mxu0 %v9466_v6  ;;  %v747_v28 = vld [vmem:[#allocation2 + $0x111] sm:$0xff]  ;;  %v10347_v30 = vpack.c.bf16 %v873_v23, %v872_v22  ;;  %v809_v36 = vld [vmem:[#allocation2 + $0xfa] sm:$0xff]  ;;  %v749_v41 = vld [vmem:[#allocation2 + $0x129] sm:$0xff] }
  0x62   : > { %v10349_v31 = vpack.c.bf16 %v747_v28, %v746_v27  ;;  %v808_v35 = vld [vmem:[#allocation2 + $0xf2] sm:$0xff]  ;;  %v10359_v46 = vpack.c.bf16 %v749_v41, %v748_v39  ;;  %v810_v47 = vld [vmem:[#allocation2 + $0x10a] sm:$0xff]  ;;  %v877_v51 = vld [vmem:[#allocation2 + $0x140] sm:$0xff]  ;;  %p9721_p3 = pnand %p9720_p2, %p9714_p13 }
  0x63   : > { %8303 = vmatpush3.bf16.msra.mxu1 %v9465_v4  ;;  %v10355_v44 = vpack.c.bf16 %v809_v36, %v808_v35  ;;  %v811_v48 = vld [vmem:[#allocation2 + $0x112] sm:$0xff]  ;;  %v751_v58 = vld [vmem:[#allocation2 + $0x141] sm:$0xff]  ;;  %v813_v63 = vld [vmem:[#allocation2 + $0x12a] sm:$0xff] }
  0x64   : > { %2190 = vmatmul.mubr.bf16.gmra.mrb[16].mxu1 %v10205_v53  ;;  %8304 = vmatprep.subr.bf16.mxu1 %v9468_v10  ;;  %v876_v49 = vld [vmem:[#allocation2 + $0x138] sm:$0xff]  ;;  %v10365_v59 = vpack.c.bf16 %v811_v48, %v810_v47  ;;  %v812_v62 = vld [vmem:[#allocation2 + $0x122] sm:$0xff]  ;;  %v878_v0 = vld [vmem:[#allocation2 + $0x150] sm:$0xff] }
  0x65   : > { %2037 = vmatmul.mubr.bf16.gmra.mrb[20].mxu0 %v10188_v42  ;;  %2197 = vmatprep.mubr.bf16.mxu1 %v10210_v55  ;;  %v750_v52 = vld [vmem:[#allocation2 + $0x139] sm:$0xff]  ;;  %v10367_v60 = vpack.c.bf16 %v877_v51, %v876_v49  ;;  %v752_v3 = vld [vmem:[#allocation2 + $0x151] sm:$0xff]  ;;  %v10375_v6 = vpack.c.bf16 %v813_v63, %v812_v62  ;;  %v815_v21 = vld [vmem:[#allocation2 + $0x142] sm:$0xff] }
  0x66   : > { %2044 = vmatprep.mubr.bf16.mxu0 %v10212_v56  ;;  %8193 = vmatpush3.bf16.msra.mxu0 %v9467_v7  ;;  %v10369_v61 = vpack.c.bf16 %v751_v58, %v750_v52  ;;  %v879_v1 = vld [vmem:[#allocation2 + $0x158] sm:$0xff]  ;;  %v9470_v7 = vld [vmem:[%s12346_s2 + $0x200] sm:$0xff]   ;;  %v880_v22 = vld [vmem:[#allocation2 + $0x168] sm:$0xff] }
  0x67   : > { %8305 = vmatpush3.bf16.msra.mxu1 %v9469_v19  ;;  %v753_v4 = vld [vmem:[#allocation2 + $0x159] sm:$0xff]  ;;  %v10380_v10 = vpack.c.bf16 %v879_v1, %v878_v0  ;;  %9212 = vmatprep.subr.bf16.mxu0 %v9470_v7  ;;  %v881_v23 = vld [vmem:[#allocation2 + $0x170] sm:$0xff]  ;;  %v883_v47 = vld [vmem:[#allocation2 + $0x188] sm:$0xff] }
  0x68   : > { %v10382_v19 = vpack.c.bf16 %v753_v4, %v752_v3  ;;  %v814_v20 = vld [vmem:[#allocation2 + $0x13a] sm:$0xff]  ;;  %v754_v27 = vld [vmem:[#allocation2 + $0x169] sm:$0xff]  ;;  %v755_v28 = vld [vmem:[#allocation2 + $0x171] sm:$0xff]  ;;  %v10390_v36 = vpack.c.bf16 %v881_v23, %v880_v22 }
  0x69   : > { %v10388_v35 = vpack.c.bf16 %v815_v21, %v814_v20  ;;  %v10392_v37 = vpack.c.bf16 %v755_v28, %v754_v27  ;;  %v816_v38 = vld [vmem:[#allocation2 + $0x152] sm:$0xff]  ;;  %v817_v39 = vld [vmem:[#allocation2 + $0x15a] sm:$0xff]  ;;  %v818_v51 = vld [vmem:[#allocation2 + $0x16a] sm:$0xff] }
  0x6a   : > { %v882_v41 = vld [vmem:[#allocation2 + $0x180] sm:$0xff]  ;;  %v10398_v48 = vpack.c.bf16 %v817_v39, %v816_v38  ;;  %v819_v52 = vld [vmem:[#allocation2 + $0x172] sm:$0xff]  ;;  %v9471_v62 = vld [vmem:[%s12346_s2 + $0x208] sm:$0xff]  }
  0x6b   : > { %v10400_v49 = vpack.c.bf16 %v883_v47, %v882_v41  ;;  %v10406_v58 = vpack.c.bf16 %v819_v52, %v818_v51  ;;  %v9473_v63 = vld [vmem:[%s12346_s2 + $0x218] sm:$0xff]   ;;  %v1137_v21 = vld [vmem:[#allocation2 + $0x181] sm:$0xff]  ;;  %v1138_v22 = vld [vmem:[#allocation2 + $0x189] sm:$0xff] }
  0x6c   : > { %2198 = vmatmul.mubr.bf16.gmra.mrb[20].mxu1 %v10237_v9  ;;  %v1010_v23 = vld [vmem:[#allocation2 + $0x182] sm:$0xff]  ;;  %v1011_v27 = vld [vmem:[#allocation2 + $0x18a] sm:$0xff] }
  0x6d   : > { %2045 = vmatmul.mubr.bf16.gmra.mrb[24].mxu0 %v10210_v55  ;;  %2205 = vmatprep.mubr.bf16.mxu1 %v10242_v11 }
  0x6e   : > { %2052 = vmatprep.mubr.bf16.mxu0 %v10244_v12 }
  0x74   : > { %2206 = vmatmul.mubr.bf16.gmra.mrb[24].mxu1 %v10269_v32 }
  0x75   : > { %2053 = vmatmul.mubr.bf16.gmra.mrb[28].mxu0 %v10242_v11  ;;  %2213 = vmatprep.mubr.bf16.mxu1 %v10271_v33 }
  0x76   : > { %2060 = vmatprep.mubr.bf16.mxu0 %v10273_v34 }
  0x7c   : > { %2214 = vmatmul.mubr.bf16.gmra.mrb[28].mxu1 %v10297_v50 }
  0x7d   : > { %2061 = vmatmul.mubr.bf16.gmra.mrb[32].mxu0 %v10271_v33  ;;  %2221 = vmatprep.mubr.bf16.mxu1 %v10303_v54 }
  0x7e   : > { %2068 = vmatprep.mubr.bf16.mxu0 %v10305_v57 }
  0x84   : > { %2222 = vmatmul.mubr.bf16.gmra.mrb[32].mxu1 %v10332_v13 }
  0x85   : > { %2069 = vmatmul.mubr.bf16.gmra.mrb[36].mxu0 %v10303_v54  ;;  %2229 = vmatprep.mubr.bf16.mxu1 %v10334_v14 }
  0x86   : > { %2076 = vmatprep.mubr.bf16.mxu0 %v10336_v18 }
  0x8c   : > { %2230 = vmatmul.mubr.bf16.gmra.mrb[36].mxu1 %v10345_v29 }
  0x8d   : > { %2077 = vmatmul.mubr.bf16.gmra.mrb[40].mxu0 %v10334_v14  ;;  %2237 = vmatprep.mubr.bf16.mxu1 %v10347_v30 }
  0x8e   : > { %2084 = vmatprep.mubr.bf16.mxu0 %v10349_v31 }
  0x94   : > { %2238 = vmatmul.mubr.bf16.gmra.mrb[40].mxu1 %v10355_v44 }
  0x95   : > { %2085 = vmatmul.mubr.bf16.gmra.mrb[44].mxu0 %v10347_v30  ;;  %2245 = vmatprep.mubr.bf16.mxu1 %v10357_v45 }
  0x96   : > { %2092 = vmatprep.mubr.bf16.mxu0 %v10359_v46 }
  0x9c   : > { %2246 = vmatmul.mubr.bf16.gmra.mrb[44].mxu1 %v10365_v59 }
  0x9d   : > { %2093 = vmatmul.mubr.bf16.gmra.mrb[48].mxu0 %v10357_v45  ;;  %2253 = vmatprep.mubr.bf16.mxu1 %v10367_v60 }
  0x9e   : > { %2100 = vmatprep.mubr.bf16.mxu0 %v10369_v61 }
  0xa4   : > { %2254 = vmatmul.mubr.bf16.gmra.mrb[48].mxu1 %v10375_v6 }
  0xa5   : > { %2101 = vmatmul.mubr.bf16.gmra.mrb[52].mxu0 %v10367_v60  ;;  %2261 = vmatprep.mubr.bf16.mxu1 %v10380_v10 }
  0xa6   : > { %2108 = vmatprep.mubr.bf16.mxu0 %v10382_v19 }
  0xac   : > { %2262 = vmatmul.mubr.bf16.gmra.mrb[52].mxu1 %v10388_v35 }
  0xad   : > { %2109 = vmatmul.mubr.bf16.gmra.mrb[56].mxu0 %v10380_v10  ;;  %2269 = vmatprep.mubr.bf16.mxu1 %v10390_v36 }
  0xae   : > { %2116 = vmatprep.mubr.bf16.mxu0 %v10392_v37 }
  0xb4   : > { %2270 = vmatmul.mubr.bf16.gmra.mrb[56].mxu1 %v10398_v48 }
  0xb5   : > { %2117 = vmatmul.mubr.bf16.gmra.mrb[60].mxu0 %v10390_v36  ;;  %2277 = vmatprep.mubr.bf16.mxu1 %v10400_v49 }
  0xb6   : > { %2318 = vmatprep.mubr.bf16.mxu0 %v10147_v15  ;;  %v9472_v15 = vld [vmem:[%s12346_s2 + $0x210] sm:$0xff]  }
  0xbc   : > { %2278 = vmatmul.mubr.bf16.gmra.mrb[60].mxu1 %v10406_v58 }
  0xbd   : > { %2319 = vmatmul.mubr.bf16.vlgmr.msra.gmra.mrb[64].mxu0 %v10138_v2  ;;  %2479 = vmatprep.mubr.bf16.mxu1 %v10143_v8  ;;  %v9474_v2 = vld [vmem:[%s12346_s2 + $0x220] sm:$0xff]  }
  0xbe   : > { %2326 = vmatprep.mubr.bf16.mxu0 %v10157_v24  ;;  %9213 = vmatpush3.bf16.msra.mxu0 %v9470_v7  ;;  %v9475_v24 = vld [vmem:[%s12346_s2 + $0x228] sm:$0xff]  }
  0xbf   : > { %9214 = vmatprep.subr.bf16.mxu0 %v9471_v62 }
  0xc2   : > { %9215 = vmatpush3.bf16.msra.mxu0 %v9471_v62 }
  0xc3   : > { %9216 = vmatprep.subr.bf16.mxu0 %v9472_v15 }
  0xc4   : > { %2480 = vmatmul.mubr.bf16.vlgmr.msra.gmra.mrb[64].mxu1 %v10140_v5  ;;  %v9476_v5 = vld [vmem:[%s12346_s2 + $0x230] sm:$0xff]  }
  0xc5   : > { %2327 = vmatmul.mubr.bf16.gmra.mrb[68].mxu0 %v10143_v8  ;;  %2487 = vmatprep.mubr.bf16.mxu1 %v10151_v17  ;;  %v9477_v8 = vld [vmem:[%s12346_s2 + $0x238] sm:$0xff]  }
  0xc6   : > { %2334 = vmatprep.mubr.bf16.mxu0 %v10183_v40  ;;  %9217 = vmatpush3.bf16.msra.mxu0 %v9472_v15  ;;  %v10504_v15 = vpack.c.bf16 %v1011_v27, %v1010_v23 }
  0xc7   : > { %9218 = vmatprep.subr.bf16.mxu0 %v9473_v63 }
  0xca   : > { %9219 = vmatpush3.bf16.msra.mxu0 %v9473_v63 }
  0xcb   : > { %9220 = vmatprep.subr.bf16.mxu0 %v9474_v2 }
  0xcc   : > { %2488 = vmatmul.mubr.bf16.gmra.mrb[68].mxu1 %v10149_v16 }
  0xcd   : > { %2335 = vmatmul.mubr.bf16.gmra.mrb[72].mxu0 %v10151_v17  ;;  %2495 = vmatprep.mubr.bf16.mxu1 %v10161_v26 }
  0xce   : > { %2342 = vmatprep.mubr.bf16.mxu0 %v10205_v53  ;;  %9221 = vmatpush3.bf16.msra.mxu0 %v9474_v2 }
  0xcf   : > { %9222 = vmatprep.subr.bf16.mxu0 %v9475_v24 }
  0xd2   : > { %9223 = vmatpush3.bf16.msra.mxu0 %v9475_v24 }
  0xd3   : > { %9224 = vmatprep.subr.bf16.mxu0 %v9476_v5 }
  0xd4   : > { %2496 = vmatmul.mubr.bf16.gmra.mrb[72].mxu1 %v10159_v25 }
  0xd5   : > { %2343 = vmatmul.mubr.bf16.gmra.mrb[76].mxu0 %v10161_v26  ;;  %2503 = vmatprep.mubr.bf16.mxu1 %v10190_v43 }
  0xd6   : > { %2350 = vmatprep.mubr.bf16.mxu0 %v10237_v9  ;;  %9225 = vmatpush3.bf16.msra.mxu0 %v9476_v5 }
  0xd7   : > { %9226 = vmatprep.subr.bf16.mxu0 %v9477_v8 }
  0xda   : > { %9227 = vmatpush3.bf16.msra.mxu0 %v9477_v8  ;;  %v1139_v8 = vld [vmem:[#allocation2 + $0x199] sm:$0xff] }
  0xdc   : > { %2504 = vmatmul.mubr.bf16.gmra.mrb[76].mxu1 %v10188_v42 }
  0xdd   : > { %2351 = vmatmul.mubr.bf16.gmra.mrb[80].mxu0 %v10190_v43  ;;  %2511 = vmatprep.mubr.bf16.mxu1 %v10212_v56  ;;  %v10476_v43 = vld [vmem:[%s12347_s3] ss:$0 sm:$0xff] }
  0xde   : > { %2358 = vmatprep.mubr.bf16.mxu0 %v10269_v32 }
  0xe4   : > { %2512 = vmatmul.mubr.bf16.gmra.mrb[80].mxu1 %v10210_v55 }
  0xe5   : > { %2359 = vmatmul.mubr.bf16.gmra.mrb[84].mxu0 %v10212_v56  ;;  %2519 = vmatprep.mubr.bf16.mxu1 %v10244_v12 }
  0xe6   : > { %2366 = vmatprep.mubr.bf16.mxu0 %v10297_v50 }
  0xec   : > { %2520 = vmatmul.mubr.bf16.gmra.mrb[84].mxu1 %v10242_v11 }
  0xed   : > { %2367 = vmatmul.mubr.bf16.gmra.mrb[88].mxu0 %v10244_v12  ;;  %2527 = vmatprep.mubr.bf16.mxu1 %v10273_v34 }
  0xee   : > { %2374 = vmatprep.mubr.bf16.mxu0 %v10332_v13 }
  0xf4   : > { %2528 = vmatmul.mubr.bf16.gmra.mrb[88].mxu1 %v10271_v33 }
  0xf5   : > { %2375 = vmatmul.mubr.bf16.gmra.mrb[92].mxu0 %v10273_v34  ;;  %2535 = vmatprep.mubr.bf16.mxu1 %v10305_v57 }
  0xf6   : > { %2382 = vmatprep.mubr.bf16.mxu0 %v10345_v29 }
  0xfc   : > { %2536 = vmatmul.mubr.bf16.gmra.mrb[92].mxu1 %v10303_v54 }
  0xfd   : > { %2383 = vmatmul.mubr.bf16.gmra.mrb[96].mxu0 %v10305_v57  ;;  %2543 = vmatprep.mubr.bf16.mxu1 %v10336_v18 }
  0xfe   : > { %2390 = vmatprep.mubr.bf16.mxu0 %v10355_v44 }
 0x104   : > { %2544 = vmatmul.mubr.bf16.gmra.mrb[96].mxu1 %v10334_v14 }
 0x105   : > { %2391 = vmatmul.mubr.bf16.gmra.mrb[100].mxu0 %v10336_v18  ;;  %2551 = vmatprep.mubr.bf16.mxu1 %v10349_v31 }
 0x106   : > { %2398 = vmatprep.mubr.bf16.mxu0 %v10365_v59 }
 0x107   : > { %v7970_v16 = vpop.f32.mrb[0].mxu0 }
 0x108   : > { %v7971_v17 = vpop.f32.mrb[1].mxu0 }
 0x109   : > { %v7972_v25 = vadd.f32 %v7971_v17, %v7970_v16  ;;  %v7973_v26 = vpop.f32.mrb[2].mxu0  ;;  %v1140_v16 = vld [vmem:[#allocation2 + $0x1a1] sm:$0xff]  ;;  %v1173_v17 = vld [vmem:[#allocation2 + $0x32] sm:$0xff] }
 0x10a   : > { %v7974_v40 = vpop.f32.mrb[3].mxu0 }
 0x10b   : > { %v7975_v42 = vadd.f32 %v7974_v40, %v7973_v26  ;;  %v1999_v53 = vadd.f32 %v7972_v25, %v10476_v43  ;;  %v1174_v26 = vld [vmem:[#allocation2 + $0x3a] sm:$0xff] }
 0x10c   : > { %2552 = vmatmul.mubr.bf16.gmra.mrb[100].mxu1 %v10347_v30 }
 0x10d   : > { %2399 = vmatmul.mubr.bf16.gmra.mrb[104].mxu0 %v10349_v31  ;;  %2559 = vmatprep.mubr.bf16.mxu1 %v10359_v46  ;;  %v2002_v12 = vadd.f32 %v7975_v42, %v10476_v43 }
 0x10e   : > { %2406 = vmatprep.mubr.bf16.mxu0 %v10375_v6 }
 0x114   : > { %2560 = vmatmul.mubr.bf16.gmra.mrb[104].mxu1 %v10357_v45 }
 0x115   : > { %2407 = vmatmul.mubr.bf16.gmra.mrb[108].mxu0 %v10359_v46  ;;  %2567 = vmatprep.mubr.bf16.mxu1 %v10369_v61 }
 0x116   : > { %2414 = vmatprep.mubr.bf16.mxu0 %v10388_v35 }
 0x117   : > { %v8082_v55 = vpop.f32.mrb[0].mxu1 }
 0x118   : > { %v7976_v56 = vpop.f32.mrb[4].mxu0  ;;  %v8083_v9 = vpop.f32.mrb[1].mxu1 }
 0x119   : > { %v7977_v11 = vpop.f32.mrb[5].mxu0  ;;  %v8084_v32 = vadd.f32 %v8083_v9, %v8082_v55  ;;  %v8085_v33 = vpop.f32.mrb[2].mxu1  ;;  %v1156_v9 = vpack.c.bf16 %v1140_v16, %v1139_v8 }
 0x11a   : > { %v7978_v34 = vadd.f32 %v7977_v11, %v7976_v56  ;;  %v7979_v50 = vpop.f32.mrb[6].mxu0  ;;  %v8086_v54 = vpop.f32.mrb[3].mxu1 }
 0x11b   : > { %v7980_v57 = vpop.f32.mrb[7].mxu0  ;;  %v10484_v13 = vadd.f32 %v8084_v32, %v1999_v53  ;;  %v8087_v14 = vadd.f32 %v8086_v54, %v8085_v33  ;;  %v1205_v33 = vpack.c.bf16 %v1174_v26, %v1173_v17 }
 0x11c   : > { %v7981_v18 = vadd.f32 %v7980_v57, %v7979_v50  ;;  %2568 = vmatmul.mubr.bf16.gmra.mrb[108].mxu1 %v10367_v60  ;;  %v2007_v30 = vadd.f32 %v7978_v34, %v10476_v43 }
 0x11d   : > { %2415 = vmatmul.mubr.bf16.gmra.mrb[112].mxu0 %v10369_v61  ;;  %v10488_v29 = vadd.f32 %v8087_v14, %v2002_v12  ;;  %2575 = vmatprep.mubr.bf16.mxu1 %v10382_v19 }
 0x11e   : > { %2422 = vmatprep.mubr.bf16.mxu0 %v10398_v48  ;;  %v2010_v59 = vadd.f32 %v7981_v18, %v10476_v43  ;;  %v1155_v48 = vpack.c.bf16 %v1138_v22, %v1137_v21 }
 0x11f   : > { %v8088_v31 = vpop.f32.mrb[4].mxu1 }
 0x120   : > { %v7982_v44 = vpop.f32.mrb[8].mxu0  ;;  %v8089_v45 = vpop.f32.mrb[5].mxu1 }
 0x121   : > { %v7983_v46 = vpop.f32.mrb[9].mxu0  ;;  %v8090_v0 = vadd.f32 %v8089_v45, %v8088_v31  ;;  %v8091_v1 = vpop.f32.mrb[6].mxu1  ;;  %v1176_v31 = vld [vmem:[#allocation2 + $0x52] sm:$0xff]  ;;  %v1178_v45 = vld [vmem:[#allocation2 + $0x6a] sm:$0xff] }
 0x122   : > { %v7984_v3 = vadd.f32 %v7983_v46, %v7982_v44  ;;  %v7985_v60 = vpop.f32.mrb[10].mxu0  ;;  %v8092_v4 = vpop.f32.mrb[7].mxu1  ;;  %v1177_v44 = vld [vmem:[#allocation2 + $0x62] sm:$0xff] }
 0x123   : > { %v7986_v61 = vpop.f32.mrb[11].mxu0  ;;  %v10494_v6 = vadd.f32 %v8090_v0, %v2007_v30  ;;  %v8093_v7 = vadd.f32 %v8092_v4, %v8091_v1  ;;  %v1175_v30 = vld [vmem:[#allocation2 + $0x4a] sm:$0xff]  ;;  %v1207_v23 = vpack.c.bf16 %v1178_v45, %v1177_v44 }
 0x124   : > { %v7987_v20 = vadd.f32 %v7986_v61, %v7985_v60  ;;  %2576 = vmatmul.mubr.bf16.gmra.mrb[112].mxu1 %v10380_v10  ;;  %v2015_v35 = vadd.f32 %v7984_v3, %v10476_v43  ;;  %v9707_v3 = vld [vmem:[#allocation2] sm:$0xff]  ;;  %v1206_v61 = vpack.c.bf16 %v1176_v31, %v1175_v30 }
 0x125   : > { %2423 = vmatmul.mubr.bf16.gmra.mrb[116].mxu0 %v10382_v19  ;;  %v10498_v28 = vadd.f32 %v8093_v7, %v2010_v59  ;;  %2583 = vmatprep.mubr.bf16.mxu1 %v10392_v37  ;;  %v10521_v60 = vpack.c.bf16 %v9707_v3, %v9707_v3 }
 0x126   : > { %2430 = vmatprep.mubr.bf16.mxu0 %v10406_v58  ;;  %v2018_v51 = vadd.f32 %v7987_v20, %v10476_v43 }
 0x127   : > { %v8094_v38 = vpop.f32.mrb[8].mxu1 }
 0x128   : > { %v7988_v39 = vpop.f32.mrb[12].mxu0  ;;  %v8095_v41 = vpop.f32.mrb[9].mxu1 }
 0x129   : > { %v7989_v47 = vpop.f32.mrb[13].mxu0  ;;  %v8096_v10 = vadd.f32 %v8095_v41, %v8094_v38  ;;  %v8097_v52 = vpop.f32.mrb[10].mxu1 }
 0x12a   : > { %v7990_v19 = vadd.f32 %v7989_v47, %v7988_v39  ;;  %v7991_v62 = vpop.f32.mrb[14].mxu0  ;;  %v8098_v63 = vpop.f32.mrb[11].mxu1 }
 0x12b   : > { %v7992_v2 = vpop.f32.mrb[15].mxu0  ;;  %v10506_v24 = vadd.f32 %v8096_v10, %v2015_v35  ;;  %v8099_v58 = vadd.f32 %v8098_v63, %v8097_v52  ;;  %v1181_v10 = vld [vmem:[#allocation2 + $0x92] sm:$0xff]  ;;  %v1182_v52 = vld [vmem:[#allocation2 + $0x9a] sm:$0xff] }
 0x12c   : > { %v7993_v5 = vadd.f32 %v7992_v2, %v7991_v62  ;;  %2584 = vmatmul.mubr.bf16.gmra.mrb[116].mxu1 %v10390_v36  ;;  %v2023_v40 = vadd.f32 %v7990_v19, %v10476_v43 }
 0x12d   : > { %2431 = vmatmul.mubr.bf16.gmra.mrb[120].mxu0 %v10392_v37  ;;  %v10510_v25 = vadd.f32 %v8099_v58, %v2018_v51  ;;  %2591 = vmatprep.mubr.bf16.mxu1 %v1155_v48  ;;  %v1180_v51 = vld [vmem:[#allocation2 + $0x82] sm:$0xff] }
 0x12e   : > { %2438 = vmatprep.mubr.bf16.mxu0 %v10504_v15  ;;  %v2026_v11 = vadd.f32 %v7993_v5, %v10476_v43 }
 0x12f   : > { %v8100_v42 = vpop.f32.mrb[12].mxu1 }
 0x130   : > { %v7994_v53 = vpop.f32.mrb[16].mxu0  ;;  %v8101_v55 = vpop.f32.mrb[13].mxu1 }
 0x131   : > { %v7995_v56 = vpop.f32.mrb[17].mxu0  ;;  %v8102_v12 = vadd.f32 %v8101_v55, %v8100_v42  ;;  %v8103_v36 = vpop.f32.mrb[14].mxu1  ;;  %v1209_v42 = vpack.c.bf16 %v1182_v52, %v1181_v10 }
 0x132   : > { %v7996_v32 = vadd.f32 %v7995_v56, %v7994_v53  ;;  %v7997_v37 = vpop.f32.mrb[18].mxu0  ;;  %v8104_v34 = vpop.f32.mrb[15].mxu1 }
 0x133   : > { %v7998_v50 = vpop.f32.mrb[19].mxu0  ;;  %v10515_v54 = vadd.f32 %v8102_v12, %v2023_v40  ;;  %v8105_v57 = vadd.f32 %v8104_v34, %v8103_v36  ;;  %v1183_v36 = vld [vmem:[#allocation2 + $0xaa] sm:$0xff] }
 0x134   : > { %v7999_v14 = vadd.f32 %v7998_v50, %v7997_v37  ;;  %2592 = vmatmul.mubr.bf16.gmra.mrb[120].mxu1 %v10400_v49  ;;  %v2031_v46 = vadd.f32 %v7996_v32, %v10476_v43  ;;  %v1184_v32 = vld [vmem:[#allocation2 + $0xb2] sm:$0xff]  ;;  %v1185_v37 = vld [vmem:[#allocation2 + $0xc2] sm:$0xff] }
 0x135   : > { %2439 = vmatmul.mubr.bf16.gmra.mrb[124].mxu0 %v1155_v48  ;;  %v10518_v18 = vadd.f32 %v8105_v57, %v2026_v11  ;;  %2599 = vmatprep.mubr.bf16.mxu1 %v1156_v9  ;;  %v1179_v48 = vld [vmem:[#allocation2 + $0x7a] sm:$0xff]  ;;  %v1210_v31 = vpack.c.bf16 %v1184_v32, %v1183_v36 }
 0x136   : > { %9228 = vmatprep.mubr.bf16.mxu0 %v1205_v33  ;;  %v2034_v49 = vadd.f32 %v7999_v14, %v10476_v43  ;;  %v1208_v5 = vpack.c.bf16 %v1180_v51, %v1179_v48  ;;  %v1186_v33 = vld [vmem:[#allocation2 + $0xca] sm:$0xff] }
 0x137   : > { %v8106_v59 = vpop.f32.mrb[16].mxu1 }
 0x138   : > { %v8000_v0 = vpop.f32.mrb[20].mxu0  ;;  %v8107_v1 = vpop.f32.mrb[17].mxu1 }
 0x139   : > { %v8001_v4 = vpop.f32.mrb[21].mxu0  ;;  %v8108_v7 = vadd.f32 %v8107_v1, %v8106_v59  ;;  %v8109_v20 = vpop.f32.mrb[18].mxu1  ;;  %v1211_v1 = vpack.c.bf16 %v1186_v33, %v1185_v37 }
 0x13a   : > { %v8002_v21 = vadd.f32 %v8001_v4, %v8000_v0  ;;  %v8003_v22 = vpop.f32.mrb[22].mxu0  ;;  %v8110_v27 = vpop.f32.mrb[19].mxu1 }
 0x13b   : > { %v8004_v35 = vpop.f32.mrb[23].mxu0  ;;  %v10524_v38 = vadd.f32 %v8108_v7, %v2031_v46  ;;  %v8111_v39 = vadd.f32 %v8110_v27, %v8109_v20  ;;  %v1190_v27 = vld [vmem:[#allocation2 + $0xfa] sm:$0xff] }
 0x13c   : > { %v8005_v41 = vadd.f32 %v8004_v35, %v8003_v22  ;;  %2600 = vmatmul.mubr.bf16.gmra.mrb[124].mxu1 %v10521_v60  ;;  %v2039_v19 = vadd.f32 %v8002_v21, %v10476_v43  ;;  %v1187_v21 = vld [vmem:[#allocation2 + $0xda] sm:$0xff]  ;;  %v1188_v22 = vld [vmem:[#allocation2 + $0xe2] sm:$0xff] }
 0x13d   : > { %9229 = vmatmul.mubr.bf16.vlgmr.msra.gmra.mrb[128].mxu0 %v1206_v61  ;;  %v10527_v47 = vadd.f32 %v8111_v39, %v2034_v49  ;;  %v1212_v10 = vpack.c.bf16 %v1188_v22, %v1187_v21  ;;  %v1198_v21 = vld [vmem:[#allocation2 + $0x15a] sm:$0xff] }
 0x13e   : > { %9232 = vmatprep.mubr.bf16.mxu0 %v1207_v23  ;;  %v2042_v8 = vadd.f32 %v8005_v41, %v10476_v43  ;;  %v1189_v23 = vld [vmem:[#allocation2 + $0xf2] sm:$0xff] }
 0x13f   : > { %v8112_v62 = vpop.f32.mrb[20].mxu1 }
 0x140   : > { %v8006_v63 = vpop.f32.mrb[24].mxu0  ;;  %v8113_v2 = vpop.f32.mrb[21].mxu1 }
 0x141   : > { %v8007_v58 = vpop.f32.mrb[25].mxu0  ;;  %v8114_v16 = vadd.f32 %v8113_v2, %v8112_v62  ;;  %v8115_v17 = vpop.f32.mrb[22].mxu1 }
 0x142   : > { %v8008_v26 = vadd.f32 %v8007_v58, %v8006_v63  ;;  %v8009_v40 = vpop.f32.mrb[26].mxu0  ;;  %v8116_v53 = vpop.f32.mrb[23].mxu1  ;;  %v1213_v58 = vpack.c.bf16 %v1190_v27, %v1189_v23 }
 0x143   : > { %v8010_v55 = vpop.f32.mrb[27].mxu0  ;;  %v10531_v56 = vadd.f32 %v8114_v16, %v2039_v19  ;;  %v8117_v9 = vadd.f32 %v8116_v53, %v8115_v17  ;;  %v1192_v53 = vld [vmem:[#allocation2 + $0x112] sm:$0xff] }
 0x144   : > { %v8011_v11 = vadd.f32 %v8010_v55, %v8009_v40  ;;  %v2047_v34 = vadd.f32 %v8008_v26, %v10476_v43  ;;  %v1193_v55 = vld [vmem:[#allocation2 + $0x122] sm:$0xff] }
 0x145   : > { %9233 = vmatmul.mubr.bf16.gmra.mrb[132].mxu0 %v1208_v5  ;;  %v10533_v12 = vadd.f32 %v8117_v9, %v2042_v8  ;;  %v1194_v9 = vld [vmem:[#allocation2 + $0x12a] sm:$0xff] }
 0x146   : > { %9236 = vmatprep.mubr.bf16.mxu0 %v1209_v42  ;;  %v2050_v44 = vadd.f32 %v8011_v11, %v10476_v43  ;;  %v1191_v42 = vld [vmem:[#allocation2 + $0x10a] sm:$0xff] }
 0x147   : > { %v8118_v50 = vpop.f32.mrb[24].mxu1 }
 0x148   : > { %v8012_v57 = vpop.f32.mrb[28].mxu0  ;;  %v8119_v14 = vpop.f32.mrb[25].mxu1 }
 0x149   : > { %v8013_v30 = vpop.f32.mrb[29].mxu0  ;;  %v8120_v45 = vadd.f32 %v8119_v14, %v8118_v50  ;;  %v8121_v46 = vpop.f32.mrb[26].mxu1 }
 0x14a   : > { %v8014_v59 = vadd.f32 %v8013_v30, %v8012_v57  ;;  %v8015_v0 = vpop.f32.mrb[30].mxu0  ;;  %v8122_v3 = vpop.f32.mrb[27].mxu1 }
 0x14b   : > { %v8016_v4 = vpop.f32.mrb[31].mxu0  ;;  %v10537_v61 = vadd.f32 %v8120_v45, %v2047_v34  ;;  %v8123_v49 = vadd.f32 %v8122_v3, %v8121_v46  ;;  %v1214_v34 = vpack.c.bf16 %v1192_v53, %v1191_v42  ;;  %v1195_v3 = vld [vmem:[#allocation2 + $0x13a] sm:$0xff] }
 0x14c   : > { %v8017_v7 = vadd.f32 %v8016_v4, %v8015_v0  ;;  %v2055_v35 = vadd.f32 %v8014_v59, %v10476_v43  ;;  %v1196_v4 = vld [vmem:[#allocation2 + $0x142] sm:$0xff] }
 0x14d   : > { %9237 = vmatmul.mubr.bf16.gmra.mrb[136].mxu0 %v1210_v31  ;;  %v10539_v20 = vadd.f32 %v8123_v49, %v2050_v44  ;;  %v1215_v44 = vpack.c.bf16 %v1194_v9, %v1193_v55 }
 0x14e   : > { %9240 = vmatprep.mubr.bf16.mxu0 %v1211_v1  ;;  %v2058_v52 = vadd.f32 %v8017_v7, %v10476_v43  ;;  %v1197_v7 = vld [vmem:[#allocation2 + $0x152] sm:$0xff] }
 0x14f   : > { %v8124_v39 = vpop.f32.mrb[28].mxu1 }
 0x150   : > { %v8018_v41 = vpop.f32.mrb[32].mxu0  ;;  %v8125_v48 = vpop.f32.mrb[29].mxu1 }
 0x151   : > { %v8019_v51 = vpop.f32.mrb[33].mxu0  ;;  %v8126_v19 = vadd.f32 %v8125_v48, %v8124_v39  ;;  %v8127_v62 = vpop.f32.mrb[30].mxu1 }
 0x152   : > { %v8020_v63 = vadd.f32 %v8019_v51, %v8018_v41  ;;  %v8021_v2 = vpop.f32.mrb[34].mxu0  ;;  %v8128_v5 = vpop.f32.mrb[31].mxu1  ;;  %v1216_v41 = vpack.c.bf16 %v1196_v4, %v1195_v3 }
 0x153   : > { %v8022_v8 = vpop.f32.mrb[35].mxu0  ;;  %v10543_v16 = vadd.f32 %v8126_v19, %v2055_v35  ;;  %v8129_v17 = vadd.f32 %v8128_v5, %v8127_v62  ;;  %v1217_v62 = vpack.c.bf16 %v1198_v21, %v1197_v7 }
 0x154   : > { %v8023_v26 = vadd.f32 %v8022_v8, %v8021_v2  ;;  %v2063_v11 = vadd.f32 %v8020_v63, %v10476_v43 }
 0x155   : > { %9241 = vmatmul.mubr.bf16.gmra.mrb[140].mxu0 %v1212_v10  ;;  %v10545_v40 = vadd.f32 %v8129_v17, %v2058_v52  ;;  %v1199_v17 = vld [vmem:[#allocation2 + $0x16a] sm:$0xff] }
 0x156   : > { %9244 = vmatprep.mubr.bf16.mxu0 %v1213_v58  ;;  %v2066_v50 = vadd.f32 %v8023_v26, %v10476_v43  ;;  %v1200_v26 = vld [vmem:[#allocation2 + $0x172] sm:$0xff] }
 0x157   : > { %v8130_v36 = vpop.f32.mrb[32].mxu1 }
 0x158   : > { %v8024_v32 = vpop.f32.mrb[36].mxu0  ;;  %v8131_v37 = vpop.f32.mrb[33].mxu1 }
 0x159   : > { %v8025_v33 = vpop.f32.mrb[37].mxu0  ;;  %v8132_v57 = vadd.f32 %v8131_v37, %v8130_v36  ;;  %v8133_v14 = vpop.f32.mrb[34].mxu1 }
 0x15a   : > { %v8026_v30 = vadd.f32 %v8025_v33, %v8024_v32  ;;  %v8027_v31 = vpop.f32.mrb[38].mxu0  ;;  %v8134_v45 = vpop.f32.mrb[35].mxu1  ;;  %v1218_v32 = vpack.c.bf16 %v1200_v26, %v1199_v17 }
 0x15b   : > { %v8028_v46 = vpop.f32.mrb[39].mxu0  ;;  %v8135_v59 = vadd.f32 %v8134_v45, %v8133_v14  ;;  %v10549_v1 = vadd.f32 %v8132_v57, %v2063_v11 }
 0x15c   : > { %v8029_v0 = vadd.f32 %v8028_v46, %v8027_v31  ;;  %v2071_v22 = vadd.f32 %v8026_v30, %v10476_v43  ;;  %v1203_v46 = vld [vmem:[#allocation2 + $0x19a] sm:$0xff] }
 0x15d   : > { %9245 = vmatmul.mubr.bf16.gmra.mrb[144].mxu0 %v1214_v34  ;;  %v10551_v49 = vadd.f32 %v8135_v59, %v2066_v50  ;;  %v1204_v59 = vld [vmem:[#allocation2 + $0x1a2] sm:$0xff] }
 0x15e   : > { %9248 = vmatprep.mubr.bf16.mxu0 %v1215_v44  ;;  %v2074_v48 = vadd.f32 %v8029_v0, %v10476_v43 }
 0x15f   : > { %v8136_v23 = vpop.f32.mrb[36].mxu1 }
 0x160   : > { %v8030_v27 = vpop.f32.mrb[40].mxu0  ;;  %v8137_v35 = vpop.f32.mrb[37].mxu1 }
 0x161   : > { %v8031_v39 = vpop.f32.mrb[41].mxu0  ;;  %v8138_v51 = vadd.f32 %v8137_v35, %v8136_v23  ;;  %v8139_v10 = vpop.f32.mrb[38].mxu1  ;;  %v1220_v23 = vpack.c.bf16 %v1204_v59, %v1203_v46 }
 0x162   : > { %v8032_v52 = vadd.f32 %v8031_v39, %v8030_v27  ;;  %v8033_v19 = vpop.f32.mrb[42].mxu0  ;;  %v8140_v63 = vpop.f32.mrb[39].mxu1 }
 0x163   : > { %v8034_v2 = vpop.f32.mrb[43].mxu0  ;;  %v8141_v58 = vadd.f32 %v8140_v63, %v8139_v10  ;;  %v10555_v8 = vadd.f32 %v8138_v51, %v2071_v22 }
 0x164   : > { %v8035_v5 = vadd.f32 %v8034_v2, %v8033_v19  ;;  %v2079_v53 = vadd.f32 %v8032_v52, %v10476_v43 }
 0x165   : > { %9249 = vmatmul.mubr.bf16.gmra.mrb[148].mxu0 %v1216_v41  ;;  %v10557_v42 = vadd.f32 %v8141_v58, %v2074_v48 }
 0x166   : > { %9252 = vmatprep.mubr.bf16.mxu0 %v1217_v62  ;;  %v2082_v37 = vadd.f32 %v8035_v5, %v10476_v43 }
 0x167   : > { %v8142_v55 = vpop.f32.mrb[40].mxu1 }
 0x168   : > { %v8036_v9 = vpop.f32.mrb[44].mxu0  ;;  %v8143_v11 = vpop.f32.mrb[41].mxu1 }
 0x169   : > { %v8037_v36 = vpop.f32.mrb[45].mxu0  ;;  %v8144_v33 = vadd.f32 %v8143_v11, %v8142_v55  ;;  %v8145_v34 = vpop.f32.mrb[42].mxu1 }
 0x16a   : > { %v8038_v50 = vadd.f32 %v8037_v36, %v8036_v9  ;;  %v8039_v57 = vpop.f32.mrb[46].mxu0  ;;  %v8146_v14 = vpop.f32.mrb[43].mxu1 }
 0x16b   : > { %v8040_v30 = vpop.f32.mrb[47].mxu0  ;;  %v8147_v31 = vadd.f32 %v8146_v14, %v8145_v34  ;;  %v10561_v45 = vadd.f32 %v8144_v33, %v2079_v53  ;;  %v9479_v14 = vld [vmem:[%s12348_s4] sm:$0xff]  }
 0x16c   : > { %v8041_v44 = vadd.f32 %v8040_v30, %v8039_v57  ;;  %v2087_v3 = vadd.f32 %v8038_v50, %v10476_v43  ;;  %v9478_v57 = vld [vmem:[%s12348_s4 + $0x40] sm:$0xff]  }
 0x16d   : > { %9253 = vmatmul.mubr.bf16.gmra.mrb[152].mxu0 %v1218_v32  ;;  %v10564_v0 = vadd.f32 %v8147_v31, %v2082_v37  ;;  %8426 = vmatprep.subr.bf16.mxu1 %v9478_v57 }
 0x16e   : > { %9256 = vmatprep.mubr.bf16.mxu0 %v10504_v15  ;;  %v2090_v27 = vadd.f32 %v8041_v44, %v10476_v43  ;;  %8427 = vmatpush3.bf16.msra.mxu1 %v9479_v14  ;;  %v9487_v14 = vld [vmem:[%s12348_s4 + $0x18] sm:$0xff]  }
 0x16f   : > { %v8148_v4 = vpop.f32.mrb[44].mxu1 }
 0x170   : > { %v8042_v7 = vpop.f32.mrb[48].mxu0  ;;  %v8149_v21 = vpop.f32.mrb[45].mxu1 }
 0x171   : > { %v8043_v22 = vpop.f32.mrb[49].mxu0  ;;  %v8150_v35 = vadd.f32 %v8149_v21, %v8148_v4  ;;  %v8151_v39 = vpop.f32.mrb[46].mxu1 }
 0x172   : > { %v8044_v41 = vadd.f32 %v8043_v22, %v8042_v7  ;;  %v8045_v48 = vpop.f32.mrb[50].mxu0  ;;  %v8152_v51 = vpop.f32.mrb[47].mxu1 }
 0x173   : > { %v8046_v10 = vpop.f32.mrb[51].mxu0  ;;  %v8153_v15 = vadd.f32 %v8152_v51, %v8151_v39  ;;  %v10568_v19 = vadd.f32 %v8150_v35, %v2087_v3  ;;  %v9481_v39 = vld [vmem:[%s12348_s4 + $0x8] sm:$0xff]  }
 0x174   : > { %v8047_v52 = vadd.f32 %v8046_v10, %v8045_v48  ;;  %v2095_v63 = vadd.f32 %v8044_v41, %v10476_v43 }
 0x175   : > { %9257 = vmatmul.mubr.bf16.gmra.mrb[156].mxu0 %v1220_v23  ;;  %v10570_v62 = vadd.f32 %v8153_v15, %v2090_v27  ;;  %v9480_v23 = vld [vmem:[%s12348_s4 + $0x48] sm:$0xff]   ;;  %v9482_v15 = vld [vmem:[%s12348_s4 + $0x50] sm:$0xff]  }
 0x176   : > { %v2098_v26 = vadd.f32 %v8047_v52, %v10476_v43  ;;  %8428 = vmatprep.subr.bf16.mxu1 %v9480_v23  ;;  %v9483_v52 = vld [vmem:[%s12348_s4 + $0x10] sm:$0xff]  }
 0x177   : > { %v8154_v2 = vpop.f32.mrb[48].mxu1  ;;  %8429 = vmatpush3.bf16.msra.mxu1 %v9481_v39  ;;  %v9492_v39 = vld [vmem:[%s12348_s4 + $0xd0] sm:$0xff]  }
 0x178   : > { %v8048_v58 = vpop.f32.mrb[52].mxu0  ;;  %v8155_v5 = vpop.f32.mrb[49].mxu1  ;;  %8430 = vmatprep.subr.bf16.mxu1 %v9482_v15 }
 0x179   : > { %v8049_v17 = vpop.f32.mrb[53].mxu0  ;;  %v8156_v53 = vadd.f32 %v8155_v5, %v8154_v2  ;;  %v8157_v55 = vpop.f32.mrb[50].mxu1 }
 0x17a   : > { %v8050_v9 = vadd.f32 %v8049_v17, %v8048_v58  ;;  %v8051_v11 = vpop.f32.mrb[54].mxu0  ;;  %v8158_v36 = vpop.f32.mrb[51].mxu1 }
 0x17b   : > { %v8052_v32 = vpop.f32.mrb[55].mxu0  ;;  %v8159_v37 = vadd.f32 %v8158_v36, %v8157_v55  ;;  %v10574_v34 = vadd.f32 %v8156_v53, %v2095_v63  ;;  %8431 = vmatpush3.bf16.msra.mxu1 %v9483_v52 }
 0x17c   : > { %v8053_v33 = vadd.f32 %v8052_v32, %v8051_v11  ;;  %v2103_v30 = vadd.f32 %v8050_v9, %v10476_v43  ;;  %v9485_v32 = vld [vmem:[%s12348_s4 + $0x58] sm:$0xff]  }
 0x17d   : > { %v10576_v50 = vadd.f32 %v8159_v37, %v2098_v26  ;;  %v9484_v26 = vld [vmem:[%s12348_s4 + $0xc0] sm:$0xff]   ;;  %8432 = vmatprep.subr.bf16.mxu1 %v9485_v32  ;;  %v9497_v32 = vld [vmem:[%s12348_s4 + $0x70] sm:$0xff]  }
 0x17e   : > { %v2106_v3 = vadd.f32 %v8053_v33, %v10476_v43  ;;  %v9486_v37 = vld [vmem:[%s12348_s4 + $0x80] sm:$0xff]   ;;  %8538 = vmatprep.subr.bf16.mxu0 %v9484_v26  ;;  %v9495_v26 = vld [vmem:[%s12348_s4 + $0x28] sm:$0xff]  }
 0x17f   : > { %v8160_v31 = vpop.f32.mrb[52].mxu1  ;;  %8539 = vmatpush3.bf16.msra.mxu0 %v9486_v37  ;;  %8433 = vmatpush3.bf16.msra.mxu1 %v9487_v14  ;;  %v9498_v37 = vld [vmem:[%s12348_s4 + $0x98] sm:$0xff]  }
 0x180   : > { %v8054_v44 = vpop.f32.mrb[56].mxu0  ;;  %v8161_v46 = vpop.f32.mrb[53].mxu1 }
 0x181   : > { %v8055_v59 = vpop.f32.mrb[57].mxu0  ;;  %v8162_v4 = vadd.f32 %v8161_v46, %v8160_v31  ;;  %v8163_v7 = vpop.f32.mrb[54].mxu1  ;;  %v9488_v46 = vld [vmem:[%s12348_s4 + $0xc8] sm:$0xff]  }
 0x182   : > { %v8056_v21 = vadd.f32 %v8055_v59, %v8054_v44  ;;  %v8057_v22 = vpop.f32.mrb[58].mxu0  ;;  %v8164_v27 = vpop.f32.mrb[55].mxu1  ;;  %8540 = vmatprep.subr.bf16.mxu0 %v9488_v46 }
 0x183   : > { %v8058_v35 = vpop.f32.mrb[59].mxu0  ;;  %v8165_v41 = vadd.f32 %v8164_v27, %v8163_v7  ;;  %v10592_v51 = vadd.f32 %v8162_v4, %v2103_v30  ;;  %v9490_v4 = vld [vmem:[%s12348_s4 + $0x88] sm:$0xff]   ;;  %v9491_v7 = vld [vmem:[%s12348_s4 + $0x20] sm:$0xff]  }
 0x184   : > { %v8059_v48 = vadd.f32 %v8058_v35, %v8057_v22  ;;  %v2111_v63 = vadd.f32 %v8056_v21, %v10476_v43  ;;  %8541 = vmatpush3.bf16.msra.mxu0 %v9490_v4  ;;  %v9503_v4 = vld [vmem:[%s12348_s4 + $0x38] sm:$0xff]  }
 0x185   : > { %v10594_v10 = vadd.f32 %v8165_v41, %v2106_v3  ;;  %v9489_v3 = vld [vmem:[%s12348_s4 + $0x60] sm:$0xff]   ;;  %8542 = vmatprep.subr.bf16.mxu0 %v9492_v39 }
 0x186   : > { %v2114_v53 = vadd.f32 %v8059_v48, %v10476_v43  ;;  %8434 = vmatprep.subr.bf16.mxu1 %v9489_v3 }
 0x187   : > { %v8166_v2 = vpop.f32.mrb[56].mxu1  ;;  %8435 = vmatpush3.bf16.msra.mxu1 %v9491_v7 }
 0x188   : > { %v8060_v58 = vpop.f32.mrb[60].mxu0  ;;  %v8167_v5 = vpop.f32.mrb[57].mxu1 }
 0x189   : > { %v8061_v17 = vpop.f32.mrb[61].mxu0  ;;  %v8168_v55 = vadd.f32 %v8167_v5, %v8166_v2  ;;  %v8169_v9 = vpop.f32.mrb[58].mxu1  ;;  %v9493_v2 = vld [vmem:[%s12348_s4 + $0x68] sm:$0xff]  }
 0x18a   : > { %v8062_v11 = vadd.f32 %v8061_v17, %v8060_v58  ;;  %v8063_v36 = vpop.f32.mrb[62].mxu0  ;;  %v8170_v33 = vpop.f32.mrb[59].mxu1  ;;  %v9494_v58 = vld [vmem:[%s12348_s4 + $0x90] sm:$0xff]   ;;  %8436 = vmatprep.subr.bf16.mxu1 %v9493_v2 }
 0x18b   : > { %v8064_v57 = vpop.f32.mrb[63].mxu0  ;;  %v8171_v30 = vadd.f32 %v8170_v33, %v8169_v9  ;;  %v10616_v44 = vadd.f32 %v8168_v55, %v2111_v63  ;;  %8543 = vmatpush3.bf16.msra.mxu0 %v9494_v58  ;;  %8437 = vmatpush3.bf16.msra.mxu1 %v9495_v26  ;;  %v9504_v58 = vld [vmem:[%s12348_s4 + $0xe8] sm:$0xff]  }
 0x18c   : > { %v8065_v31 = vadd.f32 %v8064_v57, %v8063_v36  ;;  %v2119_v21 = vadd.f32 %v8062_v11, %v10476_v43  ;;  %v9496_v11 = vld [vmem:[%s12348_s4 + $0xd8] sm:$0xff]   ;;  %8438 = vmatprep.subr.bf16.mxu1 %v9497_v32  ;;  %v9505_v26 = vld [vmem:[%s12348_s4 + $0xa8] sm:$0xff]  }
 0x18d   : > { %v10621_v59 = vadd.f32 %v8171_v30, %v2114_v53  ;;  %8544 = vmatprep.subr.bf16.mxu0 %v9496_v11  ;;  %v9500_v30 = vld [vmem:[%s12348_s4 + $0xe0] sm:$0xff]  }
 0x18e   : > { %v2122_v41 = vadd.f32 %v8065_v31, %v10476_v43  ;;  %v9501_v31 = vld [vmem:[%s12348_s4 + $0x78] sm:$0xff]  }
 0x18f   : > { %v8172_v22 = vpop.f32.mrb[60].mxu1  ;;  %8545 = vmatpush3.bf16.msra.mxu0 %v9498_v37 }
 0x190   : > { %v8194_v23 = vpop.f32.mrb[64].mxu0  ;;  %v8173_v27 = vpop.f32.mrb[61].mxu1  ;;  %8546 = vmatprep.subr.bf16.mxu0 %v9500_v30 }
 0x191   : > { %v8195_v35 = vpop.f32.mrb[65].mxu0  ;;  %v8174_v48 = vadd.f32 %v8173_v27, %v8172_v22  ;;  %v8175_v15 = vpop.f32.mrb[62].mxu1 }
 0x192   : > { %v8196_v52 = vadd.f32 %v8195_v35, %v8194_v23  ;;  %v8197_v63 = vpop.f32.mrb[66].mxu0  ;;  %v8176_v5 = vpop.f32.mrb[63].mxu1 }
 0x193   : > { %v8198_v17 = vpop.f32.mrb[67].mxu0  ;;  %v8177_v43 = vadd.f32 %v8176_v5, %v8175_v15  ;;  %v10646_v55 = vadd.f32 %v8174_v48, %v2119_v21 }
 0x194   : > { %v8199_v53 = vadd.f32 %v8198_v17, %v8197_v63  ;;  %v2321_v9 = vadd.f32 %v8196_v52, %v10484_v13  ;;  %v9499_v13 = vld [vmem:[%s12348_s4 + $0x30] sm:$0xff]   ;;  %v2962_v52 = vld [vmem:[#allocation2 + $0x1] sm:$0xff] }
 0x195   : > { %v10652_v36 = vadd.f32 %v8177_v43, %v2122_v41  ;;  %8439 = vmatpush3.bf16.msra.mxu1 %v9499_v13  ;;  %v2963_v63 = vld [vmem:[#allocation2 + $0x9] sm:$0xff] }
 0x196   : > { %v2324_v33 = vadd.f32 %v8199_v53, %v10488_v29  ;;  %v9502_v29 = vld [vmem:[%s12348_s4 + $0xa0] sm:$0xff]   ;;  %8440 = vmatprep.subr.bf16.mxu1 %v9501_v31  ;;  %v2994_v2 = vpack.c.bf16 %v2963_v63, %v2962_v52  ;;  %v9506_v53 = vld [vmem:[%s12348_s4 + $0xf0] sm:$0xff]  }
 0x197   : > { %v8306_v57 = vpop.f32.mrb[64].mxu1  ;;  %8547 = vmatpush3.bf16.msra.mxu0 %v9502_v29 }
 0x198   : > { %v8200_v14 = vpop.f32.mrb[68].mxu0  ;;  %v8307_v46 = vpop.f32.mrb[65].mxu1  ;;  %4233 = vmatprep.mubr.bf16.mxu1 %v2994_v2  ;;  %8548 = vmatprep.subr.bf16.mxu0 %v9504_v58 }
 0x199   : > { %v8201_v3 = vpop.f32.mrb[69].mxu0  ;;  %v8308_v7 = vadd.f32 %v8307_v46, %v8306_v57  ;;  %v8309_v21 = vpop.f32.mrb[66].mxu1  ;;  %8441 = vmatpush3.bf16.msra.mxu1 %v9503_v4 }
 0x19a   : > { %v8202_v22 = vadd.f32 %v8201_v3, %v8200_v14  ;;  %v8203_v23 = vpop.f32.mrb[70].mxu0  ;;  %v8310_v27 = vpop.f32.mrb[67].mxu1  ;;  %v9508_v3 = vld [vmem:[%s12348_s4 + $0xf8] sm:$0xff]  }
 0x19b   : > { %v8204_v35 = vpop.f32.mrb[71].mxu0  ;;  %v8311_v39 = vadd.f32 %v8310_v27, %v8309_v21  ;;  %v10677_v15 = vadd.f32 %v8308_v7, %v2321_v9  ;;  %8549 = vmatpush3.bf16.msra.mxu0 %v9505_v26  ;;  %v9509_v7 = vld [vmem:[%s12348_s4 + $0xb8] sm:$0xff]  }
 0x19c   : > { %v8205_v41 = vadd.f32 %v8204_v35, %v8203_v23  ;;  %v2329_v48 = vadd.f32 %v8202_v22, %v10494_v6  ;;  %4234 = vmatmul.mubr.bf16.vlgmr.msra.gmra.mrb[128].mxu1 %v10521_v60  ;;  %8550 = vmatprep.subr.bf16.mxu0 %v9506_v53 }
 0x19d   : > { %v10683_v17 = vadd.f32 %v8311_v39, %v2324_v33 }
 0x19e   : > { %v2332_v5 = vadd.f32 %v8205_v41, %v10498_v28  ;;  %v9507_v28 = vld [vmem:[%s12348_s4 + $0xb0] sm:$0xff]  }
 0x19f   : > { %v8312_v6 = vpop.f32.mrb[68].mxu1  ;;  %8551 = vmatpush3.bf16.msra.mxu0 %v9507_v28 }
 0x1a0   : > { %v8206_v43 = vpop.f32.mrb[72].mxu0  ;;  %v8313_v9 = vpop.f32.mrb[69].mxu1  ;;  %8552 = vmatprep.subr.bf16.mxu0 %v9508_v3 }
 0x1a1   : > { %v8207_v11 = vpop.f32.mrb[73].mxu0  ;;  %v8314_v32 = vadd.f32 %v8313_v9, %v8312_v6  ;;  %v8315_v37 = vpop.f32.mrb[70].mxu1 }
 0x1a2   : > { %v8208_v33 = vadd.f32 %v8207_v11, %v8206_v43  ;;  %v8209_v13 = vpop.f32.mrb[74].mxu0  ;;  %v8316_v57 = vpop.f32.mrb[71].mxu1 }
 0x1a3   : > { %v8210_v14 = vpop.f32.mrb[75].mxu0  ;;  %v8317_v30 = vadd.f32 %v8316_v57, %v8315_v37  ;;  %v10695_v31 = vadd.f32 %v8314_v32, %v2329_v48  ;;  %8553 = vmatpush3.bf16.msra.mxu0 %v9509_v7 }
 0x1a4   : > { %v8211_v60 = vadd.f32 %v8210_v14, %v8209_v13  ;;  %v2337_v46 = vadd.f32 %v8208_v33, %v10506_v24 }
 0x1a5   : > { %v10701_v29 = vadd.f32 %v8317_v30, %v2332_v5 }
 0x1a6   : > { %v2340_v4 = vadd.f32 %v8211_v60, %v10510_v25 }
 0x1a7   : > { %v8318_v21 = vpop.f32.mrb[72].mxu1 }
 0x1a8   : > { %v8212_v22 = vpop.f32.mrb[76].mxu0  ;;  %v8319_v23 = vpop.f32.mrb[73].mxu1 }
 0x1a9   : > { %v8213_v27 = vpop.f32.mrb[77].mxu0  ;;  %v8320_v24 = vadd.f32 %v8319_v23, %v8318_v21  ;;  %v8321_v35 = vpop.f32.mrb[74].mxu1 }
 0x1aa   : > { %v8214_v39 = vadd.f32 %v8213_v27, %v8212_v22  ;;  %v8215_v41 = vpop.f32.mrb[78].mxu0  ;;  %v8322_v48 = vpop.f32.mrb[75].mxu1 }
 0x1ab   : > { %v8216_v52 = vpop.f32.mrb[79].mxu0  ;;  %v8323_v63 = vadd.f32 %v8322_v48, %v8321_v35  ;;  %v10708_v58 = vadd.f32 %v8320_v24, %v2337_v46 }
 0x1ac   : > { %v8217_v2 = vadd.f32 %v8216_v52, %v8215_v41  ;;  %v2345_v25 = vadd.f32 %v8214_v39, %v10515_v54 }
 0x1ad   : > { %v10711_v26 = vadd.f32 %v8323_v63, %v2340_v4 }
 0x1ae   : > { %v2348_v5 = vadd.f32 %v8217_v2, %v10518_v18 }
 0x1af   : > { %v8324_v6 = vpop.f32.mrb[76].mxu1 }
 0x1b0   : > { %v8218_v43 = vpop.f32.mrb[80].mxu0  ;;  %v8325_v53 = vpop.f32.mrb[77].mxu1 }
 0x1b1   : > { %v8219_v9 = vpop.f32.mrb[81].mxu0  ;;  %v8326_v11 = vadd.f32 %v8325_v53, %v8324_v6  ;;  %v8327_v28 = vpop.f32.mrb[78].mxu1 }
 0x1b2   : > { %v8220_v32 = vadd.f32 %v8219_v9, %v8218_v43  ;;  %v8221_v37 = vpop.f32.mrb[82].mxu0  ;;  %v8328_v33 = vpop.f32.mrb[79].mxu1 }
 0x1b3   : > { %v8222_v13 = vpop.f32.mrb[83].mxu0  ;;  %v8329_v57 = vadd.f32 %v8328_v33, %v8327_v28  ;;  %v10713_v30 = vadd.f32 %v8326_v11, %v2345_v25 }
 0x1b4   : > { %v8223_v14 = vadd.f32 %v8222_v13, %v8221_v37  ;;  %v2353_v54 = vadd.f32 %v8220_v32, %v10524_v38 }
 0x1b5   : > { %v10716_v60 = vadd.f32 %v8329_v57, %v2348_v5 }
 0x1b6   : > { %v2356_v18 = vadd.f32 %v8223_v14, %v10527_v47 }
 0x1b7   : > { %v8330_v46 = vpop.f32.mrb[80].mxu1 }
 0x1b8   : > { %v8224_v3 = vpop.f32.mrb[84].mxu0  ;;  %v8331_v4 = vpop.f32.mrb[81].mxu1 }
 0x1b9   : > { %v8225_v7 = vpop.f32.mrb[85].mxu0  ;;  %v8332_v21 = vadd.f32 %v8331_v4, %v8330_v46  ;;  %v8333_v22 = vpop.f32.mrb[82].mxu1 }
 0x1ba   : > { %v8226_v23 = vadd.f32 %v8225_v7, %v8224_v3  ;;  %v8227_v27 = vpop.f32.mrb[86].mxu0  ;;  %v8334_v24 = vpop.f32.mrb[83].mxu1 }
 0x1bb   : > { %v8228_v35 = vpop.f32.mrb[87].mxu0  ;;  %v8335_v39 = vadd.f32 %v8334_v24, %v8333_v22  ;;  %v10720_v52 = vadd.f32 %v8332_v21, %v2353_v54 }
 0x1bc   : > { %v8229_v41 = vadd.f32 %v8228_v35, %v8227_v27  ;;  %v2361_v48 = vadd.f32 %v8226_v23, %v10531_v56 }
 0x1bd   : > { %v10723_v63 = vadd.f32 %v8335_v39, %v2356_v18 }
 0x1be   : > { %v2364_v38 = vadd.f32 %v8229_v41, %v10533_v12 }
 0x1bf   : > { %v8336_v47 = vpop.f32.mrb[84].mxu1 }
 0x1c0   : > { %v8230_v2 = vpop.f32.mrb[88].mxu0  ;;  %v8337_v25 = vpop.f32.mrb[85].mxu1 }
 0x1c1   : > { %v8231_v5 = vpop.f32.mrb[89].mxu0  ;;  %v8338_v6 = vadd.f32 %v8337_v25, %v8336_v47  ;;  %v8339_v43 = vpop.f32.mrb[86].mxu1 }
 0x1c2   : > { %v8232_v53 = vadd.f32 %v8231_v5, %v8230_v2  ;;  %v8233_v9 = vpop.f32.mrb[90].mxu0  ;;  %v8340_v11 = vpop.f32.mrb[87].mxu1 }
 0x1c3   : > { %v8234_v28 = vpop.f32.mrb[91].mxu0  ;;  %v8341_v32 = vadd.f32 %v8340_v11, %v8339_v43  ;;  %v10725_v33 = vadd.f32 %v8338_v6, %v2361_v48 }
 0x1c4   : > { %v8235_v37 = vadd.f32 %v8234_v28, %v8233_v9  ;;  %v2369_v56 = vadd.f32 %v8232_v53, %v10537_v61 }
 0x1c5   : > { %v10728_v13 = vadd.f32 %v8341_v32, %v2364_v38 }
 0x1c6   : > { %v2372_v12 = vadd.f32 %v8235_v37, %v10539_v20 }
 0x1c7   : > { %v8342_v57 = vpop.f32.mrb[88].mxu1 }
 0x1c8   : > { %v8236_v14 = vpop.f32.mrb[92].mxu0  ;;  %v8343_v54 = vpop.f32.mrb[89].mxu1 }
 0x1c9   : > { %v8237_v18 = vpop.f32.mrb[93].mxu0  ;;  %v8344_v46 = vadd.f32 %v8343_v54, %v8342_v57  ;;  %v8345_v3 = vpop.f32.mrb[90].mxu1 }
 0x1ca   : > { %v8238_v4 = vadd.f32 %v8237_v18, %v8236_v14  ;;  %v8239_v7 = vpop.f32.mrb[94].mxu0  ;;  %v8346_v21 = vpop.f32.mrb[91].mxu1 }
 0x1cb   : > { %v8240_v22 = vpop.f32.mrb[95].mxu0  ;;  %v8347_v23 = vadd.f32 %v8346_v21, %v8345_v3  ;;  %v10732_v35 = vadd.f32 %v8344_v46, %v2369_v56 }
 0x1cc   : > { %v8241_v27 = vadd.f32 %v8240_v22, %v8239_v7  ;;  %v2377_v24 = vadd.f32 %v8238_v4, %v10543_v16 }
 0x1cd   : > { %v10735_v39 = vadd.f32 %v8347_v23, %v2372_v12 }
 0x1ce   : > { %v2380_v61 = vadd.f32 %v8241_v27, %v10545_v40 }
 0x1cf   : > { %v8348_v20 = vpop.f32.mrb[92].mxu1 }
 0x1d0   : > { %v8242_v41 = vpop.f32.mrb[96].mxu0  ;;  %v8349_v48 = vpop.f32.mrb[93].mxu1 }
 0x1d1   : > { %v8243_v38 = vpop.f32.mrb[97].mxu0  ;;  %v8350_v47 = vadd.f32 %v8349_v48, %v8348_v20  ;;  %v8351_v2 = vpop.f32.mrb[94].mxu1 }
 0x1d2   : > { %v8244_v25 = vadd.f32 %v8243_v38, %v8242_v41  ;;  %v8245_v5 = vpop.f32.mrb[98].mxu0  ;;  %v8352_v6 = vpop.f32.mrb[95].mxu1 }
 0x1d3   : > { %v8246_v43 = vpop.f32.mrb[99].mxu0  ;;  %v8353_v53 = vadd.f32 %v8352_v6, %v8351_v2  ;;  %v10738_v11 = vadd.f32 %v8350_v47, %v2377_v24 }
 0x1d4   : > { %v2385_v9 = vadd.f32 %v8244_v25, %v10549_v1  ;;  %v8247_v16 = vadd.f32 %v8246_v43, %v8245_v5 }
 0x1d5   : > { %v10741_v28 = vadd.f32 %v8353_v53, %v2380_v61 }
 0x1d6   : > { %v2388_v40 = vadd.f32 %v8247_v16, %v10551_v49 }
 0x1d7   : > { %v8354_v32 = vpop.f32.mrb[96].mxu1 }
 0x1d8   : > { %v8248_v37 = vpop.f32.mrb[100].mxu0  ;;  %v8355_v56 = vpop.f32.mrb[97].mxu1 }
 0x1d9   : > { %v8249_v12 = vpop.f32.mrb[101].mxu0  ;;  %v8356_v57 = vadd.f32 %v8355_v56, %v8354_v32  ;;  %v8357_v14 = vpop.f32.mrb[98].mxu1 }
 0x1da   : > { %v8250_v54 = vadd.f32 %v8249_v12, %v8248_v37  ;;  %v8251_v18 = vpop.f32.mrb[102].mxu0  ;;  %v8358_v46 = vpop.f32.mrb[99].mxu1 }
 0x1db   : > { %v8252_v3 = vpop.f32.mrb[103].mxu0  ;;  %v8359_v4 = vadd.f32 %v8358_v46, %v8357_v14  ;;  %v10744_v21 = vadd.f32 %v8356_v57, %v2385_v9 }
 0x1dc   : > { %v2393_v1 = vadd.f32 %v8250_v54, %v10555_v8  ;;  %v8253_v7 = vadd.f32 %v8252_v3, %v8251_v18 }
 0x1dd   : > { %v10747_v22 = vadd.f32 %v8359_v4, %v2388_v40 }
 0x1de   : > { %v2396_v49 = vadd.f32 %v8253_v7, %v10557_v42 }
 0x1df   : > { %v8360_v23 = vpop.f32.mrb[100].mxu1 }
 0x1e0   : > { %v8254_v27 = vpop.f32.mrb[104].mxu0  ;;  %v8361_v24 = vpop.f32.mrb[101].mxu1 }
 0x1e1   : > { %v8255_v61 = vpop.f32.mrb[105].mxu0  ;;  %v8362_v20 = vadd.f32 %v8361_v24, %v8360_v23  ;;  %v8363_v41 = vpop.f32.mrb[102].mxu1 }
 0x1e2   : > { %v8256_v48 = vadd.f32 %v8255_v61, %v8254_v27  ;;  %v8257_v38 = vpop.f32.mrb[106].mxu0  ;;  %v8364_v47 = vpop.f32.mrb[103].mxu1 }
 0x1e3   : > { %v8258_v2 = vpop.f32.mrb[107].mxu0  ;;  %v8365_v25 = vadd.f32 %v8364_v47, %v8363_v41  ;;  %v10750_v6 = vadd.f32 %v8362_v20, %v2393_v1 }
 0x1e4   : > { %v2401_v8 = vadd.f32 %v8256_v48, %v10561_v45  ;;  %v8259_v5 = vadd.f32 %v8258_v2, %v8257_v38 }
 0x1e5   : > { %v10753_v43 = vadd.f32 %v8365_v25, %v2396_v49 }
 0x1e6   : > { %v2404_v42 = vadd.f32 %v8259_v5, %v10564_v0 }
 0x1e7   : > { %v8366_v53 = vpop.f32.mrb[104].mxu1 }
 0x1e8   : > { %v8260_v9 = vpop.f32.mrb[108].mxu0  ;;  %v8367_v16 = vpop.f32.mrb[105].mxu1 }
 0x1e9   : > { %v8261_v40 = vpop.f32.mrb[109].mxu0  ;;  %v8368_v32 = vadd.f32 %v8367_v16, %v8366_v53  ;;  %v8369_v37 = vpop.f32.mrb[106].mxu1 }
 0x1ea   : > { %v8262_v56 = vadd.f32 %v8261_v40, %v8260_v9  ;;  %v8263_v12 = vpop.f32.mrb[110].mxu0  ;;  %v8370_v57 = vpop.f32.mrb[107].mxu1 }
 0x1eb   : > { %v8264_v14 = vpop.f32.mrb[111].mxu0  ;;  %v8371_v54 = vadd.f32 %v8370_v57, %v8369_v37  ;;  %v10756_v46 = vadd.f32 %v8368_v32, %v2401_v8 }
 0x1ec   : > { %v2409_v45 = vadd.f32 %v8262_v56, %v10568_v19  ;;  %v8265_v18 = vadd.f32 %v8264_v14, %v8263_v12 }
 0x1ed   : > { %v10759_v3 = vadd.f32 %v8371_v54, %v2404_v42 }
 0x1ee   : > { %v2412_v0 = vadd.f32 %v8265_v18, %v10570_v62  ;;  %v9512_v18 = vld [vmem:[%s12348_s4 + $0x148] sm:$0xff]  }
 0x1ef   : > { %v8372_v4 = vpop.f32.mrb[108].mxu1 }
 0x1f0   : > { %v8266_v1 = vpop.f32.mrb[112].mxu0  ;;  %v8373_v7 = vpop.f32.mrb[109].mxu1 }
 0x1f1   : > { %v8267_v49 = vpop.f32.mrb[113].mxu0  ;;  %v8374_v23 = vadd.f32 %v8373_v7, %v8372_v4  ;;  %v8375_v27 = vpop.f32.mrb[110].mxu1  ;;  %v9513_v4 = vld [vmem:[%s12348_s4 + $0x108] sm:$0xff]  }
 0x1f2   : > { %v8268_v24 = vadd.f32 %v8267_v49, %v8266_v1  ;;  %v8269_v61 = vpop.f32.mrb[114].mxu0  ;;  %v8376_v20 = vpop.f32.mrb[111].mxu1 }
 0x1f3   : > { %v8270_v41 = vpop.f32.mrb[115].mxu0  ;;  %v8377_v48 = vadd.f32 %v8376_v20, %v8375_v27  ;;  %v10762_v47 = vadd.f32 %v8374_v23, %v2409_v45  ;;  %v9511_v45 = vld [vmem:[%s12348_s4 + $0x100] sm:$0xff]  }
 0x1f4   : > { %v2417_v19 = vadd.f32 %v8268_v24, %v10574_v34  ;;  %v8271_v38 = vadd.f32 %v8270_v41, %v8269_v61 }
 0x1f5   : > { %v10765_v2 = vadd.f32 %v8377_v48, %v2412_v0 }
 0x1f6   : > { %v2420_v62 = vadd.f32 %v8271_v38, %v10576_v50  ;;  %v9510_v50 = vld [vmem:[%s12348_s4 + $0x140] sm:$0xff]   ;;  %v9514_v38 = vld [vmem:[%s12348_s4 + $0x150] sm:$0xff]  }
 0x1f7   : > { %v8378_v25 = vpop.f32.mrb[112].mxu1  ;;  %8650 = vmatprep.subr.bf16.mxu1 %v9510_v50 }
 0x1f8   : > { %v8272_v8 = vpop.f32.mrb[116].mxu0  ;;  %v8379_v5 = vpop.f32.mrb[113].mxu1  ;;  %8651 = vmatpush3.bf16.msra.mxu1 %v9511_v45 }
 0x1f9   : > { %v8273_v42 = vpop.f32.mrb[117].mxu0  ;;  %v8380_v53 = vadd.f32 %v8379_v5, %v8378_v25  ;;  %v8381_v9 = vpop.f32.mrb[114].mxu1  ;;  %8652 = vmatprep.subr.bf16.mxu1 %v9512_v18  ;;  %v9518_v5 = vld [vmem:[%s12348_s4 + $0x158] sm:$0xff]  }
 0x1fa   : > { %v8274_v16 = vadd.f32 %v8273_v42, %v8272_v8  ;;  %v8275_v40 = vpop.f32.mrb[118].mxu0  ;;  %v8382_v32 = vpop.f32.mrb[115].mxu1 }
 0x1fb   : > { %v8276_v37 = vpop.f32.mrb[119].mxu0  ;;  %v8383_v56 = vadd.f32 %v8382_v32, %v8381_v9  ;;  %v10768_v57 = vadd.f32 %v8380_v53, %v2417_v19  ;;  %v9520_v9 = vld [vmem:[%s12348_s4 + $0x118] sm:$0xff]  }
 0x1fc   : > { %v2425_v34 = vadd.f32 %v8274_v16, %v10592_v51  ;;  %v8277_v12 = vadd.f32 %v8276_v37, %v8275_v40  ;;  %8653 = vmatpush3.bf16.msra.mxu1 %v9513_v4 }
 0x1fd   : > { %v10774_v54 = vadd.f32 %v8383_v56, %v2420_v62  ;;  %v9515_v62 = vld [vmem:[%s12348_s4 + $0x1c0] sm:$0xff]   ;;  %8654 = vmatprep.subr.bf16.mxu1 %v9514_v38 }
 0x1fe   : > { %v2428_v14 = vadd.f32 %v8277_v12, %v10594_v10  ;;  %8762 = vmatprep.subr.bf16.mxu0 %v9515_v62 }
 0x1ff   : > { %v8384_v51 = vpop.f32.mrb[116].mxu1 }
 0x200   : > { %v8278_v0 = vpop.f32.mrb[120].mxu0  ;;  %v8385_v1 = vpop.f32.mrb[117].mxu1 }
 0x201   : > { %v8279_v10 = vpop.f32.mrb[121].mxu0  ;;  %v8386_v7 = vadd.f32 %v8385_v1, %v8384_v51  ;;  %v8387_v49 = vpop.f32.mrb[118].mxu1  ;;  %v9522_v51 = vld [vmem:[%s12348_s4 + $0x160] sm:$0xff]  }
 0x202   : > { %v8280_v23 = vadd.f32 %v8279_v10, %v8278_v0  ;;  %v8281_v27 = vpop.f32.mrb[122].mxu0  ;;  %v8388_v24 = vpop.f32.mrb[119].mxu1  ;;  %v9524_v1 = vld [vmem:[%s12348_s4 + $0x120] sm:$0xff]  }
 0x203   : > { %v8282_v61 = vpop.f32.mrb[123].mxu0  ;;  %v8389_v20 = vadd.f32 %v8388_v24, %v8387_v49  ;;  %v10786_v19 = vadd.f32 %v8386_v7, %v2425_v34  ;;  %v9528_v49 = vld [vmem:[%s12348_s4 + $0x128] sm:$0xff]  }
 0x204   : > { %v2433_v41 = vadd.f32 %v8280_v23, %v10616_v44  ;;  %v8283_v48 = vadd.f32 %v8282_v61, %v8281_v27  ;;  %v9516_v44 = vld [vmem:[%s12348_s4 + $0x110] sm:$0xff]  }
 0x205   : > { %v10795_v8 = vadd.f32 %v8389_v20, %v2428_v14  ;;  %8655 = vmatpush3.bf16.msra.mxu1 %v9516_v44  ;;  %v2803_v20 = vld [vmem:[%s12345_s1 + $0x10] sm:$0xff] }
 0x206   : > { %v2436_v25 = vadd.f32 %v8283_v48, %v10621_v59  ;;  %8656 = vmatprep.subr.bf16.mxu1 %v9518_v5 }
 0x207   : > { %v8390_v42 = vpop.f32.mrb[120].mxu1 }
 0x208   : > { %v8284_v53 = vpop.f32.mrb[124].mxu0  ;;  %v8391_v59 = vpop.f32.mrb[121].mxu1 }
 0x209   : > { %v8285_v16 = vpop.f32.mrb[125].mxu0  ;;  %v8392_v40 = vadd.f32 %v8391_v59, %v8390_v42  ;;  %v8393_v32 = vpop.f32.mrb[122].mxu1  ;;  %8657 = vmatpush3.bf16.msra.mxu1 %v9520_v9 }
 0x20a   : > { %v8286_v37 = vadd.f32 %v8285_v16, %v8284_v53  ;;  %v8287_v56 = vpop.f32.mrb[126].mxu0  ;;  %v8394_v34 = vpop.f32.mrb[123].mxu1  ;;  %8658 = vmatprep.subr.bf16.mxu1 %v9522_v51  ;;  %v2804_v53 = vld [vmem:[%s12345_s1 + $0x18] sm:$0xff] }
 0x20b   : > { %v8288_v12 = vpop.f32.mrb[127].mxu0  ;;  %v8395_v50 = vadd.f32 %v8394_v34, %v8393_v32  ;;  %v10807_v18 = vadd.f32 %v8392_v40, %v2433_v41  ;;  %v2802_v40 = vld [vmem:[%s12345_s1 + $0x8] sm:$0xff]  ;;  %v9534_v34 = vld [vmem:[%s12348_s4 + $0x178] sm:$0xff]  }
 0x20c   : > { %v2441_v14 = vadd.f32 %v8286_v37, %v10646_v55  ;;  %v8289_v45 = vadd.f32 %v8288_v12, %v8287_v56  ;;  %v9526_v55 = vld [vmem:[%s12348_s4 + $0x168] sm:$0xff]  }
 0x20d   : > { %v10813_v4 = vadd.f32 %v8395_v50, %v2436_v25  ;;  %8659 = vmatpush3.bf16.msra.mxu1 %v9524_v1  ;;  %v2801_v25 = vld [vmem:[%s12345_s1] sm:$0xff]  ;;  %v2807_v1 = vld [vmem:[%s12345_s1 + $0x30] sm:$0xff] }
 0x20e   : > { %v2444_v0 = vadd.f32 %v8289_v45, %v10652_v36  ;;  %8660 = vmatprep.subr.bf16.mxu1 %v9526_v55  ;;  %v9536_v45 = vld [vmem:[%s12348_s4 + $0x138] sm:$0xff]  }
 0x20f   : > { %v8396_v10 = vpop.f32.mrb[124].mxu1 }
 0x210   : > { %v9230_v7 = vpop.f32.mrb[128].mxu0  ;;  %v8397_v23 = vpop.f32.mrb[125].mxu1 }
 0x211   : > { %v2651_v36 = vadd.f32 %v9230_v7, %v10695_v31  ;;  %v2642_v27 = vpop.f32.mrb[129].mxu0  ;;  %v8398_v24 = vadd.f32 %v8397_v23, %v8396_v10  ;;  %v8399_v61 = vpop.f32.mrb[126].mxu1  ;;  %8661 = vmatpush3.bf16.msra.mxu1 %v9528_v49  ;;  %v2805_v49 = vld [vmem:[%s12345_s1 + $0x20] sm:$0xff] }
 0x212   : > { %v2643_v41 = vadd.f32 %v2642_v27, %v10677_v15  ;;  %v9231_v48 = vpop.f32.mrb[130].mxu0  ;;  %v8400_v38 = vpop.f32.mrb[127].mxu1  ;;  %v2808_v27 = vld [vmem:[%s12345_s1 + $0x38] sm:$0xff] }
 0x213   : > { %v2771_v62 = vmax.f32 %v2651_v36, 0.0  ;;  %v2654_v44 = vadd.f32 %v9231_v48, %v10701_v29  ;;  %v2645_v31 = vpop.f32.mrb[131].mxu0  ;;  %v8401_v5 = vadd.f32 %v8400_v38, %v8399_v61  ;;  %v10837_v15 = vadd.f32 %v8398_v24, %v2441_v14  ;;  %v9530_v29 = vld [vmem:[%s12348_s4 + $0x170] sm:$0xff]   ;;  %v3026_v38 = vld [vmem:[#allocation2 + $0x2] sm:$0xff] }
 0x214   : > { %v2769_v42 = vmax.f32 %v2643_v41, 0.0  ;;  %v2646_v9 = vadd.f32 %v2645_v31, %v10683_v17  ;;  %v9532_v17 = vld [vmem:[%s12348_s4 + $0x130] sm:$0xff]   ;;  %8662 = vmatprep.subr.bf16.mxu1 %v9530_v29 }
 0x215   : > { %v2835_v59 = vadd.f32 %v2803_v20, %v2771_v62  ;;  %v2772_v16 = vmax.f32 %v2654_v44, 0.0  ;;  %v10845_v56 = vadd.f32 %v8401_v5, %v2444_v0  ;;  %8663 = vmatpush3.bf16.msra.mxu1 %v9532_v17  ;;  %v2806_v20 = vld [vmem:[%s12345_s1 + $0x28] sm:$0xff]  ;;  %v2811_v29 = vld [vmem:[%s12345_s1 + $0x50] sm:$0xff] }
 0x216   : > { %v2833_v32 = vadd.f32 %v2801_v25, %v2769_v42  ;;  %v2770_v37 = vmax.f32 %v2646_v9, 0.0  ;;  %8664 = vmatprep.subr.bf16.mxu1 %v9534_v34  ;;  %v3027_v62 = vld [vmem:[#allocation2 + $0xa] sm:$0xff] }
 0x217   : > { %v2836_v12 = vadd.f32 %v2804_v53, %v2772_v16  ;;  %2868 = vst.msk [vmem:[#allocation2 + $0x31] sm:$0xff] %vm2865_vm1, %v2835_v59  ;;  %v3058_v16 = vpack.c.bf16 %v3027_v62, %v3026_v38 }
 0x218   : > { %v2834_v50 = vadd.f32 %v2802_v40, %v2770_v37  ;;  %v9234_v14 = vpop.f32.mrb[132].mxu0  ;;  %2866 = vst.msk [vmem:[#allocation2 + $0x19] sm:$0xff] %vm2865_vm1, %v2833_v32  ;;  %v2809_v37 = vld [vmem:[%s12345_s1 + $0x40] sm:$0xff] }
 0x219   : > { %v2667_v51 = vadd.f32 %v9234_v14, %v10713_v30  ;;  %v2658_v0 = vpop.f32.mrb[133].mxu0  ;;  %2869 = vst.msk [vmem:[#allocation2 + $0x39] sm:$0xff] %vm2865_vm1, %v2836_v12  ;;  %8665 = vmatpush3.bf16.msra.mxu1 %v9536_v45 }
 0x21a   : > { %v2659_v55 = vadd.f32 %v2658_v0, %v10708_v58  ;;  %v9235_v10 = vpop.f32.mrb[134].mxu0  ;;  %2867 = vst.msk [vmem:[#allocation2 + $0x21] sm:$0xff] %vm2865_vm1, %v2834_v50  ;;  %v9517_v0 = vld [vmem:[%s12348_s4 + $0x180] sm:$0xff]  }
 0x21b   : > { %v2775_v7 = vmax.f32 %v2667_v51, 0.0  ;;  %v2670_v30 = vadd.f32 %v9235_v10, %v10716_v60  ;;  %v2661_v23 = vpop.f32.mrb[135].mxu0 }
 0x21c   : > { %v2773_v36 = vmax.f32 %v2659_v55, 0.0  ;;  %v2662_v24 = vadd.f32 %v2661_v23, %v10711_v26  ;;  %v2810_v23 = vld [vmem:[%s12345_s1 + $0x48] sm:$0xff] }
 0x21d   : > { %v2839_v58 = vadd.f32 %v2807_v1, %v2775_v7  ;;  %v2776_v61 = vmax.f32 %v2670_v30, 0.0  ;;  %v2812_v1 = vld [vmem:[%s12345_s1 + $0x58] sm:$0xff] }
 0x21e   : > { %v2837_v41 = vadd.f32 %v2805_v49, %v2773_v36  ;;  %v2774_v48 = vmax.f32 %v2662_v24, 0.0  ;;  %v2966_v45 = vld [vmem:[#allocation2 + $0x31] sm:$0xff]  ;;  %v9521_v24 = vld [vmem:[%s12348_s4 + $0x188] sm:$0xff]  }
 0x21f   : > { %v2840_v60 = vadd.f32 %v2808_v27, %v2776_v61  ;;  %2872 = vst.msk [vmem:[#allocation2 + $0x61] sm:$0xff] %vm2865_vm1, %v2839_v58  ;;  %v2964_v31 = vld [vmem:[#allocation2 + $0x19] sm:$0xff]  ;;  %v3092_v51 = vld [vmem:[#allocation2 + $0x30] sm:$0xff] }
 0x220   : > { %v2838_v25 = vadd.f32 %v2806_v20, %v2774_v48  ;;  %v9238_v44 = vpop.f32.mrb[136].mxu0  ;;  %2870 = vst.msk [vmem:[#allocation2 + $0x49] sm:$0xff] %vm2865_vm1, %v2837_v41  ;;  %v3090_v26 = vld [vmem:[#allocation2 + $0x18] sm:$0xff]  ;;  %v9523_v48 = vld [vmem:[%s12348_s4 + $0x1d0] sm:$0xff]  }
 0x221   : > { %v2967_v5 = vld [vmem:[#allocation2 + $0x39] sm:$0xff]  ;;  %v2683_v42 = vadd.f32 %v9238_v44, %v10725_v33  ;;  %v2674_v53 = vpop.f32.mrb[137].mxu0  ;;  %v2965_v9 = vld [vmem:[#allocation2 + $0x21] sm:$0xff]  ;;  %2873 = vst.msk [vmem:[#allocation2 + $0x69] sm:$0xff] %vm2865_vm1, %v2840_v60  ;;  %v2815_v44 = vld [vmem:[%s12345_s1 + $0x70] sm:$0xff] }
 0x222   : > { %v3091_v59 = vld [vmem:[#allocation2 + $0x20] sm:$0xff]  ;;  %v3093_v40 = vld [vmem:[#allocation2 + $0x38] sm:$0xff]  ;;  %v2675_v32 = vadd.f32 %v2674_v53, %v10720_v52  ;;  %v9239_v17 = vpop.f32.mrb[138].mxu0  ;;  %v2995_v34 = vpack.c.bf16 %v2965_v9, %v2964_v31  ;;  %2871 = vst.msk [vmem:[#allocation2 + $0x51] sm:$0xff] %vm2865_vm1, %v2838_v25  ;;  %v10896_v10 = vpack.c.bf16 %v2967_v5, %v2966_v45 }
 0x223   : > { %v3122_v33 = vpack.c.bf16 %v3091_v59, %v3090_v26  ;;  %v2779_v12 = vmax.f32 %v2683_v42, 0.0  ;;  %v2686_v50 = vadd.f32 %v9239_v17, %v10728_v13  ;;  %v2677_v14 = vpop.f32.mrb[139].mxu0  ;;  %v3123_v7 = vpack.c.bf16 %v3093_v40, %v3092_v51  ;;  %v9519_v13 = vld [vmem:[%s12348_s4 + $0x1c8] sm:$0xff]   ;;  %v3028_v20 = vld [vmem:[#allocation2 + $0x1a] sm:$0xff]  ;;  %v9525_v40 = vld [vmem:[%s12348_s4 + $0x190] sm:$0xff]  }
 0x224   : > { %v2777_v52 = vmax.f32 %v2675_v32, 0.0  ;;  %v2678_v55 = vadd.f32 %v2677_v14, %v10723_v63  ;;  %4241 = vmatprep.mubr.bf16.mxu1 %v2995_v34  ;;  %v3029_v41 = vld [vmem:[#allocation2 + $0x22] sm:$0xff]  ;;  %v9527_v17 = vld [vmem:[%s12348_s4 + $0x1d8] sm:$0xff]  }
 0x225   : > { %4394 = vmatprep.mubr.bf16.mxu0 %v3122_v33  ;;  %v2843_v49 = vadd.f32 %v2811_v29, %v2779_v12  ;;  %v2780_v30 = vmax.f32 %v2686_v50, 0.0  ;;  %4242 = vmatmul.mubr.bf16.gmra.mrb[132].mxu1 %v3122_v33  ;;  %v2813_v26 = vld [vmem:[%s12345_s1 + $0x60] sm:$0xff]  ;;  %v10924_v9 = vpack.c.bf16 %v3029_v41, %v3028_v20  ;;  %v2814_v12 = vld [vmem:[%s12345_s1 + $0x68] sm:$0xff]  ;;  %v9529_v45 = vld [vmem:[%s12348_s4 + $0x198] sm:$0xff]  }
 0x226   : > { %4395 = vmatmul.mubr.bf16.vlgmr.msra.gmra.mrb[160].mxu0 %v3058_v16  ;;  %v2841_v36 = vadd.f32 %v2809_v37, %v2777_v52  ;;  %v2778_v27 = vmax.f32 %v2678_v55, 0.0  ;;  %4249 = vmatprep.mubr.bf16.mxu1 %v10896_v10  ;;  %v3030_v52 = vld [vmem:[#allocation2 + $0x32] sm:$0xff]  ;;  %v9531_v55 = vld [vmem:[%s12348_s4 + $0x1e0] sm:$0xff]  }
 0x227   : > { %4402 = vmatprep.mubr.bf16.mxu0 %v3123_v7  ;;  %v2844_v63 = vadd.f32 %v2812_v1, %v2780_v30  ;;  %2876 = vst.msk [vmem:[#allocation2 + $0x91] sm:$0xff] %vm2865_vm1, %v2843_v49  ;;  %8763 = vmatpush3.bf16.msra.mxu0 %v9517_v0  ;;  %v2968_v59 = vld [vmem:[#allocation2 + $0x49] sm:$0xff]  ;;  %v3031_v1 = vld [vmem:[#allocation2 + $0x3a] sm:$0xff] }
 0x228   : > { %v2842_v58 = vadd.f32 %v2810_v23, %v2778_v27  ;;  %2874 = vst.msk [vmem:[#allocation2 + $0x79] sm:$0xff] %vm2865_vm1, %v2841_v36  ;;  %v9242_v61 = vpop.f32.mrb[140].mxu0  ;;  %8764 = vmatprep.subr.bf16.mxu0 %v9519_v13  ;;  %v3094_v16 = vld [vmem:[#allocation2 + $0x48] sm:$0xff]  ;;  %v2819_v23 = vld [vmem:[%s12345_s1 + $0x90] sm:$0xff]  ;;  %v2817_v27 = vld [vmem:[%s12345_s1 + $0x80] sm:$0xff] }
 0x229   : > { %2877 = vst.msk [vmem:[#allocation2 + $0x99] sm:$0xff] %vm2865_vm1, %v2844_v63  ;;  %v2699_v38 = vadd.f32 %v9242_v61, %v10738_v11  ;;  %v2690_v62 = vpop.f32.mrb[141].mxu0  ;;  %v2969_v60 = vld [vmem:[#allocation2 + $0x51] sm:$0xff]  ;;  %v2971_v49 = vld [vmem:[#allocation2 + $0x69] sm:$0xff]  ;;  %v10965_v61 = vpack.c.bf16 %v3031_v1, %v3030_v52  ;;  %v2970_v20 = vld [vmem:[#allocation2 + $0x61] sm:$0xff] }
 0x22a   : > { %v3095_v25 = vld [vmem:[#allocation2 + $0x50] sm:$0xff]  ;;  %2875 = vst.msk [vmem:[#allocation2 + $0x81] sm:$0xff] %vm2865_vm1, %v2842_v58  ;;  %v2691_v31 = vadd.f32 %v2690_v62, %v10732_v35  ;;  %v9243_v5 = vpop.f32.mrb[142].mxu0  ;;  %v2816_v35 = vld [vmem:[%s12345_s1 + $0x78] sm:$0xff]  ;;  %v10933_v37 = vpack.c.bf16 %v2969_v60, %v2968_v59  ;;  %v3097_v30 = vld [vmem:[#allocation2 + $0x68] sm:$0xff]  ;;  %v10974_v60 = vpack.c.bf16 %v2971_v49, %v2970_v20 }
 0x22b   : > { %v2783_v42 = vmax.f32 %v2699_v38, 0.0  ;;  %v2702_v53 = vadd.f32 %v9243_v5, %v10741_v28  ;;  %v2693_v11 = vpop.f32.mrb[143].mxu0  ;;  %8765 = vmatpush3.bf16.msra.mxu0 %v9521_v24  ;;  %v10935_v28 = vpack.c.bf16 %v3095_v25, %v3094_v16  ;;  %v3096_v41 = vld [vmem:[#allocation2 + $0x60] sm:$0xff]  ;;  %v9535_v25 = vld [vmem:[%s12348_s4 + $0x1e8] sm:$0xff]   ;;  %v9539_v1 = vld [vmem:[%s12348_s4 + $0x1b0] sm:$0xff]  }
 0x22c   : > { %v2781_v29 = vmax.f32 %v2691_v31, 0.0  ;;  %v2694_v32 = vadd.f32 %v2693_v11, %v10735_v39  ;;  %8766 = vmatprep.subr.bf16.mxu0 %v9523_v48  ;;  %v9533_v48 = vld [vmem:[%s12348_s4 + $0x1a0] sm:$0xff]   ;;  %v3032_v16 = vld [vmem:[#allocation2 + $0x4a] sm:$0xff]  ;;  %v9540_v49 = vld [vmem:[%s12348_s4 + $0x1f8] sm:$0xff]  }
 0x22d   : > { %v2847_v34 = vadd.f32 %v2815_v44, %v2783_v42  ;;  %v2784_v33 = vmax.f32 %v2702_v53, 0.0  ;;  %4250 = vmatmul.mubr.bf16.gmra.mrb[136].mxu1 %v3123_v7  ;;  %v9537_v53 = vld [vmem:[%s12348_s4 + $0x1a8] sm:$0xff]  }
 0x22e   : > { %4403 = vmatmul.mubr.bf16.gmra.mrb[164].mxu0 %v10924_v9  ;;  %v2845_v50 = vadd.f32 %v2813_v26, %v2781_v29  ;;  %v2782_v39 = vmax.f32 %v2694_v32, 0.0  ;;  %4257 = vmatprep.mubr.bf16.mxu1 %v10933_v37  ;;  %v2818_v26 = vld [vmem:[%s12345_s1 + $0x88] sm:$0xff]  ;;  %v9538_v29 = vld [vmem:[%s12348_s4 + $0x1f0] sm:$0xff]  }
 0x22f   : > { %4410 = vmatprep.mubr.bf16.mxu0 %v10935_v28  ;;  %2880 = vst.msk [vmem:[#allocation2 + $0xc1] sm:$0xff] %vm2865_vm1, %v2847_v34  ;;  %v2848_v14 = vadd.f32 %v2816_v35, %v2784_v33  ;;  %8767 = vmatpush3.bf16.msra.mxu0 %v9525_v40  ;;  %v3033_v40 = vld [vmem:[#allocation2 + $0x52] sm:$0xff]  ;;  %v3034_v20 = vld [vmem:[#allocation2 + $0x62] sm:$0xff] }
 0x230   : > { %2878 = vst.msk [vmem:[#allocation2 + $0xa9] sm:$0xff] %vm2865_vm1, %v2845_v50  ;;  %v2846_v51 = vadd.f32 %v2814_v12, %v2782_v39  ;;  %v9246_v0 = vpop.f32.mrb[144].mxu0  ;;  %8768 = vmatprep.subr.bf16.mxu0 %v9527_v17  ;;  %v2823_v33 = vld [vmem:[%s12345_s1 + $0xb0] sm:$0xff]  ;;  %v2821_v50 = vld [vmem:[%s12345_s1 + $0xa0] sm:$0xff]  ;;  %v3098_v52 = vld [vmem:[#allocation2 + $0x78] sm:$0xff] }
 0x231   : > { %2881 = vst.msk [vmem:[#allocation2 + $0xc9] sm:$0xff] %vm2865_vm1, %v2848_v14  ;;  %v2715_v7 = vadd.f32 %v9246_v0, %v10750_v6  ;;  %v2706_v13 = vpop.f32.mrb[145].mxu0  ;;  %v2973_v17 = vld [vmem:[#allocation2 + $0x81] sm:$0xff]  ;;  %v2972_v0 = vld [vmem:[#allocation2 + $0x79] sm:$0xff] }
 0x232   : > { %2879 = vst.msk [vmem:[#allocation2 + $0xb1] sm:$0xff] %vm2865_vm1, %v2846_v51  ;;  %v2707_v36 = vadd.f32 %v2706_v13, %v10744_v21  ;;  %v9247_v63 = vpop.f32.mrb[146].mxu0  ;;  %v2820_v21 = vld [vmem:[%s12345_s1 + $0x98] sm:$0xff]  ;;  %v3099_v34 = vld [vmem:[#allocation2 + $0x80] sm:$0xff]  ;;  %v11007_v51 = vpack.c.bf16 %v3033_v40, %v3032_v16  ;;  %v11016_v13 = vpack.c.bf16 %v2973_v17, %v2972_v0 }
 0x233   : > { %v2787_v24 = vmax.f32 %v2715_v7, 0.0  ;;  %v2718_v58 = vadd.f32 %v9247_v63, %v10753_v43  ;;  %v2709_v6 = vpop.f32.mrb[147].mxu0  ;;  %8769 = vmatpush3.bf16.msra.mxu0 %v9529_v45  ;;  %v10976_v43 = vpack.c.bf16 %v3097_v30, %v3096_v41  ;;  %v3035_v41 = vld [vmem:[#allocation2 + $0x6a] sm:$0xff]  ;;  %v2828_v16 = vld [vmem:[%s12345_s1 + $0xd8] sm:$0xff] }
 0x234   : > { %v2785_v38 = vmax.f32 %v2707_v36, 0.0  ;;  %v2710_v62 = vadd.f32 %v2709_v6, %v10747_v22  ;;  %8770 = vmatprep.subr.bf16.mxu0 %v9531_v55  ;;  %v2822_v36 = vld [vmem:[%s12345_s1 + $0xa8] sm:$0xff] }
 0x235   : > { %v2851_v44 = vadd.f32 %v2819_v23, %v2787_v24  ;;  %v2788_v31 = vmax.f32 %v2718_v58, 0.0  ;;  %4258 = vmatmul.mubr.bf16.gmra.mrb[140].mxu1 %v10935_v28  ;;  %v9541_v24 = vld [vmem:[%s12348_s4 + $0x1b8] sm:$0xff]  }
 0x236   : > { %4411 = vmatmul.mubr.bf16.gmra.mrb[168].mxu0 %v10965_v61  ;;  %v2849_v22 = vadd.f32 %v2817_v27, %v2785_v38  ;;  %v2786_v5 = vmax.f32 %v2710_v62, 0.0  ;;  %4265 = vmatprep.mubr.bf16.mxu1 %v10974_v60  ;;  %v3101_v62 = vld [vmem:[#allocation2 + $0x98] sm:$0xff] }
 0x237   : > { %4418 = vmatprep.mubr.bf16.mxu0 %v10976_v43  ;;  %2884 = vst.msk [vmem:[#allocation2 + $0xf1] sm:$0xff] %vm2865_vm1, %v2851_v44  ;;  %v2852_v42 = vadd.f32 %v2820_v21, %v2788_v31  ;;  %8771 = vmatpush3.bf16.msra.mxu0 %v9533_v48  ;;  %v2975_v21 = vld [vmem:[#allocation2 + $0x99] sm:$0xff] }
 0x238   : > { %2882 = vst.msk [vmem:[#allocation2 + $0xd9] sm:$0xff] %vm2865_vm1, %v2849_v22  ;;  %v2850_v11 = vadd.f32 %v2818_v26, %v2786_v5  ;;  %v9250_v59 = vpop.f32.mrb[148].mxu0  ;;  %8772 = vmatprep.subr.bf16.mxu0 %v9535_v25  ;;  %v2827_v25 = vld [vmem:[%s12345_s1 + $0xd0] sm:$0xff]  ;;  %v2825_v22 = vld [vmem:[%s12345_s1 + $0xc0] sm:$0xff] }
 0x239   : > { %2885 = vst.msk [vmem:[#allocation2 + $0xf9] sm:$0xff] %vm2865_vm1, %v2852_v42  ;;  %v2731_v35 = vadd.f32 %v9250_v59, %v10762_v47  ;;  %v2722_v32 = vpop.f32.mrb[149].mxu0  ;;  %v11046_v42 = vpack.c.bf16 %v3035_v41, %v3034_v20  ;;  %v3103_v0 = vld [vmem:[#allocation2 + $0xb0] sm:$0xff] }
 0x23a   : > { %2883 = vst.msk [vmem:[#allocation2 + $0xe1] sm:$0xff] %vm2865_vm1, %v2850_v11  ;;  %v2723_v12 = vadd.f32 %v2722_v32, %v10756_v46  ;;  %v9251_v39 = vpop.f32.mrb[150].mxu0  ;;  %v2824_v46 = vld [vmem:[%s12345_s1 + $0xb8] sm:$0xff]  ;;  %v3100_v11 = vld [vmem:[#allocation2 + $0x90] sm:$0xff] }
 0x23b   : > { %v2791_v14 = vmax.f32 %v2731_v35, 0.0  ;;  %v2734_v45 = vadd.f32 %v9251_v39, %v10765_v2  ;;  %v2725_v47 = vpop.f32.mrb[151].mxu0  ;;  %8773 = vmatpush3.bf16.msra.mxu0 %v9537_v53  ;;  %v11018_v2 = vpack.c.bf16 %v3099_v34, %v3098_v52  ;;  %v2974_v53 = vld [vmem:[#allocation2 + $0x91] sm:$0xff]  ;;  %v3037_v39 = vld [vmem:[#allocation2 + $0x82] sm:$0xff] }
 0x23c   : > { %v2789_v55 = vmax.f32 %v2723_v12, 0.0  ;;  %v2726_v7 = vadd.f32 %v2725_v47, %v10759_v3  ;;  %8774 = vmatprep.subr.bf16.mxu0 %v9538_v29  ;;  %v11052_v40 = vpack.c.bf16 %v2975_v21, %v2974_v53  ;;  %v11054_v29 = vpack.c.bf16 %v3101_v62, %v3100_v11  ;;  %v2977_v47 = vld [vmem:[#allocation2 + $0xb1] sm:$0xff]  ;;  %v3039_v21 = vld [vmem:[#allocation2 + $0x9a] sm:$0xff]  ;;  %v2979_v62 = vld [vmem:[#allocation2 + $0xc9] sm:$0xff] }
 0x23d   : > { %v2855_v30 = vadd.f32 %v2823_v33, %v2791_v14  ;;  %v2792_v23 = vmax.f32 %v2734_v45, 0.0  ;;  %4266 = vmatmul.mubr.bf16.gmra.mrb[144].mxu1 %v10976_v43  ;;  %v2831_v52 = vld [vmem:[%s12345_s1 + $0xf0] sm:$0xff] }
 0x23e   : > { %4419 = vmatmul.mubr.bf16.gmra.mrb[172].mxu0 %v11007_v51  ;;  %v2853_v3 = vadd.f32 %v2821_v50, %v2789_v55  ;;  %v2790_v27 = vmax.f32 %v2726_v7, 0.0  ;;  %4273 = vmatprep.mubr.bf16.mxu1 %v11016_v13  ;;  %v3036_v50 = vld [vmem:[#allocation2 + $0x7a] sm:$0xff]  ;;  %v3041_v53 = vld [vmem:[#allocation2 + $0xb2] sm:$0xff] }
 0x23f   : > { %4426 = vmatprep.mubr.bf16.mxu0 %v11018_v2  ;;  %2888 = vst.msk [vmem:[#allocation2 + $0x121] sm:$0xff] %vm2865_vm1, %v2855_v30  ;;  %v2856_v63 = vadd.f32 %v2824_v46, %v2792_v23  ;;  %8775 = vmatpush3.bf16.msra.mxu0 %v9539_v1  ;;  %v2829_v7 = vld [vmem:[%s12345_s1 + $0xe0] sm:$0xff]  ;;  %v11076_v30 = vpack.c.bf16 %v3037_v39, %v3036_v50  ;;  %v2976_v23 = vld [vmem:[#allocation2 + $0xa9] sm:$0xff]  ;;  %v2982_v50 = vld [vmem:[#allocation2 + $0xf1] sm:$0xff] }
 0x240   : > { %2886 = vst.msk [vmem:[#allocation2 + $0x109] sm:$0xff] %vm2865_vm1, %v2853_v3  ;;  %v2854_v58 = vadd.f32 %v2822_v36, %v2790_v27  ;;  %v9254_v6 = vpop.f32.mrb[152].mxu0  ;;  %8776 = vmatprep.subr.bf16.mxu0 %v9540_v49  ;;  %v3102_v36 = vld [vmem:[#allocation2 + $0xa8] sm:$0xff]  ;;  %v2832_v27 = vld [vmem:[%s12345_s1 + $0xf8] sm:$0xff]  ;;  %v3108_v39 = vld [vmem:[#allocation2 + $0xf0] sm:$0xff] }
 0x241   : > { %2889 = vst.msk [vmem:[#allocation2 + $0x129] sm:$0xff] %vm2865_vm1, %v2856_v63  ;;  %v2747_v48 = vadd.f32 %v9254_v6, %v10786_v19  ;;  %v2738_v38 = vpop.f32.mrb[153].mxu0  ;;  %v11082_v63 = vpack.c.bf16 %v2977_v47, %v2976_v23  ;;  %v2981_v11 = vld [vmem:[#allocation2 + $0xe1] sm:$0xff]  ;;  %v3046_v23 = vld [vmem:[#allocation2 + $0xf2] sm:$0xff] }
 0x242   : > { %2887 = vst.msk [vmem:[#allocation2 + $0x111] sm:$0xff] %vm2865_vm1, %v2854_v58  ;;  %v2739_v44 = vadd.f32 %v2738_v38, %v10768_v57  ;;  %v9255_v31 = vpop.f32.mrb[154].mxu0  ;;  %v3038_v38 = vld [vmem:[#allocation2 + $0x92] sm:$0xff]  ;;  %v3044_v47 = vld [vmem:[#allocation2 + $0xda] sm:$0xff] }
 0x243   : > { %v2795_v26 = vmax.f32 %v2747_v48, 0.0  ;;  %v2750_v5 = vadd.f32 %v9255_v31, %v10795_v8  ;;  %v2741_v19 = vpop.f32.mrb[155].mxu0  ;;  %8777 = vmatpush3.bf16.msra.mxu0 %v9541_v24  ;;  %v2826_v8 = vld [vmem:[%s12345_s1 + $0xc8] sm:$0xff]  ;;  %v11084_v24 = vpack.c.bf16 %v3103_v0, %v3102_v36  ;;  %v3047_v36 = vld [vmem:[#allocation2 + $0xfa] sm:$0xff] }
 0x244   : > { %v2793_v59 = vmax.f32 %v2739_v44, 0.0  ;;  %v2742_v57 = vadd.f32 %v2741_v19, %v10774_v54  ;;  %v11097_v44 = vpack.c.bf16 %v3039_v21, %v3038_v38  ;;  %v2978_v31 = vld [vmem:[#allocation2 + $0xc1] sm:$0xff]  ;;  %v3040_v19 = vld [vmem:[#allocation2 + $0xaa] sm:$0xff] }
 0x245   : > { %v2859_v35 = vadd.f32 %v2827_v25, %v2795_v26  ;;  %v2796_v32 = vmax.f32 %v2750_v5, 0.0  ;;  %4274 = vmatmul.mubr.bf16.gmra.mrb[148].mxu1 %v11018_v2  ;;  %v3105_v25 = vld [vmem:[#allocation2 + $0xc8] sm:$0xff]  ;;  %v3104_v26 = vld [vmem:[#allocation2 + $0xc0] sm:$0xff] }
 0x246   : > { %4427 = vmatmul.mubr.bf16.gmra.mrb[176].mxu0 %v11046_v42  ;;  %v2857_v17 = vadd.f32 %v2825_v22, %v2793_v59  ;;  %v2794_v34 = vmax.f32 %v2742_v57, 0.0  ;;  %4281 = vmatprep.mubr.bf16.mxu1 %v11052_v40  ;;  %v11099_v22 = vpack.c.bf16 %v2979_v62, %v2978_v31  ;;  %v11101_v5 = vpack.c.bf16 %v3105_v25, %v3104_v26  ;;  %v3107_v59 = vld [vmem:[#allocation2 + $0xe0] sm:$0xff] }
 0x247   : > { %4434 = vmatprep.mubr.bf16.mxu0 %v11054_v29  ;;  %2892 = vst.msk [vmem:[#allocation2 + $0x151] sm:$0xff] %vm2865_vm1, %v2859_v35  ;;  %v2860_v54 = vadd.f32 %v2828_v16, %v2796_v32  ;;  %v11107_v16 = vpack.c.bf16 %v3041_v53, %v3040_v19  ;;  %v2980_v57 = vld [vmem:[#allocation2 + $0xd9] sm:$0xff]  ;;  %v3045_v0 = vld [vmem:[#allocation2 + $0xe2] sm:$0xff] }
 0x248   : > { %2890 = vst.msk [vmem:[#allocation2 + $0x139] sm:$0xff] %vm2865_vm1, %v2857_v17  ;;  %v2858_v33 = vadd.f32 %v2826_v8, %v2794_v34  ;;  %v9258_v12 = vpop.f32.mrb[156].mxu0  ;;  %v3106_v35 = vld [vmem:[#allocation2 + $0xd8] sm:$0xff]  ;;  %v11109_v32 = vpack.c.bf16 %v2981_v11, %v2980_v57  ;;  %v3042_v17 = vld [vmem:[#allocation2 + $0xc2] sm:$0xff]  ;;  %v3043_v34 = vld [vmem:[#allocation2 + $0xca] sm:$0xff] }
 0x249   : > { %2893 = vst.msk [vmem:[#allocation2 + $0x159] sm:$0xff] %vm2865_vm1, %v2860_v54  ;;  %v2763_v14 = vadd.f32 %v9258_v12, %v10837_v15  ;;  %v2754_v45 = vpop.f32.mrb[157].mxu0  ;;  %v11111_v8 = vpack.c.bf16 %v3107_v59, %v3106_v35  ;;  %v2983_v54 = vld [vmem:[#allocation2 + $0xf9] sm:$0xff]  ;;  %v11117_v12 = vpack.c.bf16 %v3043_v34, %v3042_v17  ;;  %v3048_v25 = vld [vmem:[#allocation2 + $0x10a] sm:$0xff]  ;;  %v3050_v34 = vld [vmem:[#allocation2 + $0x122] sm:$0xff] }
 0x24a   : > { %2891 = vst.msk [vmem:[#allocation2 + $0x141] sm:$0xff] %vm2865_vm1, %v2858_v33  ;;  %v2755_v1 = vadd.f32 %v2754_v45, %v10807_v18  ;;  %v9259_v55 = vpop.f32.mrb[158].mxu0  ;;  %v3109_v33 = vld [vmem:[#allocation2 + $0xf8] sm:$0xff]  ;;  %v9542_v17 = vld [vmem:[%s12348_s4 + $0x200] sm:$0xff]  }
 0x24b   : > { %v2799_v46 = vmax.f32 %v2763_v14, 0.0  ;;  %v2766_v49 = vadd.f32 %v9259_v55, %v10845_v56  ;;  %v2757_v15 = vpop.f32.mrb[159].mxu0  ;;  %v2830_v56 = vld [vmem:[%s12345_s1 + $0xe8] sm:$0xff]  ;;  %v11119_v14 = vpack.c.bf16 %v2983_v54, %v2982_v50  ;;  %v11121_v45 = vpack.c.bf16 %v3109_v33, %v3108_v39  ;;  %v3049_v31 = vld [vmem:[#allocation2 + $0x112] sm:$0xff]  ;;  %9260 = vmatprep.subr.bf16.mxu1 %v9542_v17 }
 0x24c   : > { %v2797_v3 = vmax.f32 %v2755_v1, 0.0  ;;  %v2758_v18 = vadd.f32 %v2757_v15, %v10813_v4  ;;  %v3111_v1 = vld [vmem:[#allocation2 + $0x110] sm:$0xff]  ;;  %v11127_v55 = vpack.c.bf16 %v3045_v0, %v3044_v47  ;;  %v11151_v53 = vpack.c.bf16 %v3049_v31, %v3048_v25 }
 0x24d   : > { %v2863_v58 = vadd.f32 %v2831_v52, %v2799_v46  ;;  %v2800_v6 = vmax.f32 %v2766_v49, 0.0  ;;  %4282 = vmatmul.mubr.bf16.gmra.mrb[152].mxu1 %v11054_v29  ;;  %v2985_v52 = vld [vmem:[#allocation2 + $0x111] sm:$0xff]  ;;  %v2984_v46 = vld [vmem:[#allocation2 + $0x109] sm:$0xff] }
 0x24e   : > { %4435 = vmatmul.mubr.bf16.gmra.mrb[180].mxu0 %v11076_v30  ;;  %v2861_v20 = vadd.f32 %v2829_v7, %v2797_v3  ;;  %v2798_v41 = vmax.f32 %v2758_v18, 0.0  ;;  %4289 = vmatprep.mubr.bf16.mxu1 %v11082_v63  ;;  %v3110_v7 = vld [vmem:[#allocation2 + $0x108] sm:$0xff]  ;;  %v11129_v49 = vpack.c.bf16 %v2985_v52, %v2984_v46  ;;  %v11137_v18 = vpack.c.bf16 %v3047_v36, %v3046_v23  ;;  %v2990_v47 = vld [vmem:[#allocation2 + $0x151] sm:$0xff] }
 0x24f   : > { %4442 = vmatprep.mubr.bf16.mxu0 %v11084_v24  ;;  %2896 = vst.msk [vmem:[#allocation2 + $0x181] sm:$0xff] %vm2865_vm1, %v2863_v58  ;;  %v2864_v4 = vadd.f32 %v2832_v27, %v2800_v6  ;;  %v11131_v15 = vpack.c.bf16 %v3111_v1, %v3110_v7  ;;  %v2987_v3 = vld [vmem:[#allocation2 + $0x129] sm:$0xff]  ;;  %v2986_v58 = vld [vmem:[#allocation2 + $0x121] sm:$0xff]  ;;  %v2988_v11 = vld [vmem:[#allocation2 + $0x139] sm:$0xff] }
 0x250   : > { %2894 = vst.msk [vmem:[#allocation2 + $0x169] sm:$0xff] %vm2865_vm1, %v2861_v20  ;;  %v2862_v48 = vadd.f32 %v2830_v56, %v2798_v41  ;;  %v3113_v27 = vld [vmem:[#allocation2 + $0x128] sm:$0xff]  ;;  %v3112_v6 = vld [vmem:[#allocation2 + $0x120] sm:$0xff]  ;;  %v11139_v20 = vpack.c.bf16 %v2987_v3, %v2986_v58  ;;  %v3114_v59 = vld [vmem:[#allocation2 + $0x138] sm:$0xff] }
 0x251   : > { %2897 = vst.msk [vmem:[#allocation2 + $0x189] sm:$0xff] %vm2865_vm1, %v2864_v4  ;;  %v11141_v41 = vpack.c.bf16 %v3113_v27, %v3112_v6  ;;  %v2989_v26 = vld [vmem:[#allocation2 + $0x141] sm:$0xff]  ;;  %v3051_v54 = vld [vmem:[#allocation2 + $0x12a] sm:$0xff]  ;;  %v2991_v33 = vld [vmem:[#allocation2 + $0x159] sm:$0xff] }
 0x252   : > { %2895 = vst.msk [vmem:[#allocation2 + $0x171] sm:$0xff] %vm2865_vm1, %v2862_v48  ;;  %v3115_v19 = vld [vmem:[#allocation2 + $0x140] sm:$0xff]  ;;  %v11153_v57 = vpack.c.bf16 %v2989_v26, %v2988_v11  ;;  %v3117_v50 = vld [vmem:[#allocation2 + $0x158] sm:$0xff]  ;;  %v11164_v39 = vpack.c.bf16 %v3051_v54, %v3050_v34  ;;  %v3116_v0 = vld [vmem:[#allocation2 + $0x150] sm:$0xff]  ;;  %v11166_v52 = vpack.c.bf16 %v2991_v33, %v2990_v47 }
 0x253   : > { %v11155_v35 = vpack.c.bf16 %v3115_v19, %v3114_v59  ;;  %v11168_v1 = vpack.c.bf16 %v3117_v50, %v3116_v0  ;;  %v3052_v46 = vld [vmem:[#allocation2 + $0x13a] sm:$0xff]  ;;  %v3053_v7 = vld [vmem:[#allocation2 + $0x142] sm:$0xff]  ;;  %v9544_v0 = vld [vmem:[%s12348_s4 + $0x210] sm:$0xff]  }
 0x254   : > { %v11174_v3 = vpack.c.bf16 %v3053_v7, %v3052_v46  ;;  %v3155_v59 = vld [vmem:[#allocation2 + $0x21] sm:$0xff]  ;;  %v3154_v34 = vld [vmem:[#allocation2 + $0x19] sm:$0xff]  ;;  %v3156_v46 = vld [vmem:[#allocation2 + $0x31] sm:$0xff] }
 0x255   : > { %4290 = vmatmul.mubr.bf16.gmra.mrb[156].mxu1 %v11084_v24  ;;  %v3186_v33 = vpack.c.bf16 %v3155_v59, %v3154_v34  ;;  %v9543_v50 = vld [vmem:[%s12348_s4 + $0x208] sm:$0xff]   ;;  %v3283_v47 = vld [vmem:[#allocation2 + $0x38] sm:$0xff]  ;;  %v3282_v7 = vld [vmem:[#allocation2 + $0x30] sm:$0xff] }
 0x256   : > { %4443 = vmatmul.mubr.bf16.gmra.mrb[184].mxu0 %v11097_v44  ;;  %4297 = vmatprep.mubr.bf16.mxu1 %v11099_v22  ;;  %v3120_v31 = vld [vmem:[#allocation2 + $0x180] sm:$0xff] }
 0x257   : > { %4450 = vmatprep.mubr.bf16.mxu0 %v11101_v5  ;;  %v2992_v27 = vld [vmem:[#allocation2 + $0x169] sm:$0xff] }
 0x258   : > { %v3118_v58 = vld [vmem:[#allocation2 + $0x168] sm:$0xff] }
 0x259   : > { %v2993_v23 = vld [vmem:[#allocation2 + $0x171] sm:$0xff] }
 0x25a   : > { %v3119_v36 = vld [vmem:[#allocation2 + $0x170] sm:$0xff]  ;;  %v11176_v6 = vpack.c.bf16 %v2993_v23, %v2992_v27  ;;  %v9549_v27 = vld [vmem:[%s12348_s4 + $0x238] sm:$0xff]  }
 0x25b   : > { %v3056_v19 = vld [vmem:[#allocation2 + $0x16a] sm:$0xff]  ;;  %v3057_v11 = vld [vmem:[#allocation2 + $0x172] sm:$0xff] }
 0x25c   : > { %v11192_v54 = vpack.c.bf16 %v3057_v11, %v3056_v19 }
 0x25d   : > { %4298 = vmatmul.mubr.bf16.gmra.mrb[160].mxu1 %v11101_v5 }
 0x25e   : > { %4451 = vmatmul.mubr.bf16.gmra.mrb[188].mxu0 %v11107_v16  ;;  %4305 = vmatprep.mubr.bf16.mxu1 %v11109_v32 }
 0x25f   : > { %4458 = vmatprep.mubr.bf16.mxu0 %v11111_v8 }
 0x265   : > { %4306 = vmatmul.mubr.bf16.gmra.mrb[164].mxu1 %v11111_v8 }
 0x266   : > { %4459 = vmatmul.mubr.bf16.gmra.mrb[192].mxu0 %v11117_v12  ;;  %4313 = vmatprep.mubr.bf16.mxu1 %v11119_v14 }
 0x267   : > { %4466 = vmatprep.mubr.bf16.mxu0 %v11121_v45 }
 0x26d   : > { %4314 = vmatmul.mubr.bf16.gmra.mrb[168].mxu1 %v11121_v45 }
 0x26e   : > { %4467 = vmatmul.mubr.bf16.gmra.mrb[196].mxu0 %v11127_v55  ;;  %4321 = vmatprep.mubr.bf16.mxu1 %v11129_v49 }
 0x26f   : > { %4474 = vmatprep.mubr.bf16.mxu0 %v11131_v15  ;;  %v8442_v56 = vpop.f32.mrb[128].mxu1 }
 0x270   : > { %v8443_v4 = vpop.f32.mrb[129].mxu1 }
 0x271   : > { %v11145_v48 = vadd.f32 %v8443_v4, %v8442_v56  ;;  %v8445_v38 = vpop.f32.mrb[130].mxu1  ;;  %v11178_v56 = vpack.c.bf16 %v3119_v36, %v3118_v58  ;;  %v3054_v4 = vld [vmem:[#allocation2 + $0x152] sm:$0xff]  ;;  %v3314_v36 = vpack.c.bf16 %v3283_v47, %v3282_v7 }
 0x272   : > { %v8446_v21 = vpop.f32.mrb[131].mxu1 }
 0x273   : > { %v11149_v62 = vadd.f32 %v8446_v21, %v8445_v38  ;;  %v3055_v38 = vld [vmem:[#allocation2 + $0x15a] sm:$0xff]  ;;  %v3121_v21 = vld [vmem:[#allocation2 + $0x188] sm:$0xff] }
 0x274   : > { %v11184_v25 = vpack.c.bf16 %v3055_v38, %v3054_v4  ;;  %v11186_v26 = vpack.c.bf16 %v3121_v21, %v3120_v31  ;;  %v3248_v4 = vld [vmem:[#allocation2 + $0x182] sm:$0xff]  ;;  %v3249_v38 = vld [vmem:[#allocation2 + $0x18a] sm:$0xff] }
 0x275   : > { %4322 = vmatmul.mubr.bf16.gmra.mrb[172].mxu1 %v11131_v15  ;;  %v3375_v21 = vld [vmem:[#allocation2 + $0x189] sm:$0xff] }
 0x276   : > { %4475 = vmatmul.mubr.bf16.gmra.mrb[200].mxu0 %v11137_v18  ;;  %4329 = vmatprep.mubr.bf16.mxu1 %v11139_v20 }
 0x277   : > { %4482 = vmatprep.mubr.bf16.mxu0 %v11141_v41 }
 0x27d   : > { %4330 = vmatmul.mubr.bf16.gmra.mrb[176].mxu1 %v11141_v41 }
 0x27e   : > { %4483 = vmatmul.mubr.bf16.gmra.mrb[204].mxu0 %v11151_v53  ;;  %4337 = vmatprep.mubr.bf16.mxu1 %v11153_v57 }
 0x27f   : > { %4490 = vmatprep.mubr.bf16.mxu0 %v11155_v35 }
 0x285   : > { %4338 = vmatmul.mubr.bf16.gmra.mrb[180].mxu1 %v11155_v35 }
 0x286   : > { %4491 = vmatmul.mubr.bf16.gmra.mrb[208].mxu0 %v11164_v39  ;;  %4345 = vmatprep.mubr.bf16.mxu1 %v11166_v52 }
 0x287   : > { %4498 = vmatprep.mubr.bf16.mxu0 %v11168_v1 }
 0x28d   : > { %4346 = vmatmul.mubr.bf16.gmra.mrb[184].mxu1 %v11168_v1 }
 0x28e   : > { %4499 = vmatmul.mubr.bf16.gmra.mrb[212].mxu0 %v11174_v3  ;;  %4353 = vmatprep.mubr.bf16.mxu1 %v11176_v6 }
 0x28f   : > { %4506 = vmatprep.mubr.bf16.mxu0 %v11178_v56 }
 0x295   : > { %4354 = vmatmul.mubr.bf16.gmra.mrb[188].mxu1 %v11178_v56 }
 0x296   : > { %4507 = vmatmul.mubr.bf16.gmra.mrb[216].mxu0 %v11184_v25  ;;  %4555 = vmatprep.mubr.bf16.mxu1 %v10924_v9  ;;  %v3157_v9 = vld [vmem:[#allocation2 + $0x39] sm:$0xff] }
 0x297   : > { %4514 = vmatprep.mubr.bf16.mxu0 %v11186_v26  ;;  %v3187_v23 = vpack.c.bf16 %v3157_v9, %v3156_v46  ;;  %v11288_v9 = vpack.c.bf16 %v3249_v38, %v3248_v4 }
 0x29d   : > { %4556 = vmatmul.mubr.bf16.vlgmr.msra.gmra.mrb[192].mxu1 %v3186_v33 }
 0x29e   : > { %4515 = vmatmul.mubr.bf16.gmra.mrb[220].mxu0 %v11192_v54  ;;  %4563 = vmatprep.mubr.bf16.mxu1 %v10965_v61  ;;  %v9545_v61 = vld [vmem:[%s12348_s4 + $0x218] sm:$0xff]  }
 0x29f   : > { %4716 = vmatprep.mubr.bf16.mxu0 %v10896_v10  ;;  %9261 = vmatpush3.bf16.msra.mxu1 %v9542_v17  ;;  %v9546_v10 = vld [vmem:[%s12348_s4 + $0x220] sm:$0xff]   ;;  %v9547_v17 = vld [vmem:[%s12348_s4 + $0x228] sm:$0xff]  }
 0x2a0   : > { %9262 = vmatprep.subr.bf16.mxu1 %v9543_v50 }
 0x2a3   : > { %9263 = vmatpush3.bf16.msra.mxu1 %v9543_v50 }
 0x2a4   : > { %9264 = vmatprep.subr.bf16.mxu1 %v9544_v0 }
 0x2a5   : > { %4564 = vmatmul.mubr.bf16.gmra.mrb[196].mxu1 %v3187_v23 }
 0x2a6   : > { %4717 = vmatmul.mubr.bf16.vlgmr.msra.gmra.mrb[224].mxu0 %v3314_v36  ;;  %4571 = vmatprep.mubr.bf16.mxu1 %v11007_v51  ;;  %v9548_v51 = vld [vmem:[%s12348_s4 + $0x230] sm:$0xff]   ;;  %v3376_v36 = vld [vmem:[#allocation2 + $0x199] sm:$0xff] }
 0x2a7   : > { %4724 = vmatprep.mubr.bf16.mxu0 %v10933_v37  ;;  %9265 = vmatpush3.bf16.msra.mxu1 %v9544_v0 }
 0x2a8   : > { %9266 = vmatprep.subr.bf16.mxu1 %v9545_v61 }
 0x2ab   : > { %9267 = vmatpush3.bf16.msra.mxu1 %v9545_v61  ;;  %v3377_v61 = vld [vmem:[#allocation2 + $0x1a1] sm:$0xff] }
 0x2ac   : > { %9268 = vmatprep.subr.bf16.mxu1 %v9546_v10 }
 0x2ad   : > { %4572 = vmatmul.mubr.bf16.gmra.mrb[200].mxu1 %v10933_v37  ;;  %v11263_v37 = vld [vmem:[%s12349_s5] ss:$0 sm:$0xff] }
 0x2ae   : > { %4725 = vmatmul.mubr.bf16.gmra.mrb[228].mxu0 %v10935_v28  ;;  %4579 = vmatprep.mubr.bf16.mxu1 %v11046_v42 }
 0x2af   : > { %4732 = vmatprep.mubr.bf16.mxu0 %v10974_v60  ;;  %9269 = vmatpush3.bf16.msra.mxu1 %v9546_v10 }
 0x2b0   : > { %9270 = vmatprep.subr.bf16.mxu1 %v9547_v17 }
 0x2b3   : > { %9271 = vmatpush3.bf16.msra.mxu1 %v9547_v17 }
 0x2b4   : > { %9272 = vmatprep.subr.bf16.mxu1 %v9548_v51 }
 0x2b5   : > { %4580 = vmatmul.mubr.bf16.gmra.mrb[204].mxu1 %v10974_v60 }
 0x2b6   : > { %4733 = vmatmul.mubr.bf16.gmra.mrb[232].mxu0 %v10976_v43  ;;  %4587 = vmatprep.mubr.bf16.mxu1 %v11076_v30 }
 0x2b7   : > { %4740 = vmatprep.mubr.bf16.mxu0 %v11016_v13  ;;  %9273 = vmatpush3.bf16.msra.mxu1 %v9548_v51  ;;  %v3410_v51 = vld [vmem:[#allocation2 + $0x32] sm:$0xff] }
 0x2b8   : > { %9274 = vmatprep.subr.bf16.mxu1 %v9549_v27 }
 0x2bb   : > { %9275 = vmatpush3.bf16.msra.mxu1 %v9549_v27  ;;  %v3411_v27 = vld [vmem:[#allocation2 + $0x3a] sm:$0xff] }
 0x2bd   : > { %4588 = vmatmul.mubr.bf16.gmra.mrb[208].mxu1 %v11016_v13 }
 0x2be   : > { %4741 = vmatmul.mubr.bf16.gmra.mrb[236].mxu0 %v11018_v2  ;;  %4595 = vmatprep.mubr.bf16.mxu1 %v11097_v44  ;;  %v4236_v2 = vadd.f32 %v11145_v48, %v11263_v37  ;;  %v4239_v44 = vadd.f32 %v11149_v62, %v11263_v37 }
 0x2bf   : > { %4748 = vmatprep.mubr.bf16.mxu0 %v11052_v40 }
 0x2c5   : > { %4596 = vmatmul.mubr.bf16.gmra.mrb[212].mxu1 %v11052_v40 }
 0x2c6   : > { %4749 = vmatmul.mubr.bf16.gmra.mrb[240].mxu0 %v11054_v29  ;;  %4603 = vmatprep.mubr.bf16.mxu1 %v11107_v16 }
 0x2c7   : > { %4756 = vmatprep.mubr.bf16.mxu0 %v11082_v63 }
 0x2cd   : > { %4604 = vmatmul.mubr.bf16.gmra.mrb[216].mxu1 %v11082_v63 }
 0x2ce   : > { %4757 = vmatmul.mubr.bf16.gmra.mrb[244].mxu0 %v11084_v24  ;;  %4611 = vmatprep.mubr.bf16.mxu1 %v11117_v12 }
 0x2cf   : > { %4764 = vmatprep.mubr.bf16.mxu0 %v11099_v22 }
 0x2d5   : > { %4612 = vmatmul.mubr.bf16.gmra.mrb[220].mxu1 %v11099_v22 }
 0x2d6   : > { %4765 = vmatmul.mubr.bf16.gmra.mrb[248].mxu0 %v11101_v5  ;;  %4619 = vmatprep.mubr.bf16.mxu1 %v11127_v55 }
 0x2d7   : > { %4772 = vmatprep.mubr.bf16.mxu0 %v11109_v32 }
 0x2dd   : > { %4620 = vmatmul.mubr.bf16.gmra.mrb[224].mxu1 %v11109_v32 }
 0x2de   : > { %4773 = vmatmul.mubr.bf16.gmra.mrb[252].mxu0 %v11111_v8  ;;  %4627 = vmatprep.mubr.bf16.mxu1 %v11137_v18 }
 0x2df   : > { %4780 = vmatprep.mubr.bf16.mxu0 %v11119_v14 }
 0x2e5   : > { %4628 = vmatmul.mubr.bf16.gmra.mrb[228].mxu1 %v11119_v14 }
 0x2e6   : > { %4781 = vmatmul.mubr.bf16.gmra.mrb[0].mxu0 %v11121_v45  ;;  %4635 = vmatprep.mubr.bf16.mxu1 %v11151_v53 }
 0x2e7   : > { %4788 = vmatprep.mubr.bf16.mxu0 %v11129_v49 }
 0x2ed   : > { %4636 = vmatmul.mubr.bf16.gmra.mrb[232].mxu1 %v11129_v49 }
 0x2ee   : > { %4789 = vmatmul.mubr.bf16.gmra.mrb[4].mxu0 %v11131_v15  ;;  %4643 = vmatprep.mubr.bf16.mxu1 %v11164_v39 }
 0x2ef   : > { %4796 = vmatprep.mubr.bf16.mxu0 %v11139_v20 }
 0x2f5   : > { %4644 = vmatmul.mubr.bf16.gmra.mrb[236].mxu1 %v11139_v20 }
 0x2f6   : > { %4797 = vmatmul.mubr.bf16.gmra.mrb[8].mxu0 %v11141_v41  ;;  %4651 = vmatprep.mubr.bf16.mxu1 %v11174_v3 }
 0x2f7   : > { %4804 = vmatprep.mubr.bf16.mxu0 %v11153_v57 }
 0x2f8   : > { %v8448_v28 = vpop.f32.mrb[132].mxu1 }
 0x2f9   : > { %v8554_v60 = vpop.f32.mrb[160].mxu0  ;;  %v8449_v43 = vpop.f32.mrb[133].mxu1 }
 0x2fa   : > { %v8555_v13 = vpop.f32.mrb[161].mxu0  ;;  %v8450_v42 = vadd.f32 %v8449_v43, %v8448_v28  ;;  %v8451_v29 = vpop.f32.mrb[134].mxu1 }
 0x2fb   : > { %v8556_v40 = vadd.f32 %v8555_v13, %v8554_v60  ;;  %v8557_v30 = vpop.f32.mrb[162].mxu0  ;;  %v8452_v63 = vpop.f32.mrb[135].mxu1 }
 0x2fc   : > { %v8558_v24 = vpop.f32.mrb[163].mxu0  ;;  %v8453_v5 = vadd.f32 %v8452_v63, %v8451_v29  ;;  %v4244_v55 = vadd.f32 %v8450_v42, %v11263_v37 }
 0x2fd   : > { %v11269_v22 = vadd.f32 %v8556_v40, %v4236_v2  ;;  %v8559_v16 = vadd.f32 %v8558_v24, %v8557_v30  ;;  %4652 = vmatmul.mubr.bf16.gmra.mrb[240].mxu1 %v11153_v57  ;;  %v3442_v30 = vpack.c.bf16 %v3411_v27, %v3410_v51 }
 0x2fe   : > { %4805 = vmatmul.mubr.bf16.gmra.mrb[12].mxu0 %v11155_v35  ;;  %4659 = vmatprep.mubr.bf16.mxu1 %v11184_v25  ;;  %v4247_v62 = vadd.f32 %v8453_v5, %v11263_v37 }
 0x2ff   : > { %v11273_v32 = vadd.f32 %v8559_v16, %v4239_v44  ;;  %4812 = vmatprep.mubr.bf16.mxu0 %v11166_v52 }
 0x300   : > { %v8454_v8 = vpop.f32.mrb[136].mxu1 }
 0x301   : > { %v8560_v12 = vpop.f32.mrb[164].mxu0  ;;  %v8455_v14 = vpop.f32.mrb[137].mxu1 }
 0x302   : > { %v8561_v45 = vpop.f32.mrb[165].mxu0  ;;  %v8456_v49 = vadd.f32 %v8455_v14, %v8454_v8  ;;  %v8457_v18 = vpop.f32.mrb[138].mxu1  ;;  %v3412_v8 = vld [vmem:[#allocation2 + $0x4a] sm:$0xff] }
 0x303   : > { %v8562_v15 = vadd.f32 %v8561_v45, %v8560_v12  ;;  %v8563_v20 = vpop.f32.mrb[166].mxu0  ;;  %v8458_v41 = vpop.f32.mrb[139].mxu1  ;;  %v3413_v45 = vld [vmem:[#allocation2 + $0x52] sm:$0xff] }
 0x304   : > { %v8564_v48 = vpop.f32.mrb[167].mxu0  ;;  %v8459_v57 = vadd.f32 %v8458_v41, %v8457_v18  ;;  %v4252_v19 = vadd.f32 %v8456_v49, %v11263_v37  ;;  %v3415_v49 = vld [vmem:[#allocation2 + $0x6a] sm:$0xff]  ;;  %v3443_v4 = vpack.c.bf16 %v3413_v45, %v3412_v8 }
 0x305   : > { %v11279_v53 = vadd.f32 %v8562_v15, %v4244_v55  ;;  %v8565_v35 = vadd.f32 %v8564_v48, %v8563_v20  ;;  %4660 = vmatmul.mubr.bf16.gmra.mrb[244].mxu1 %v11166_v52  ;;  %v3414_v55 = vld [vmem:[#allocation2 + $0x62] sm:$0xff] }
 0x306   : > { %4813 = vmatmul.mubr.bf16.gmra.mrb[16].mxu0 %v11168_v1  ;;  %4667 = vmatprep.mubr.bf16.mxu1 %v11192_v54  ;;  %v3374_v1 = vld [vmem:[#allocation2 + $0x181] sm:$0xff]  ;;  %v4255_v47 = vadd.f32 %v8459_v57, %v11263_v37  ;;  %v3444_v38 = vpack.c.bf16 %v3415_v49, %v3414_v55 }
 0x307   : > { %v11283_v39 = vadd.f32 %v8565_v35, %v4247_v62  ;;  %4820 = vmatprep.mubr.bf16.mxu0 %v11176_v6  ;;  %v3392_v54 = vpack.c.bf16 %v3375_v21, %v3374_v1  ;;  %v9708_v20 = vld [vmem:[#allocation2] sm:$0xff] }
 0x308   : > { %v8460_v3 = vpop.f32.mrb[140].mxu1  ;;  %v3329_v41 = vpack.c.bf16 %v9708_v20, %v9708_v20  ;;  %v3417_v1 = vld [vmem:[#allocation2 + $0x82] sm:$0xff] }
 0x309   : > { %v8566_v58 = vpop.f32.mrb[168].mxu0  ;;  %v8461_v25 = vpop.f32.mrb[141].mxu1 }
 0x30a   : > { %v8567_v31 = vpop.f32.mrb[169].mxu0  ;;  %v8462_v11 = vadd.f32 %v8461_v25, %v8460_v3  ;;  %v8463_v52 = vpop.f32.mrb[142].mxu1 }
 0x30b   : > { %v8568_v59 = vadd.f32 %v8567_v31, %v8566_v58  ;;  %v8569_v34 = vpop.f32.mrb[170].mxu0  ;;  %v8464_v33 = vpop.f32.mrb[143].mxu1 }
 0x30c   : > { %v8570_v50 = vpop.f32.mrb[171].mxu0  ;;  %v8465_v46 = vadd.f32 %v8464_v33, %v8463_v52  ;;  %v4260_v43 = vadd.f32 %v8462_v11, %v11263_v37  ;;  %v3418_v33 = vld [vmem:[#allocation2 + $0x92] sm:$0xff] }
 0x30d   : > { %v11291_v0 = vadd.f32 %v8568_v59, %v4252_v19  ;;  %v8571_v7 = vadd.f32 %v8570_v50, %v8569_v34  ;;  %4668 = vmatmul.mubr.bf16.gmra.mrb[248].mxu1 %v11176_v6  ;;  %v3416_v59 = vld [vmem:[#allocation2 + $0x7a] sm:$0xff] }
 0x30e   : > { %4821 = vmatmul.mubr.bf16.gmra.mrb[20].mxu0 %v11178_v56  ;;  %4675 = vmatprep.mubr.bf16.mxu1 %v11288_v9  ;;  %v3393_v56 = vpack.c.bf16 %v3377_v61, %v3376_v36  ;;  %v4263_v63 = vadd.f32 %v8465_v46, %v11263_v37  ;;  %v3419_v50 = vld [vmem:[#allocation2 + $0x9a] sm:$0xff]  ;;  %v3445_v27 = vpack.c.bf16 %v3417_v1, %v3416_v59 }
 0x30f   : > { %v11295_v23 = vadd.f32 %v8571_v7, %v4255_v47  ;;  %4828 = vmatprep.mubr.bf16.mxu0 %v3392_v54 }
 0x310   : > { %v8466_v10 = vpop.f32.mrb[144].mxu1 }
 0x311   : > { %v8572_v17 = vpop.f32.mrb[172].mxu0  ;;  %v8467_v28 = vpop.f32.mrb[145].mxu1 }
 0x312   : > { %v8573_v60 = vpop.f32.mrb[173].mxu0  ;;  %v8468_v13 = vadd.f32 %v8467_v28, %v8466_v10  ;;  %v8469_v6 = vpop.f32.mrb[146].mxu1  ;;  %v3446_v28 = vpack.c.bf16 %v3419_v50, %v3418_v33 }
 0x313   : > { %v8574_v2 = vadd.f32 %v8573_v60, %v8572_v17  ;;  %v8575_v42 = vpop.f32.mrb[174].mxu0  ;;  %v8470_v40 = vpop.f32.mrb[147].mxu1 }
 0x314   : > { %v8576_v29 = vpop.f32.mrb[175].mxu0  ;;  %v8471_v44 = vadd.f32 %v8470_v40, %v8469_v6  ;;  %v4268_v48 = vadd.f32 %v8468_v13, %v11263_v37 }
 0x315   : > { %v11300_v24 = vadd.f32 %v8574_v2, %v4260_v43  ;;  %v8577_v5 = vadd.f32 %v8576_v29, %v8575_v42  ;;  %4676 = vmatmul.mubr.bf16.gmra.mrb[252].mxu1 %v3392_v54  ;;  %v3420_v42 = vld [vmem:[#allocation2 + $0xaa] sm:$0xff]  ;;  %v3421_v29 = vld [vmem:[#allocation2 + $0xb2] sm:$0xff] }
 0x316   : > { %4829 = vmatmul.mubr.bf16.gmra.mrb[24].mxu0 %v11186_v26  ;;  %9276 = vmatprep.mubr.bf16.mxu1 %v3442_v30  ;;  %v4271_v21 = vadd.f32 %v8471_v44, %v11263_v37  ;;  %v3422_v30 = vld [vmem:[#allocation2 + $0xc2] sm:$0xff] }
 0x317   : > { %v11303_v16 = vadd.f32 %v8577_v5, %v4263_v63  ;;  %4836 = vmatprep.mubr.bf16.mxu0 %v3393_v56  ;;  %v3423_v63 = vld [vmem:[#allocation2 + $0xca] sm:$0xff] }
 0x318   : > { %v8472_v12 = vpop.f32.mrb[148].mxu1  ;;  %v3448_v20 = vpack.c.bf16 %v3423_v63, %v3422_v30 }
 0x319   : > { %v8578_v14 = vpop.f32.mrb[176].mxu0  ;;  %v8473_v15 = vpop.f32.mrb[149].mxu1 }
 0x31a   : > { %v8579_v18 = vpop.f32.mrb[177].mxu0  ;;  %v8474_v62 = vadd.f32 %v8473_v15, %v8472_v12  ;;  %v8475_v35 = vpop.f32.mrb[150].mxu1 }
 0x31b   : > { %v8580_v57 = vadd.f32 %v8579_v18, %v8578_v14  ;;  %v8581_v26 = vpop.f32.mrb[178].mxu0  ;;  %v8476_v3 = vpop.f32.mrb[151].mxu1  ;;  %v3447_v18 = vpack.c.bf16 %v3421_v29, %v3420_v42 }
 0x31c   : > { %v8582_v58 = vpop.f32.mrb[179].mxu0  ;;  %v8477_v31 = vadd.f32 %v8476_v3, %v8475_v35  ;;  %v4276_v46 = vadd.f32 %v8474_v62, %v11263_v37 }
 0x31d   : > { %v11307_v25 = vadd.f32 %v8580_v57, %v4268_v48  ;;  %v8583_v19 = vadd.f32 %v8582_v58, %v8581_v26  ;;  %9277 = vmatmul.mubr.bf16.vlgmr.msra.gmra.mrb[0].mxu1 %v3443_v4  ;;  %v3424_v26 = vld [vmem:[#allocation2 + $0xda] sm:$0xff]  ;;  %v3425_v4 = vld [vmem:[#allocation2 + $0xe2] sm:$0xff] }
 0x31e   : > { %4837 = vmatmul.mubr.bf16.gmra.mrb[28].mxu0 %v3329_v41  ;;  %9280 = vmatprep.mubr.bf16.mxu1 %v3444_v38  ;;  %v4279_v60 = vadd.f32 %v8477_v31, %v11263_v37  ;;  %v3426_v38 = vld [vmem:[#allocation2 + $0xf2] sm:$0xff] }
 0x31f   : > { %v11309_v11 = vadd.f32 %v8583_v19, %v4271_v21  ;;  %v3427_v21 = vld [vmem:[#allocation2 + $0xfa] sm:$0xff] }
 0x320   : > { %v8478_v52 = vpop.f32.mrb[152].mxu1 }
 0x321   : > { %v8584_v34 = vpop.f32.mrb[180].mxu0  ;;  %v8479_v54 = vpop.f32.mrb[153].mxu1 }
 0x322   : > { %v8585_v47 = vpop.f32.mrb[181].mxu0  ;;  %v8480_v7 = vadd.f32 %v8479_v54, %v8478_v52  ;;  %v8481_v61 = vpop.f32.mrb[154].mxu1 }
 0x323   : > { %v8586_v36 = vadd.f32 %v8585_v47, %v8584_v34  ;;  %v8587_v10 = vpop.f32.mrb[182].mxu0  ;;  %v8482_v17 = vpop.f32.mrb[155].mxu1  ;;  %v3449_v47 = vpack.c.bf16 %v3425_v4, %v3424_v26  ;;  %v3434_v26 = vld [vmem:[#allocation2 + $0x152] sm:$0xff] }
 0x324   : > { %v8588_v51 = vpop.f32.mrb[183].mxu0  ;;  %v8483_v13 = vadd.f32 %v8482_v17, %v8481_v61  ;;  %v4284_v8 = vadd.f32 %v8480_v7, %v11263_v37 }
 0x325   : > { %v11313_v43 = vadd.f32 %v8586_v36, %v4276_v46  ;;  %v8589_v2 = vadd.f32 %v8588_v51, %v8587_v10  ;;  %9281 = vmatmul.mubr.bf16.gmra.mrb[4].mxu1 %v3445_v27  ;;  %v3450_v46 = vpack.c.bf16 %v3427_v21, %v3426_v38  ;;  %v3428_v51 = vld [vmem:[#allocation2 + $0x10a] sm:$0xff] }
 0x326   : > { %9284 = vmatprep.mubr.bf16.mxu1 %v3446_v28  ;;  %v4287_v41 = vadd.f32 %v8483_v13, %v11263_v37  ;;  %v3430_v13 = vld [vmem:[#allocation2 + $0x122] sm:$0xff] }
 0x327   : > { %v11315_v6 = vadd.f32 %v8589_v2, %v4279_v60  ;;  %v3429_v60 = vld [vmem:[#allocation2 + $0x112] sm:$0xff]  ;;  %v3431_v2 = vld [vmem:[#allocation2 + $0x12a] sm:$0xff] }
 0x328   : > { %v8484_v56 = vpop.f32.mrb[156].mxu1 }
 0x329   : > { %v8590_v40 = vpop.f32.mrb[184].mxu0  ;;  %v8485_v44 = vpop.f32.mrb[157].mxu1 }
 0x32a   : > { %v8591_v5 = vpop.f32.mrb[185].mxu0  ;;  %v8486_v12 = vadd.f32 %v8485_v44, %v8484_v56  ;;  %v8487_v45 = vpop.f32.mrb[158].mxu1 }
 0x32b   : > { %v8592_v14 = vadd.f32 %v8591_v5, %v8590_v40  ;;  %v8593_v55 = vpop.f32.mrb[186].mxu0  ;;  %v8488_v49 = vpop.f32.mrb[159].mxu1 }
 0x32c   : > { %v8594_v15 = vpop.f32.mrb[187].mxu0  ;;  %v8489_v62 = vadd.f32 %v8488_v49, %v8487_v45  ;;  %v4292_v59 = vadd.f32 %v8486_v12, %v11263_v37  ;;  %v3451_v12 = vpack.c.bf16 %v3429_v60, %v3428_v51  ;;  %v3436_v51 = vld [vmem:[#allocation2 + $0x16a] sm:$0xff] }
 0x32d   : > { %v11319_v48 = vadd.f32 %v8592_v14, %v4284_v8  ;;  %v8595_v57 = vadd.f32 %v8594_v15, %v8593_v55  ;;  %9285 = vmatmul.mubr.bf16.gmra.mrb[8].mxu1 %v3447_v18  ;;  %v3452_v14 = vpack.c.bf16 %v3431_v2, %v3430_v13 }
 0x32e   : > { %9288 = vmatprep.mubr.bf16.mxu1 %v3448_v20  ;;  %v4295_v7 = vadd.f32 %v8489_v62, %v11263_v37  ;;  %v3432_v20 = vld [vmem:[#allocation2 + $0x13a] sm:$0xff] }
 0x32f   : > { %v11321_v35 = vadd.f32 %v8595_v57, %v4287_v41  ;;  %v3433_v57 = vld [vmem:[#allocation2 + $0x142] sm:$0xff] }
 0x330   : > { %v8490_v3 = vpop.f32.mrb[160].mxu1 }
 0x331   : > { %v8596_v58 = vpop.f32.mrb[188].mxu0  ;;  %v8491_v31 = vpop.f32.mrb[161].mxu1 }
 0x332   : > { %v8597_v19 = vpop.f32.mrb[189].mxu0  ;;  %v8492_v52 = vadd.f32 %v8491_v31, %v8490_v3  ;;  %v8493_v1 = vpop.f32.mrb[162].mxu1  ;;  %v3435_v3 = vld [vmem:[#allocation2 + $0x15a] sm:$0xff] }
 0x333   : > { %v8598_v34 = vadd.f32 %v8597_v19, %v8596_v58  ;;  %v8599_v33 = vpop.f32.mrb[190].mxu0  ;;  %v8494_v50 = vpop.f32.mrb[163].mxu1 }
 0x334   : > { %v8600_v54 = vpop.f32.mrb[191].mxu0  ;;  %v8495_v61 = vadd.f32 %v8494_v50, %v8493_v1  ;;  %v4300_v40 = vadd.f32 %v8492_v52, %v11263_v37  ;;  %v3453_v1 = vpack.c.bf16 %v3433_v57, %v3432_v20 }
 0x335   : > { %v11325_v36 = vadd.f32 %v8598_v34, %v4292_v59  ;;  %v8601_v10 = vadd.f32 %v8600_v54, %v8599_v33  ;;  %9289 = vmatmul.mubr.bf16.gmra.mrb[12].mxu1 %v3449_v47  ;;  %v3454_v33 = vpack.c.bf16 %v3435_v3, %v3434_v26 }
 0x336   : > { %9292 = vmatprep.mubr.bf16.mxu1 %v3450_v46  ;;  %v4303_v45 = vadd.f32 %v8495_v61, %v11263_v37 }
 0x337   : > { %v11327_v17 = vadd.f32 %v8601_v10, %v4295_v7 }
 0x338   : > { %v8496_v27 = vpop.f32.mrb[164].mxu1 }
 0x339   : > { %v8602_v28 = vpop.f32.mrb[192].mxu0  ;;  %v8497_v42 = vpop.f32.mrb[165].mxu1 }
 0x33a   : > { %v8603_v56 = vpop.f32.mrb[193].mxu0  ;;  %v8498_v29 = vadd.f32 %v8497_v42, %v8496_v27  ;;  %v8499_v63 = vpop.f32.mrb[166].mxu1  ;;  %v3437_v27 = vld [vmem:[#allocation2 + $0x172] sm:$0xff] }
 0x33b   : > { %v8604_v30 = vadd.f32 %v8603_v56, %v8602_v28  ;;  %v8605_v44 = vpop.f32.mrb[194].mxu0  ;;  %v8500_v5 = vpop.f32.mrb[167].mxu1 }
 0x33c   : > { %v8606_v8 = vpop.f32.mrb[195].mxu0  ;;  %v8501_v49 = vadd.f32 %v8500_v5, %v8499_v63  ;;  %v4308_v38 = vadd.f32 %v8498_v29, %v11263_v37  ;;  %v3455_v63 = vpack.c.bf16 %v3437_v27, %v3436_v51 }
 0x33d   : > { %v11331_v55 = vadd.f32 %v8604_v30, %v4300_v40  ;;  %v8607_v15 = vadd.f32 %v8606_v8, %v8605_v44  ;;  %9293 = vmatmul.mubr.bf16.gmra.mrb[16].mxu1 %v3451_v12 }
 0x33e   : > { %9296 = vmatprep.mubr.bf16.mxu1 %v3452_v14  ;;  %v4311_v50 = vadd.f32 %v8501_v49, %v11263_v37  ;;  %v3441_v49 = vld [vmem:[#allocation2 + $0x1a2] sm:$0xff] }
 0x33f   : > { %v11333_v18 = vadd.f32 %v8607_v15, %v4303_v45  ;;  %v3440_v45 = vld [vmem:[#allocation2 + $0x19a] sm:$0xff] }
 0x340   : > { %v8502_v41 = vpop.f32.mrb[168].mxu1  ;;  %v3457_v57 = vpack.c.bf16 %v3441_v49, %v3440_v45 }
 0x341   : > { %v8608_v62 = vpop.f32.mrb[196].mxu0  ;;  %v8503_v58 = vpop.f32.mrb[169].mxu1 }
 0x342   : > { %v8609_v4 = vpop.f32.mrb[197].mxu0  ;;  %v8504_v21 = vadd.f32 %v8503_v58, %v8502_v41  ;;  %v8505_v19 = vpop.f32.mrb[170].mxu1 }
 0x343   : > { %v8610_v31 = vadd.f32 %v8609_v4, %v8608_v62  ;;  %v8611_v59 = vpop.f32.mrb[198].mxu0  ;;  %v8506_v52 = vpop.f32.mrb[171].mxu1 }
 0x344   : > { %v8612_v34 = vpop.f32.mrb[199].mxu0  ;;  %v8507_v47 = vadd.f32 %v8506_v52, %v8505_v19  ;;  %v4316_v13 = vadd.f32 %v8504_v21, %v11263_v37 }
 0x345   : > { %v11337_v54 = vadd.f32 %v8610_v31, %v4308_v38  ;;  %v8613_v46 = vadd.f32 %v8612_v34, %v8611_v59  ;;  %9297 = vmatmul.mubr.bf16.gmra.mrb[20].mxu1 %v3453_v1 }
 0x346   : > { %9300 = vmatprep.mubr.bf16.mxu1 %v3454_v33  ;;  %v4319_v44 = vadd.f32 %v8507_v47, %v11263_v37 }
 0x347   : > { %v11339_v7 = vadd.f32 %v8613_v46, %v4311_v50 }
 0x348   : > { %v8508_v61 = vpop.f32.mrb[172].mxu1 }
 0x349   : > { %v8614_v10 = vpop.f32.mrb[200].mxu0  ;;  %v8509_v28 = vpop.f32.mrb[173].mxu1 }
 0x34a   : > { %v8615_v60 = vpop.f32.mrb[201].mxu0  ;;  %v8510_v2 = vadd.f32 %v8509_v28, %v8508_v61  ;;  %v8511_v56 = vpop.f32.mrb[174].mxu1 }
 0x34b   : > { %v8616_v42 = vadd.f32 %v8615_v60, %v8614_v10  ;;  %v8617_v40 = vpop.f32.mrb[202].mxu0  ;;  %v8512_v29 = vpop.f32.mrb[175].mxu1 }
 0x34c   : > { %v8618_v30 = vpop.f32.mrb[203].mxu0  ;;  %v8513_v8 = vadd.f32 %v8512_v29, %v8511_v56  ;;  %v4324_v26 = vadd.f32 %v8510_v2, %v11263_v37 }
 0x34d   : > { %v11343_v5 = vadd.f32 %v8616_v42, %v4316_v13  ;;  %v8619_v12 = vadd.f32 %v8618_v30, %v8617_v40  ;;  %9301 = vmatmul.mubr.bf16.gmra.mrb[24].mxu1 %v3455_v63 }
 0x34e   : > { %9304 = vmatprep.mubr.bf16.mxu1 %v11288_v9  ;;  %v4327_v19 = vadd.f32 %v8513_v8, %v11263_v37 }
 0x34f   : > { %v11345_v14 = vadd.f32 %v8619_v12, %v4319_v44 }
 0x350   : > { %v8514_v15 = vpop.f32.mrb[176].mxu1 }
 0x351   : > { %v8620_v20 = vpop.f32.mrb[204].mxu0  ;;  %v8515_v41 = vpop.f32.mrb[177].mxu1 }
 0x352   : > { %v8621_v62 = vpop.f32.mrb[205].mxu0  ;;  %v8516_v3 = vadd.f32 %v8515_v41, %v8514_v15  ;;  %v8517_v4 = vpop.f32.mrb[178].mxu1 }
 0x353   : > { %v8622_v58 = vadd.f32 %v8621_v62, %v8620_v20  ;;  %v8623_v38 = vpop.f32.mrb[206].mxu0  ;;  %v8518_v21 = vpop.f32.mrb[179].mxu1 }
 0x354   : > { %v8624_v31 = vpop.f32.mrb[207].mxu0  ;;  %v8519_v9 = vadd.f32 %v8518_v21, %v8517_v4  ;;  %v4332_v46 = vadd.f32 %v8516_v3, %v11263_v37 }
 0x355   : > { %v11350_v59 = vadd.f32 %v8622_v58, %v4324_v26  ;;  %v8625_v52 = vadd.f32 %v8624_v31, %v8623_v38  ;;  %9305 = vmatmul.mubr.bf16.gmra.mrb[28].mxu1 %v3457_v57 }
 0x356   : > { %v4335_v13 = vadd.f32 %v8519_v9, %v11263_v37 }
 0x357   : > { %v11352_v34 = vadd.f32 %v8625_v52, %v4327_v19 }
 0x358   : > { %v8520_v1 = vpop.f32.mrb[180].mxu1 }
 0x359   : > { %v8626_v33 = vpop.f32.mrb[208].mxu0  ;;  %v8521_v50 = vpop.f32.mrb[181].mxu1 }
 0x35a   : > { %v8627_v47 = vpop.f32.mrb[209].mxu0  ;;  %v8522_v61 = vadd.f32 %v8521_v50, %v8520_v1  ;;  %v8523_v51 = vpop.f32.mrb[182].mxu1 }
 0x35b   : > { %v8628_v10 = vadd.f32 %v8627_v47, %v8626_v33  ;;  %v8629_v27 = vpop.f32.mrb[210].mxu0  ;;  %v8524_v28 = vpop.f32.mrb[183].mxu1 }
 0x35c   : > { %v8630_v60 = vpop.f32.mrb[211].mxu0  ;;  %v8525_v42 = vadd.f32 %v8524_v28, %v8523_v51  ;;  %v4340_v8 = vadd.f32 %v8522_v61, %v11263_v37 }
 0x35d   : > { %v11356_v2 = vadd.f32 %v8628_v10, %v4332_v46  ;;  %v8631_v56 = vadd.f32 %v8630_v60, %v8629_v27 }
 0x35e   : > { %v4343_v62 = vadd.f32 %v8525_v42, %v11263_v37 }
 0x35f   : > { %v11358_v40 = vadd.f32 %v8631_v56, %v4335_v13 }
 0x360   : > { %v8526_v29 = vpop.f32.mrb[184].mxu1 }
 0x361   : > { %v8632_v30 = vpop.f32.mrb[212].mxu0  ;;  %v8527_v63 = vpop.f32.mrb[185].mxu1 }
 0x362   : > { %v8633_v44 = vpop.f32.mrb[213].mxu0  ;;  %v8528_v12 = vadd.f32 %v8527_v63, %v8526_v29  ;;  %v8529_v49 = vpop.f32.mrb[186].mxu1 }
 0x363   : > { %v8634_v45 = vadd.f32 %v8633_v44, %v8632_v30  ;;  %v8635_v15 = vpop.f32.mrb[214].mxu0  ;;  %v8530_v20 = vpop.f32.mrb[187].mxu1 }
 0x364   : > { %v8636_v41 = vpop.f32.mrb[215].mxu0  ;;  %v8531_v26 = vadd.f32 %v8530_v20, %v8529_v49  ;;  %v4348_v19 = vadd.f32 %v8528_v12, %v11263_v37 }
 0x365   : > { %v11362_v57 = vadd.f32 %v8634_v45, %v4340_v8  ;;  %v8637_v3 = vadd.f32 %v8636_v41, %v8635_v15 }
 0x366   : > { %v4351_v46 = vadd.f32 %v8531_v26, %v11263_v37 }
 0x367   : > { %v11364_v58 = vadd.f32 %v8637_v3, %v4343_v62 }
 0x368   : > { %v8532_v4 = vpop.f32.mrb[188].mxu1 }
 0x369   : > { %v8638_v38 = vpop.f32.mrb[216].mxu0  ;;  %v8533_v21 = vpop.f32.mrb[189].mxu1 }
 0x36a   : > { %v8639_v31 = vpop.f32.mrb[217].mxu0  ;;  %v8534_v9 = vadd.f32 %v8533_v21, %v8532_v4  ;;  %v8535_v1 = vpop.f32.mrb[190].mxu1 }
 0x36b   : > { %v8640_v52 = vadd.f32 %v8639_v31, %v8638_v38  ;;  %v8641_v33 = vpop.f32.mrb[218].mxu0  ;;  %v8536_v50 = vpop.f32.mrb[191].mxu1 }
 0x36c   : > { %v8642_v47 = vpop.f32.mrb[219].mxu0  ;;  %v8537_v10 = vadd.f32 %v8536_v50, %v8535_v1  ;;  %v4356_v56 = vadd.f32 %v8534_v9, %v11263_v37 }
 0x36d   : > { %v11368_v61 = vadd.f32 %v8640_v52, %v4348_v19  ;;  %v8643_v51 = vadd.f32 %v8642_v47, %v8641_v33 }
 0x36e   : > { %v4359_v8 = vadd.f32 %v8537_v10, %v11263_v37 }
 0x36f   : > { %v11370_v27 = vadd.f32 %v8643_v51, %v4351_v46 }
 0x370   : > { %v8666_v60 = vpop.f32.mrb[192].mxu1 }
 0x371   : > { %v8644_v28 = vpop.f32.mrb[220].mxu0  ;;  %v8667_v42 = vpop.f32.mrb[193].mxu1 }
 0x372   : > { %v8645_v13 = vpop.f32.mrb[221].mxu0  ;;  %v8668_v30 = vadd.f32 %v8667_v42, %v8666_v60  ;;  %v8669_v44 = vpop.f32.mrb[194].mxu1 }
 0x373   : > { %v8646_v29 = vadd.f32 %v8645_v13, %v8644_v28  ;;  %v8647_v63 = vpop.f32.mrb[222].mxu0  ;;  %v8670_v45 = vpop.f32.mrb[195].mxu1 }
 0x374   : > { %v8648_v12 = vpop.f32.mrb[223].mxu0  ;;  %v4558_v15 = vadd.f32 %v8668_v30, %v11269_v22  ;;  %v8671_v41 = vadd.f32 %v8670_v45, %v8669_v44 }
 0x375   : > { %v11374_v49 = vadd.f32 %v8646_v29, %v4356_v56  ;;  %v8649_v20 = vadd.f32 %v8648_v12, %v8647_v63 }
 0x376   : > { %v4561_v26 = vadd.f32 %v8671_v41, %v11273_v32 }
 0x377   : > { %v11377_v62 = vadd.f32 %v8649_v20, %v4359_v8 }
 0x378   : > { %v8672_v3 = vpop.f32.mrb[196].mxu1 }
 0x379   : > { %v8778_v4 = vpop.f32.mrb[224].mxu0  ;;  %v8673_v38 = vpop.f32.mrb[197].mxu1 }
 0x37a   : > { %v8779_v21 = vpop.f32.mrb[225].mxu0  ;;  %v8674_v31 = vadd.f32 %v8673_v38, %v8672_v3  ;;  %v8675_v9 = vpop.f32.mrb[198].mxu1 }
 0x37b   : > { %v8780_v19 = vadd.f32 %v8779_v21, %v8778_v4  ;;  %v8781_v37 = vpop.f32.mrb[226].mxu0  ;;  %v8676_v52 = vpop.f32.mrb[199].mxu1 }
 0x37c   : > { %v8782_v1 = vpop.f32.mrb[227].mxu0  ;;  %v4566_v33 = vadd.f32 %v8674_v31, %v11279_v53  ;;  %v8677_v50 = vadd.f32 %v8676_v52, %v8675_v9 }
 0x37d   : > { %v8783_v22 = vadd.f32 %v8782_v1, %v8781_v37  ;;  %v11381_v47 = vadd.f32 %v8780_v19, %v4558_v15 }
 0x37e   : > { %v4569_v46 = vadd.f32 %v8677_v50, %v11283_v39 }
 0x37f   : > { %v11384_v10 = vadd.f32 %v8783_v22, %v4561_v26 }
 0x380   : > { %v8678_v32 = vpop.f32.mrb[200].mxu1 }
 0x381   : > { %v8784_v51 = vpop.f32.mrb[228].mxu0  ;;  %v8679_v28 = vpop.f32.mrb[201].mxu1 }
 0x382   : > { %v8785_v60 = vpop.f32.mrb[229].mxu0  ;;  %v8680_v13 = vadd.f32 %v8679_v28, %v8678_v32  ;;  %v8681_v56 = vpop.f32.mrb[202].mxu1 }
 0x383   : > { %v8786_v42 = vadd.f32 %v8785_v60, %v8784_v51  ;;  %v8787_v29 = vpop.f32.mrb[230].mxu0  ;;  %v8682_v30 = vpop.f32.mrb[203].mxu1 }
 0x384   : > { %v8788_v63 = vpop.f32.mrb[231].mxu0  ;;  %v4574_v53 = vadd.f32 %v8680_v13, %v11291_v0  ;;  %v8683_v44 = vadd.f32 %v8682_v30, %v8681_v56 }
 0x385   : > { %v8789_v8 = vadd.f32 %v8788_v63, %v8787_v29  ;;  %v11387_v12 = vadd.f32 %v8786_v42, %v4566_v33 }
 0x386   : > { %v4577_v39 = vadd.f32 %v8683_v44, %v11295_v23 }
 0x387   : > { %v11390_v45 = vadd.f32 %v8789_v8, %v4569_v46 }
 0x388   : > { %v8684_v15 = vpop.f32.mrb[204].mxu1 }
 0x389   : > { %v8790_v20 = vpop.f32.mrb[232].mxu0  ;;  %v8685_v41 = vpop.f32.mrb[205].mxu1 }
 0x38a   : > { %v8791_v26 = vpop.f32.mrb[233].mxu0  ;;  %v8686_v3 = vadd.f32 %v8685_v41, %v8684_v15  ;;  %v8687_v38 = vpop.f32.mrb[206].mxu1 }
 0x38b   : > { %v8792_v4 = vadd.f32 %v8791_v26, %v8790_v20  ;;  %v8793_v21 = vpop.f32.mrb[234].mxu0  ;;  %v8688_v31 = vpop.f32.mrb[207].mxu1 }
 0x38c   : > { %v8794_v19 = vpop.f32.mrb[235].mxu0  ;;  %v4582_v0 = vadd.f32 %v8686_v3, %v11300_v24  ;;  %v8689_v9 = vadd.f32 %v8688_v31, %v8687_v38 }
 0x38d   : > { %v8795_v37 = vadd.f32 %v8794_v19, %v8793_v21  ;;  %v11393_v52 = vadd.f32 %v8792_v4, %v4574_v53 }
 0x38e   : > { %v4585_v23 = vadd.f32 %v8689_v9, %v11303_v16 }
 0x38f   : > { %v11396_v1 = vadd.f32 %v8795_v37, %v4577_v39 }
 0x390   : > { %v8690_v33 = vpop.f32.mrb[208].mxu1 }
 0x391   : > { %v8796_v50 = vpop.f32.mrb[236].mxu0  ;;  %v8691_v22 = vpop.f32.mrb[209].mxu1 }
 0x392   : > { %v8797_v46 = vpop.f32.mrb[237].mxu0  ;;  %v8692_v32 = vadd.f32 %v8691_v22, %v8690_v33  ;;  %v8693_v28 = vpop.f32.mrb[210].mxu1 }
 0x393   : > { %v8798_v51 = vadd.f32 %v8797_v46, %v8796_v50  ;;  %v8799_v60 = vpop.f32.mrb[238].mxu0  ;;  %v8694_v13 = vpop.f32.mrb[211].mxu1 }
 0x394   : > { %v8800_v42 = vpop.f32.mrb[239].mxu0  ;;  %v4590_v24 = vadd.f32 %v8692_v32, %v11307_v25  ;;  %v8695_v56 = vadd.f32 %v8694_v13, %v8693_v28 }
 0x395   : > { %v8801_v29 = vadd.f32 %v8800_v42, %v8799_v60  ;;  %v11399_v30 = vadd.f32 %v8798_v51, %v4582_v0 }
 0x396   : > { %v4593_v16 = vadd.f32 %v8695_v56, %v11309_v11 }
 0x397   : > { %v11402_v63 = vadd.f32 %v8801_v29, %v4585_v23 }
 0x398   : > { %v8696_v53 = vpop.f32.mrb[212].mxu1 }
 0x399   : > { %v8802_v44 = vpop.f32.mrb[240].mxu0  ;;  %v8697_v8 = vpop.f32.mrb[213].mxu1 }
 0x39a   : > { %v8803_v39 = vpop.f32.mrb[241].mxu0  ;;  %v8698_v15 = vadd.f32 %v8697_v8, %v8696_v53  ;;  %v8699_v41 = vpop.f32.mrb[214].mxu1 }
 0x39b   : > { %v8804_v20 = vadd.f32 %v8803_v39, %v8802_v44  ;;  %v8805_v26 = vpop.f32.mrb[242].mxu0  ;;  %v8700_v3 = vpop.f32.mrb[215].mxu1 }
 0x39c   : > { %v8806_v4 = vpop.f32.mrb[243].mxu0  ;;  %v4598_v25 = vadd.f32 %v8698_v15, %v11313_v43  ;;  %v8701_v38 = vadd.f32 %v8700_v3, %v8699_v41 }
 0x39d   : > { %v8807_v21 = vadd.f32 %v8806_v4, %v8805_v26  ;;  %v11405_v31 = vadd.f32 %v8804_v20, %v4590_v24 }
 0x39e   : > { %v4601_v11 = vadd.f32 %v8701_v38, %v11315_v6 }
 0x39f   : > { %v11408_v19 = vadd.f32 %v8807_v21, %v4593_v16 }
 0x3a0   : > { %v8702_v0 = vpop.f32.mrb[216].mxu1 }
 0x3a1   : > { %v8808_v9 = vpop.f32.mrb[244].mxu0  ;;  %v8703_v37 = vpop.f32.mrb[217].mxu1 }
 0x3a2   : > { %v8809_v23 = vpop.f32.mrb[245].mxu0  ;;  %v8704_v33 = vadd.f32 %v8703_v37, %v8702_v0  ;;  %v8705_v22 = vpop.f32.mrb[218].mxu1 }
 0x3a3   : > { %v8810_v50 = vadd.f32 %v8809_v23, %v8808_v9  ;;  %v8811_v46 = vpop.f32.mrb[246].mxu0  ;;  %v8706_v32 = vpop.f32.mrb[219].mxu1 }
 0x3a4   : > { %v8812_v51 = vpop.f32.mrb[247].mxu0  ;;  %v4606_v43 = vadd.f32 %v8704_v33, %v11319_v48  ;;  %v8707_v28 = vadd.f32 %v8706_v32, %v8705_v22 }
 0x3a5   : > { %v8813_v60 = vadd.f32 %v8812_v51, %v8811_v46  ;;  %v11411_v13 = vadd.f32 %v8810_v50, %v4598_v25 }
 0x3a6   : > { %v4609_v6 = vadd.f32 %v8707_v28, %v11321_v35 }
 0x3a7   : > { %v11414_v42 = vadd.f32 %v8813_v60, %v4601_v11 }
 0x3a8   : > { %v8708_v24 = vpop.f32.mrb[220].mxu1 }
 0x3a9   : > { %v8814_v56 = vpop.f32.mrb[248].mxu0  ;;  %v8709_v29 = vpop.f32.mrb[221].mxu1 }
 0x3aa   : > { %v8815_v16 = vpop.f32.mrb[249].mxu0  ;;  %v8710_v53 = vadd.f32 %v8709_v29, %v8708_v24  ;;  %v8711_v8 = vpop.f32.mrb[222].mxu1 }
 0x3ab   : > { %v8816_v44 = vadd.f32 %v8815_v16, %v8814_v56  ;;  %v8817_v39 = vpop.f32.mrb[250].mxu0  ;;  %v8712_v15 = vpop.f32.mrb[223].mxu1 }
 0x3ac   : > { %v8818_v20 = vpop.f32.mrb[251].mxu0  ;;  %v4614_v48 = vadd.f32 %v8710_v53, %v11325_v36  ;;  %v8713_v41 = vadd.f32 %v8712_v15, %v8711_v8 }
 0x3ad   : > { %v8819_v26 = vadd.f32 %v8818_v20, %v8817_v39  ;;  %v11417_v3 = vadd.f32 %v8816_v44, %v4606_v43  ;;  %v9552_v43 = vld [vmem:[%s12352_s8 + $0x4] ss:$8 sps:$4 sm:$0xff]  }
 0x3ae   : > { %v4617_v35 = vadd.f32 %v8713_v41, %v11327_v17  ;;  %5134 = vmatprep.mubr.bf16.mxu0 %v9552_v43 }
 0x3af   : > { %v11420_v4 = vadd.f32 %v8819_v26, %v4609_v6 }
 0x3b0   : > { %v8714_v25 = vpop.f32.mrb[224].mxu1 }
 0x3b1   : > { %v8820_v38 = vpop.f32.mrb[252].mxu0  ;;  %v8715_v21 = vpop.f32.mrb[225].mxu1 }
 0x3b2   : > { %v8821_v11 = vpop.f32.mrb[253].mxu0  ;;  %v8716_v0 = vadd.f32 %v8715_v21, %v8714_v25  ;;  %v8717_v37 = vpop.f32.mrb[226].mxu1 }
 0x3b3   : > { %v8822_v9 = vadd.f32 %v8821_v11, %v8820_v38  ;;  %v8823_v23 = vpop.f32.mrb[254].mxu0  ;;  %v8718_v33 = vpop.f32.mrb[227].mxu1 }
 0x3b4   : > { %v8824_v50 = vpop.f32.mrb[255].mxu0  ;;  %v4622_v36 = vadd.f32 %v8716_v0, %v11331_v55  ;;  %v8719_v22 = vadd.f32 %v8718_v33, %v8717_v37 }
 0x3b5   : > { %v8825_v46 = vadd.f32 %v8824_v50, %v8823_v23  ;;  %v11423_v32 = vadd.f32 %v8822_v9, %v4614_v48 }
 0x3b6   : > { %v4625_v17 = vadd.f32 %v8719_v22, %v11333_v18 }
 0x3b7   : > { %v11426_v51 = vadd.f32 %v8825_v46, %v4617_v35 }
 0x3b8   : > { %v8720_v28 = vpop.f32.mrb[228].mxu1 }
 0x3b9   : > { %v8826_v60 = vpop.f32.mrb[0].mxu0  ;;  %v8721_v6 = vpop.f32.mrb[229].mxu1 }
 0x3ba   : > { %v8827_v24 = vpop.f32.mrb[1].mxu0  ;;  %v8722_v56 = vadd.f32 %v8721_v6, %v8720_v28  ;;  %v8723_v55 = vpop.f32.mrb[230].mxu1 }
 0x3bb   : > { %v8828_v29 = vadd.f32 %v8827_v24, %v8826_v60  ;;  %v8829_v16 = vpop.f32.mrb[2].mxu0  ;;  %v8724_v53 = vpop.f32.mrb[231].mxu1 }
 0x3bc   : > { %v8830_v44 = vpop.f32.mrb[3].mxu0  ;;  %v4630_v8 = vadd.f32 %v8722_v56, %v11337_v54  ;;  %v8725_v18 = vadd.f32 %v8724_v53, %v8723_v55 }
 0x3bd   : > { %v8831_v39 = vadd.f32 %v8830_v44, %v8829_v16  ;;  %v11432_v15 = vadd.f32 %v8828_v29, %v4622_v36 }
 0x3be   : > { %v4633_v20 = vadd.f32 %v8725_v18, %v11339_v7 }
 0x3bf   : > { %v11435_v48 = vadd.f32 %v8831_v39, %v4625_v17 }
 0x3c0   : > { %v8726_v41 = vpop.f32.mrb[232].mxu1 }
 0x3c1   : > { %v8832_v26 = vpop.f32.mrb[4].mxu0  ;;  %v8727_v35 = vpop.f32.mrb[233].mxu1 }
 0x3c2   : > { %v8833_v25 = vpop.f32.mrb[5].mxu0  ;;  %v8728_v38 = vadd.f32 %v8727_v35, %v8726_v41  ;;  %v8729_v11 = vpop.f32.mrb[234].mxu1 }
 0x3c3   : > { %v8834_v21 = vadd.f32 %v8833_v25, %v8832_v26  ;;  %v8835_v0 = vpop.f32.mrb[6].mxu0  ;;  %v8730_v9 = vpop.f32.mrb[235].mxu1 }
 0x3c4   : > { %v8836_v37 = vpop.f32.mrb[7].mxu0  ;;  %v4638_v54 = vadd.f32 %v8728_v38, %v11343_v5  ;;  %v8731_v23 = vadd.f32 %v8730_v9, %v8729_v11  ;;  %v9563_v38 = vld [vmem:[%s12350_s6] sm:$0xff]  }
 0x3c5   : > { %v8837_v33 = vadd.f32 %v8836_v37, %v8835_v0  ;;  %v11438_v50 = vadd.f32 %v8834_v21, %v4630_v8 }
 0x3c6   : > { %v4641_v7 = vadd.f32 %v8731_v23, %v11345_v14  ;;  %v9565_v23 = vld [vmem:[%s12350_s6 + $0x8] sm:$0xff]  }
 0x3c7   : > { %v11441_v36 = vadd.f32 %v8837_v33, %v4633_v20 }
 0x3c8   : > { %v8732_v22 = vpop.f32.mrb[236].mxu1 }
 0x3c9   : > { %v8838_v46 = vpop.f32.mrb[8].mxu0  ;;  %v8733_v17 = vpop.f32.mrb[237].mxu1 }
 0x3ca   : > { %v8839_v43 = vpop.f32.mrb[9].mxu0  ;;  %v8734_v28 = vadd.f32 %v8733_v17, %v8732_v22  ;;  %v8735_v6 = vpop.f32.mrb[238].mxu1  ;;  %v9566_v22 = vld [vmem:[%s12350_s6 + $0x50] sm:$0xff]  }
 0x3cb   : > { %v8840_v60 = vadd.f32 %v8839_v43, %v8838_v46  ;;  %v8841_v24 = vpop.f32.mrb[10].mxu0  ;;  %v8736_v56 = vpop.f32.mrb[239].mxu1 }
 0x3cc   : > { %v8842_v29 = vpop.f32.mrb[11].mxu0  ;;  %v4646_v5 = vadd.f32 %v8734_v28, %v11350_v59  ;;  %v8737_v55 = vadd.f32 %v8736_v56, %v8735_v6  ;;  %v9562_v59 = vld [vmem:[%s12350_s6 + $0x40] sm:$0xff]   ;;  %v9567_v28 = vld [vmem:[%s12350_s6 + $0x10] sm:$0xff]   ;;  %v9569_v56 = vld [vmem:[%s12350_s6 + $0x58] sm:$0xff]  }
 0x3cd   : > { %v8843_v16 = vadd.f32 %v8842_v29, %v8841_v24  ;;  %v11444_v53 = vadd.f32 %v8840_v60, %v4638_v54  ;;  %8938 = vmatprep.subr.bf16.mxu1 %v9562_v59 }
 0x3ce   : > { %v4649_v14 = vadd.f32 %v8737_v55, %v11352_v34  ;;  %v9564_v34 = vld [vmem:[%s12350_s6 + $0x48] sm:$0xff]   ;;  %8939 = vmatpush3.bf16.msra.mxu1 %v9563_v38 }
 0x3cf   : > { %v11447_v44 = vadd.f32 %v8843_v16, %v4641_v7  ;;  %8940 = vmatprep.subr.bf16.mxu1 %v9564_v34 }
 0x3d0   : > { %v8738_v8 = vpop.f32.mrb[240].mxu1 }
 0x3d1   : > { %v8844_v18 = vpop.f32.mrb[12].mxu0  ;;  %v8739_v39 = vpop.f32.mrb[241].mxu1 }
 0x3d2   : > { %v8845_v20 = vpop.f32.mrb[13].mxu0  ;;  %v8740_v41 = vadd.f32 %v8739_v39, %v8738_v8  ;;  %v8741_v35 = vpop.f32.mrb[242].mxu1  ;;  %8941 = vmatpush3.bf16.msra.mxu1 %v9565_v23 }
 0x3d3   : > { %v8846_v26 = vadd.f32 %v8845_v20, %v8844_v18  ;;  %v8847_v25 = vpop.f32.mrb[14].mxu0  ;;  %v8742_v21 = vpop.f32.mrb[243].mxu1  ;;  %8942 = vmatprep.subr.bf16.mxu1 %v9566_v22  ;;  %v9571_v18 = vld [vmem:[%s12350_s6 + $0x18] sm:$0xff]  }
 0x3d4   : > { %v8848_v11 = vpop.f32.mrb[15].mxu0  ;;  %v4654_v0 = vadd.f32 %v8740_v41, %v11356_v2  ;;  %v8743_v9 = vadd.f32 %v8742_v21, %v8741_v35  ;;  %v9573_v41 = vld [vmem:[%s12350_s6 + $0x60] sm:$0xff]  }
 0x3d5   : > { %v8849_v37 = vadd.f32 %v8848_v11, %v8847_v25  ;;  %v11459_v54 = vadd.f32 %v8846_v26, %v4646_v5 }
 0x3d6   : > { %v4657_v33 = vadd.f32 %v8743_v9, %v11358_v40  ;;  %8943 = vmatpush3.bf16.msra.mxu1 %v9567_v28 }
 0x3d7   : > { %v11465_v7 = vadd.f32 %v8849_v37, %v4649_v14  ;;  %8944 = vmatprep.subr.bf16.mxu1 %v9569_v56 }
 0x3d8   : > { %v8744_v2 = vpop.f32.mrb[244].mxu1 }
 0x3d9   : > { %v8850_v46 = vpop.f32.mrb[16].mxu0  ;;  %v8745_v17 = vpop.f32.mrb[245].mxu1 }
 0x3da   : > { %v8851_v43 = vpop.f32.mrb[17].mxu0  ;;  %v8746_v60 = vadd.f32 %v8745_v17, %v8744_v2  ;;  %v8747_v24 = vpop.f32.mrb[246].mxu1  ;;  %8945 = vmatpush3.bf16.msra.mxu1 %v9571_v18 }
 0x3db   : > { %v8852_v6 = vadd.f32 %v8851_v43, %v8850_v46  ;;  %v8853_v40 = vpop.f32.mrb[18].mxu0  ;;  %v8748_v29 = vpop.f32.mrb[247].mxu1  ;;  %8946 = vmatprep.subr.bf16.mxu1 %v9573_v41 }
 0x3dc   : > { %v8854_v5 = vpop.f32.mrb[19].mxu0  ;;  %v4662_v55 = vadd.f32 %v8746_v60, %v11362_v57  ;;  %v8749_v16 = vadd.f32 %v8748_v29, %v8747_v24 }
 0x3dd   : > { %v8855_v14 = vadd.f32 %v8854_v5, %v8853_v40  ;;  %v11477_v8 = vadd.f32 %v8852_v6, %v4654_v0 }
 0x3de   : > { %v4665_v39 = vadd.f32 %v8749_v16, %v11364_v58 }
 0x3df   : > { %v11483_v20 = vadd.f32 %v8855_v14, %v4657_v33 }
 0x3e0   : > { %v8750_v26 = vpop.f32.mrb[248].mxu1 }
 0x3e1   : > { %v8856_v57 = vpop.f32.mrb[20].mxu0  ;;  %v8751_v35 = vpop.f32.mrb[249].mxu1 }
 0x3e2   : > { %v8857_v25 = vpop.f32.mrb[21].mxu0  ;;  %v8752_v59 = vadd.f32 %v8751_v35, %v8750_v26  ;;  %v8753_v34 = vpop.f32.mrb[250].mxu1 }
 0x3e3   : > { %v8858_v38 = vadd.f32 %v8857_v25, %v8856_v57  ;;  %v8859_v21 = vpop.f32.mrb[22].mxu0  ;;  %v8754_v11 = vpop.f32.mrb[251].mxu1 }
 0x3e4   : > { %v8860_v0 = vpop.f32.mrb[23].mxu0  ;;  %v4670_v58 = vadd.f32 %v8752_v59, %v11368_v61  ;;  %v8755_v9 = vadd.f32 %v8754_v11, %v8753_v34 }
 0x3e5   : > { %v8861_v37 = vadd.f32 %v8860_v0, %v8859_v21  ;;  %v11489_v23 = vadd.f32 %v8858_v38, %v4662_v55 }
 0x3e6   : > { %v4673_v33 = vadd.f32 %v8755_v9, %v11370_v27 }
 0x3e7   : > { %v11492_v22 = vadd.f32 %v8861_v37, %v4665_v39 }
 0x3e8   : > { %v8756_v2 = vpop.f32.mrb[252].mxu1 }
 0x3e9   : > { %v8862_v46 = vpop.f32.mrb[24].mxu0  ;;  %v8757_v17 = vpop.f32.mrb[253].mxu1 }
 0x3ea   : > { %v8863_v43 = vpop.f32.mrb[25].mxu0  ;;  %v8758_v28 = vadd.f32 %v8757_v17, %v8756_v2  ;;  %v8759_v6 = vpop.f32.mrb[254].mxu1 }
 0x3eb   : > { %v8864_v60 = vadd.f32 %v8863_v43, %v8862_v46  ;;  %v8865_v24 = vpop.f32.mrb[26].mxu0  ;;  %v8760_v40 = vpop.f32.mrb[255].mxu1 }
 0x3ec   : > { %v8866_v56 = vpop.f32.mrb[27].mxu0  ;;  %v4678_v61 = vadd.f32 %v8758_v28, %v11374_v49  ;;  %v8761_v29 = vadd.f32 %v8760_v40, %v8759_v6 }
 0x3ed   : > { %v8867_v5 = vadd.f32 %v8866_v56, %v8865_v24  ;;  %v11495_v55 = vadd.f32 %v8864_v60, %v4670_v58 }
 0x3ee   : > { %v4681_v27 = vadd.f32 %v8761_v29, %v11377_v62 }
 0x3ef   : > { %v11498_v16 = vadd.f32 %v8867_v5, %v4673_v33 }
 0x3f0   : > { %v9278_v18 = vpop.f32.mrb[0].mxu1 }
 0x3f1   : > { %v8868_v14 = vpop.f32.mrb[28].mxu0  ;;  %v4888_v39 = vadd.f32 %v9278_v18, %v11387_v12  ;;  %v4879_v26 = vpop.f32.mrb[1].mxu1 }
 0x3f2   : > { %v8869_v41 = vpop.f32.mrb[29].mxu0  ;;  %v4880_v35 = vadd.f32 %v4879_v26, %v11381_v47  ;;  %v9279_v59 = vpop.f32.mrb[2].mxu1 }
 0x3f3   : > { %v8870_v57 = vadd.f32 %v8869_v41, %v8868_v14  ;;  %v8871_v25 = vpop.f32.mrb[30].mxu0  ;;  %v4891_v49 = vadd.f32 %v9279_v59, %v11390_v45  ;;  %v4882_v34 = vpop.f32.mrb[3].mxu1  ;;  %v5008_v0 = vmax.f32 %v4888_v39, 0.0 }
 0x3f4   : > { %v8872_v38 = vpop.f32.mrb[31].mxu0  ;;  %v4883_v62 = vadd.f32 %v4882_v34, %v11384_v10  ;;  %v5006_v9 = vmax.f32 %v4880_v35, 0.0 }
 0x3f5   : > { %v8873_v21 = vadd.f32 %v8872_v38, %v8871_v25  ;;  %v11504_v11 = vadd.f32 %v8870_v57, %v4678_v61  ;;  %v5009_v58 = vmax.f32 %v4891_v49, 0.0 }
 0x3f6   : > { %v5007_v12 = vmax.f32 %v4883_v62, 0.0 }
 0x3f7   : > { %v11506_v37 = vadd.f32 %v8873_v21, %v4681_v27  ;;  %v11508_v33 = vpack.c.bf16 %v5009_v58, %v5008_v0 }
 0x3f8   : > { %v11510_v47 = vpack.c.bf16 %v5007_v12, %v5006_v9  ;;  %v9282_v2 = vpop.f32.mrb[4].mxu1 }
 0x3f9   : > { %v4904_v45 = vadd.f32 %v9282_v2, %v11399_v30  ;;  %v4895_v46 = vpop.f32.mrb[5].mxu1 }
 0x3fa   : > { %v4896_v17 = vadd.f32 %v4895_v46, %v11393_v52  ;;  %v9283_v43 = vpop.f32.mrb[6].mxu1 }
 0x3fb   : > { %v4907_v10 = vadd.f32 %v9283_v43, %v11402_v63  ;;  %v4898_v28 = vpop.f32.mrb[7].mxu1  ;;  %v5012_v6 = vmax.f32 %v4904_v45, 0.0 }
 0x3fc   : > { %v4899_v60 = vadd.f32 %v4898_v28, %v11396_v1  ;;  %v5010_v40 = vmax.f32 %v4896_v17, 0.0 }
 0x3fd   : > { %v5013_v24 = vmax.f32 %v4907_v10, 0.0 }
 0x3fe   : > { %v5011_v56 = vmax.f32 %v4899_v60, 0.0 }
 0x3ff   : > { %v11516_v61 = vpack.c.bf16 %v5013_v24, %v5012_v6 }
 0x400   : > { %v11518_v29 = vpack.c.bf16 %v5011_v56, %v5010_v40  ;;  %v9286_v5 = vpop.f32.mrb[8].mxu1 }
 0x401   : > { %v4920_v30 = vadd.f32 %v9286_v5, %v11411_v13  ;;  %v4911_v27 = vpop.f32.mrb[9].mxu1 }
 0x402   : > { %v4912_v52 = vadd.f32 %v4911_v27, %v11405_v31  ;;  %v9287_v14 = vpop.f32.mrb[10].mxu1 }
 0x403   : > { %v4923_v63 = vadd.f32 %v9287_v14, %v11414_v42  ;;  %v4914_v18 = vpop.f32.mrb[11].mxu1  ;;  %v5016_v39 = vmax.f32 %v4920_v30, 0.0 }
 0x404   : > { %v4915_v1 = vadd.f32 %v4914_v18, %v11408_v19  ;;  %v5014_v26 = vmax.f32 %v4912_v52, 0.0 }
 0x405   : > { %v5017_v41 = vmax.f32 %v4923_v63, 0.0 }
 0x406   : > { %v5015_v57 = vmax.f32 %v4915_v1, 0.0 }
 0x407   : > { %v11524_v35 = vpack.c.bf16 %v5017_v41, %v5016_v39 }
 0x408   : > { %v11526_v25 = vpack.c.bf16 %v5015_v57, %v5014_v26  ;;  %v9290_v59 = vpop.f32.mrb[12].mxu1 }
 0x409   : > { %v4936_v13 = vadd.f32 %v9290_v59, %v11423_v32  ;;  %v4927_v49 = vpop.f32.mrb[13].mxu1 }
 0x40a   : > { %v4928_v31 = vadd.f32 %v4927_v49, %v11417_v3  ;;  %v9291_v38 = vpop.f32.mrb[14].mxu1 }
 0x40b   : > { %v4939_v42 = vadd.f32 %v9291_v38, %v11426_v51  ;;  %v4930_v34 = vpop.f32.mrb[15].mxu1  ;;  %v5020_v21 = vmax.f32 %v4936_v13, 0.0 }
 0x40c   : > { %v4931_v19 = vadd.f32 %v4930_v34, %v11420_v4  ;;  %v5018_v0 = vmax.f32 %v4928_v31, 0.0 }
 0x40d   : > { %v5021_v62 = vmax.f32 %v4939_v42, 0.0 }
 0x40e   : > { %v5019_v58 = vmax.f32 %v4931_v19, 0.0 }
 0x40f   : > { %v11532_v9 = vpack.c.bf16 %v5021_v62, %v5020_v21 }
 0x410   : > { %v11534_v12 = vpack.c.bf16 %v5019_v58, %v5018_v0  ;;  %v9294_v2 = vpop.f32.mrb[16].mxu1  ;;  %v9574_v58 = vld [vmem:[%s12350_s6 + $0x88] sm:$0xff]  }
 0x411   : > { %v4952_v32 = vadd.f32 %v9294_v2, %v11438_v50  ;;  %v4943_v45 = vpop.f32.mrb[17].mxu1  ;;  %v9556_v2 = vld [vmem:[%s12352_s8 + $0x20] ss:$8 sps:$4 sm:$0xff]  }
 0x412   : > { %v4944_v3 = vadd.f32 %v4943_v45, %v11432_v15  ;;  %v9295_v46 = vpop.f32.mrb[18].mxu1  ;;  %v9559_v45 = vld [vmem:[%s12352_s8 + $0x30] ss:$8 sps:$4 sm:$0xff]  }
 0x413   : > { %v4955_v51 = vadd.f32 %v9295_v46, %v11441_v36  ;;  %v4946_v17 = vpop.f32.mrb[19].mxu1  ;;  %v5024_v43 = vmax.f32 %v4952_v32, 0.0  ;;  %v9561_v32 = vld [vmem:[%s12352_s8 + $0x34] ss:$8 sps:$4 sm:$0xff]  }
 0x414   : > { %v4947_v4 = vadd.f32 %v4946_v17, %v11435_v48  ;;  %v5022_v28 = vmax.f32 %v4944_v3, 0.0  ;;  %v9576_v3 = vld [vmem:[%s12350_s6 + $0xd0] sm:$0xff]   ;;  %v9580_v17 = vld [vmem:[%s12350_s6 + $0xd8] sm:$0xff]  }
 0x415   : > { %v5025_v10 = vmax.f32 %v4955_v51, 0.0  ;;  %v9578_v46 = vld [vmem:[%s12350_s6 + $0x90] sm:$0xff]   ;;  %v9575_v51 = vld [vmem:[%s12350_s6 + $0x20] sm:$0xff]  }
 0x416   : > { %v5023_v60 = vmax.f32 %v4947_v4, 0.0  ;;  %8947 = vmatpush3.bf16.msra.mxu1 %v9575_v51  ;;  %v9582_v4 = vld [vmem:[%s12350_s6 + $0x98] sm:$0xff]  }
 0x417   : > { %v5055_v6 = vpack.c.bf16 %v5025_v10, %v5024_v43  ;;  %v9584_v43 = vld [vmem:[%s12350_s6 + $0xe0] sm:$0xff]  }
 0x418   : > { %v5054_v24 = vpack.c.bf16 %v5023_v60, %v5022_v28  ;;  %v9298_v40 = vpop.f32.mrb[20].mxu1  ;;  %v9586_v10 = vld [vmem:[%s12350_s6 + $0xa0] sm:$0xff]   ;;  %v9577_v28 = vld [vmem:[%s12350_s6 + $0x68] sm:$0xff]  }
 0x419   : > { %v4968_v56 = vadd.f32 %v9298_v40, %v11459_v54  ;;  %v4959_v5 = vpop.f32.mrb[21].mxu1  ;;  %v9579_v60 = vld [vmem:[%s12350_s6 + $0x28] sm:$0xff]   ;;  %8948 = vmatprep.subr.bf16.mxu1 %v9577_v28  ;;  %v9581_v40 = vld [vmem:[%s12350_s6 + $0x70] sm:$0xff]   ;;  %v9612_v28 = vld [vmem:[%s12350_s6 + $0x1d8] sm:$0xff]  }
 0x41a   : > { %v4960_v50 = vadd.f32 %v4959_v5, %v11444_v53  ;;  %v9299_v30 = vpop.f32.mrb[22].mxu1  ;;  %8898 = vmatprep.subr.bf16.mxu0 %v5054_v24  ;;  %8949 = vmatpush3.bf16.msra.mxu1 %v9579_v60  ;;  %v9589_v24 = vld [vmem:[%s12350_s6 + $0xa8] sm:$0xff]   ;;  %v9592_v5 = vld [vmem:[%s12350_s6 + $0xf0] sm:$0xff]  }
 0x41b   : > { %v4971_v15 = vadd.f32 %v9299_v30, %v11465_v7  ;;  %v4962_v36 = vpop.f32.mrb[23].mxu1  ;;  %8899 = vmatpush3.bf16.msra.mxu0 %v11510_v47  ;;  %v5028_v27 = vmax.f32 %v4968_v56, 0.0  ;;  %v9583_v56 = vld [vmem:[%s12350_s6 + $0x30] sm:$0xff]   ;;  %8950 = vmatprep.subr.bf16.mxu1 %v9581_v40  ;;  %v9585_v30 = vld [vmem:[%s12350_s6 + $0x78] sm:$0xff]   ;;  %v9605_v40 = vld [vmem:[%s12350_s6 + $0x160] sm:$0xff]  }
 0x41c   : > { %v4963_v48 = vadd.f32 %v4962_v36, %v11447_v44  ;;  %8900 = vmatprep.subr.bf16.mxu0 %v5055_v6  ;;  %v5026_v14 = vmax.f32 %v4960_v50, 0.0  ;;  %v9588_v6 = vld [vmem:[%s12350_s6 + $0xe8] sm:$0xff]   ;;  %v9593_v50 = vld [vmem:[%s12350_s6 + $0xb0] sm:$0xff]   ;;  %v9596_v36 = vld [vmem:[%s12350_s6 + $0xf8] sm:$0xff]  }
 0x41d   : > { %v5029_v52 = vmax.f32 %v4971_v15, 0.0  ;;  %v9587_v15 = vld [vmem:[%s12350_s6 + $0x38] sm:$0xff]  }
 0x41e   : > { %v5027_v63 = vmax.f32 %v4963_v48, 0.0  ;;  %8951 = vmatpush3.bf16.msra.mxu1 %v9583_v56  ;;  %v9597_v48 = vld [vmem:[%s12350_s6 + $0xb8] sm:$0xff]  }
 0x41f   : > { %v5057_v18 = vpack.c.bf16 %v5029_v52, %v5028_v27  ;;  %8901 = vmatpush3.bf16.msra.mxu0 %v11508_v33  ;;  %8952 = vmatprep.subr.bf16.mxu1 %v9585_v30  ;;  %v9590_v27 = vld [vmem:[%s12350_s6 + $0x140] sm:$0xff]  }
 0x420   : > { %v5056_v54 = vpack.c.bf16 %v5027_v63, %v5026_v14  ;;  %v9302_v1 = vpop.f32.mrb[24].mxu1  ;;  %v9600_v52 = vld [vmem:[%s12350_s6 + $0x1c0] sm:$0xff]  }
 0x421   : > { %v4984_v53 = vadd.f32 %v9302_v1, %v11489_v23  ;;  %v4975_v39 = vpop.f32.mrb[25].mxu1  ;;  %v9616_v30 = vld [vmem:[%s12350_s6 + $0x1e0] sm:$0xff]  }
 0x422   : > { %v4976_v7 = vadd.f32 %v4975_v39, %v11477_v8  ;;  %v9303_v41 = vpop.f32.mrb[26].mxu1  ;;  %8902 = vmatprep.subr.bf16.mxu0 %v5056_v54  ;;  %8953 = vmatpush3.bf16.msra.mxu1 %v9587_v15 }
 0x423   : > { %v4987_v47 = vadd.f32 %v9303_v41, %v11492_v22  ;;  %v4978_v44 = vpop.f32.mrb[27].mxu1  ;;  %8903 = vmatpush3.bf16.msra.mxu0 %v11518_v29  ;;  %v5032_v57 = vmax.f32 %v4984_v53, 0.0  ;;  %9018 = vmatprep.subr.bf16.mxu1 %v9590_v27  ;;  %v5193_v41 = vld [vmem:[#allocation3 + $0x1] sm:$0xff] }
 0x424   : > { %v4979_v26 = vadd.f32 %v4978_v44, %v11483_v20  ;;  %8904 = vmatprep.subr.bf16.mxu0 %v5057_v18  ;;  %v5030_v33 = vmax.f32 %v4976_v7, 0.0 }
 0x425   : > { %v5033_v59 = vmax.f32 %v4987_v47, 0.0 }
 0x426   : > { %v5031_v13 = vmax.f32 %v4979_v26, 0.0 }
 0x427   : > { %v5059_v49 = vpack.c.bf16 %v5033_v59, %v5032_v57  ;;  %8905 = vmatpush3.bf16.msra.mxu0 %v11516_v61 }
 0x428   : > { %v5058_v23 = vpack.c.bf16 %v5031_v13, %v5030_v33  ;;  %v9306_v31 = vpop.f32.mrb[28].mxu1 }
 0x429   : > { %v5000_v8 = vadd.f32 %v9306_v31, %v11504_v11  ;;  %v4991_v38 = vpop.f32.mrb[29].mxu1 }
 0x42a   : > { %v4992_v22 = vadd.f32 %v4991_v38, %v11495_v55  ;;  %v9307_v42 = vpop.f32.mrb[30].mxu1  ;;  %8906 = vmatprep.subr.bf16.mxu0 %v5058_v23  ;;  %v9568_v55 = vld [vmem:[%s12350_s6 + $0xc0] sm:$0xff]   ;;  %v5209_v38 = vld [vmem:[#allocation3 + $0x2] sm:$0xff] }
 0x42b   : > { %v5003_v29 = vadd.f32 %v9307_v42, %v11506_v37  ;;  %v4994_v20 = vpop.f32.mrb[31].mxu1  ;;  %8907 = vmatpush3.bf16.msra.mxu0 %v11526_v25  ;;  %v5036_v19 = vmax.f32 %v5000_v8, 0.0  ;;  %v9555_v37 = vld [vmem:[%s12352_s8 + $0x14] ss:$8 sps:$4 sm:$0xff]   ;;  %v9572_v25 = vld [vmem:[%s12350_s6 + $0xc8] sm:$0xff]   ;;  %v11675_v23 = vld [vmem:[#allocation2] sm:$0xff] }
 0x42c   : > { %v4995_v34 = vadd.f32 %v4994_v20, %v11498_v16  ;;  %8908 = vmatprep.subr.bf16.mxu0 %v5059_v49  ;;  %v5034_v61 = vmax.f32 %v4992_v22, 0.0  ;;  %v9550_v16 = vld [vmem:[%s12352_s8] ss:$8 sps:$4 sm:$0xff]  }
 0x42d   : > { %v5037_v21 = vmax.f32 %v5003_v29, 0.0  ;;  %v9591_v8 = vld [vmem:[%s12350_s6 + $0x100] sm:$0xff]   ;;  %v9594_v42 = vld [vmem:[%s12350_s6 + $0x148] sm:$0xff]  }
 0x42e   : > { %v5035_v62 = vmax.f32 %v4995_v34, 0.0  ;;  %v9602_v20 = vld [vmem:[%s12350_s6 + $0x180] sm:$0xff]  }
 0x42f   : > { %v5061_v0 = vpack.c.bf16 %v5037_v21, %v5036_v19  ;;  %8909 = vmatpush3.bf16.msra.mxu0 %v11524_v35  ;;  %v9570_v35 = vld [vmem:[%s12350_s6 + $0x80] sm:$0xff]   ;;  %v9604_v19 = vld [vmem:[%s12350_s6 + $0x1c8] sm:$0xff]  }
 0x430   : > { %v5060_v11 = vpack.c.bf16 %v5035_v62, %v5034_v61  ;;  %v9595_v61 = vld [vmem:[%s12350_s6 + $0x108] sm:$0xff]  }
 0x432   : > { %8910 = vmatprep.subr.bf16.mxu0 %v5060_v11 }
 0x433   : > { %8911 = vmatpush3.bf16.msra.mxu0 %v11534_v12  ;;  %v9558_v12 = vld [vmem:[%s12352_s8 + $0x24] ss:$8 sps:$4 sm:$0xff]  }
 0x434   : > { %8912 = vmatprep.subr.bf16.mxu0 %v5061_v0  ;;  %v9598_v0 = vld [vmem:[%s12350_s6 + $0x150] sm:$0xff]  }
 0x437   : > { %8913 = vmatpush3.bf16.msra.mxu0 %v11532_v9  ;;  %v9553_v9 = vld [vmem:[%s12352_s8 + $0x10] ss:$8 sps:$4 sm:$0xff]  }
 0x438   : > { %8978 = vmatprep.subr.bf16.mxu0 %v9568_v55 }
 0x43a   : > { %5135 = vmatmul.mubr.bf16.vlgmr.msra.gmra.mrb[32].mxu0 %v9550_v16  ;;  %v9606_v16 = vld [vmem:[%s12350_s6 + $0x188] sm:$0xff]  }
 0x43b   : > { %5142 = vmatprep.mubr.bf16.mxu0 %v9555_v37  ;;  %8979 = vmatpush3.bf16.msra.mxu0 %v9570_v35  ;;  %v9608_v37 = vld [vmem:[%s12350_s6 + $0x1d0] sm:$0xff]  }
 0x43c   : > { %8980 = vmatprep.subr.bf16.mxu0 %v9572_v25 }
 0x43f   : > { %8981 = vmatpush3.bf16.msra.mxu0 %v9574_v58 }
 0x440   : > { %8982 = vmatprep.subr.bf16.mxu0 %v9576_v3 }
 0x442   : > { %5143 = vmatmul.mubr.bf16.gmra.mrb[36].mxu0 %v9553_v9 }
 0x443   : > { %5150 = vmatprep.mubr.bf16.mxu0 %v9558_v12  ;;  %8983 = vmatpush3.bf16.msra.mxu0 %v9578_v46  ;;  %v9601_v46 = vld [vmem:[%s12350_s6 + $0x158] sm:$0xff]  }
 0x444   : > { %8984 = vmatprep.subr.bf16.mxu0 %v9580_v17 }
 0x447   : > { %8985 = vmatpush3.bf16.msra.mxu0 %v9582_v4 }
 0x448   : > { %8986 = vmatprep.subr.bf16.mxu0 %v9584_v43  ;;  %v9610_v43 = vld [vmem:[%s12350_s6 + $0x190] sm:$0xff]  }
 0x44a   : > { %5151 = vmatmul.mubr.bf16.gmra.mrb[40].mxu0 %v9556_v2 }
 0x44b   : > { %5158 = vmatprep.mubr.bf16.mxu0 %v9561_v32  ;;  %8987 = vmatpush3.bf16.msra.mxu0 %v9586_v10 }
 0x44c   : > { %8988 = vmatprep.subr.bf16.mxu0 %v9588_v6  ;;  %v9603_v6 = vld [vmem:[%s12350_s6 + $0x118] sm:$0xff]  }
 0x44f   : > { %8989 = vmatpush3.bf16.msra.mxu0 %v9589_v24 }
 0x450   : > { %8990 = vmatprep.subr.bf16.mxu0 %v9592_v5 }
 0x452   : > { %5159 = vmatmul.mubr.bf16.gmra.mrb[44].mxu0 %v9559_v45  ;;  %v9599_v45 = vld [vmem:[%s12350_s6 + $0x110] sm:$0xff]  }
 0x453   : > { %8991 = vmatpush3.bf16.msra.mxu0 %v9593_v50  ;;  %v9614_v50 = vld [vmem:[%s12350_s6 + $0x198] sm:$0xff]  }
 0x454   : > { %8992 = vmatprep.subr.bf16.mxu0 %v9596_v36 }
 0x457   : > { %8993 = vmatpush3.bf16.msra.mxu0 %v9597_v48 }
 0x458   : > { %9058 = vmatprep.subr.bf16.mxu0 %v9600_v52 }
 0x50d   : > { %v8914_v14 = vpop.f32.mrb[32].mxu0 }
 0x50e   : > { %v8915_v63 = vpop.f32.mrb[33].mxu0 }
 0x50f   : > { %v11656_v18 = vadd.f32 %v8915_v63, %v8914_v14  ;;  %v8917_v54 = vpop.f32.mrb[34].mxu0 }
 0x510   : > { %v8918_v1 = vpop.f32.mrb[35].mxu0 }
 0x511   : > { %5169 = vst.msk [vmem:[#allocation3 + $0x11] sm:$0xff] %vm5168_vm2, %v11656_v18  ;;  %v11660_v53 = vadd.f32 %v8918_v1, %v8917_v54  ;;  %v9607_v54 = vld [vmem:[%s12350_s6 + $0x120] sm:$0xff]  }
 0x513   : > { %5170 = vst.msk [vmem:[#allocation3 + $0x21] sm:$0xff] %vm5168_vm2, %v11660_v53 }
 0x515   : > { %v8920_v39 = vpop.f32.mrb[36].mxu0 }
 0x516   : > { %v8921_v7 = vpop.f32.mrb[37].mxu0 }
 0x517   : > { %v11664_v47 = vadd.f32 %v8921_v7, %v8920_v39  ;;  %v8923_v44 = vpop.f32.mrb[38].mxu0  ;;  %v9609_v39 = vld [vmem:[%s12350_s6 + $0x168] sm:$0xff]  }
 0x518   : > { %v5178_v26 = vld [vmem:[#allocation3 + $0x10] sm:$0xff]  ;;  %v8924_v59 = vpop.f32.mrb[39].mxu0 }
 0x519   : > { %v11666_v57 = vld [vmem:[#allocation3 + $0x11] sm:$0xff]  ;;  %5171 = vst.msk [vmem:[#allocation3 + $0x31] sm:$0xff] %vm5168_vm2, %v11664_v47  ;;  %v11673_v49 = vadd.f32 %v8924_v59, %v8923_v44  ;;  %v5185_v31 = vpack.c.bf16 %v5178_v26, %v11675_v23 }
 0x51a   : > { %v11668_v33 = vld [vmem:[#allocation3 + $0x12] sm:$0xff]  ;;  %v5201_v13 = vpack.c.bf16 %v11666_v57, %v5193_v41  ;;  %v5274_v22 = vld [vmem:[#allocation3 + $0x20] sm:$0xff] }
 0x51b   : > { %5172 = vst.msk [vmem:[#allocation3 + $0x41] sm:$0xff] %vm5168_vm2, %v11673_v49  ;;  %v5233_v29 = vpack.c.bf16 %v5274_v22, %v5178_v26  ;;  %v5217_v34 = vpack.c.bf16 %v11668_v33, %v5209_v38  ;;  %v11707_v35 = vld [vmem:[#allocation3 + $0x21] sm:$0xff]  ;;  %v9618_v26 = vld [vmem:[%s12350_s6 + $0x1a0] sm:$0xff]   ;;  %v9621_v38 = vld [vmem:[%s12350_s6 + $0x1a8] sm:$0xff]  }
 0x51c   : > { %5973 = vmatprep.mubr.bf16.mxu1 %v5201_v13  ;;  %v11732_v4 = vld [vmem:[#allocation3 + $0x22] sm:$0xff]  ;;  %v9620_v13 = vld [vmem:[%s12350_s6 + $0x1e8] sm:$0xff]  }
 0x51d   : > { %5974 = vmatmul.mubr.bf16.vlgmr.msra.gmra.mrb[32].mxu1 %v5185_v31  ;;  %v8926_v21 = vpop.f32.mrb[40].mxu0  ;;  %6038 = vmatprep.mubr.bf16.mxu0 %v5233_v29  ;;  %v9611_v31 = vld [vmem:[%s12350_s6 + $0x128] sm:$0xff]  }
 0x51e   : > { %9019 = vmatpush3.bf16.msra.mxu1 %v9591_v8  ;;  %v8927_v62 = vpop.f32.mrb[41].mxu0  ;;  %6039 = vmatmul.mubr.bf16.vlgmr.msra.gmra.mrb[48].mxu0 %v5217_v34  ;;  %v9613_v8 = vld [vmem:[%s12350_s6 + $0x170] sm:$0xff]  }
 0x51f   : > { %9020 = vmatprep.subr.bf16.mxu1 %v9594_v42  ;;  %v11699_v11 = vadd.f32 %v8927_v62, %v8926_v21  ;;  %v8929_v55 = vpop.f32.mrb[42].mxu0  ;;  %9059 = vmatpush3.bf16.msra.mxu0 %v9602_v20  ;;  %v9615_v21 = vld [vmem:[%s12350_s6 + $0x130] sm:$0xff]  }
 0x520   : > { %v5275_v25 = vld [vmem:[#allocation3 + $0x30] sm:$0xff]  ;;  %v8930_v9 = vpop.f32.mrb[43].mxu0  ;;  %9060 = vmatprep.subr.bf16.mxu0 %v9604_v19 }
 0x521   : > { %v11709_v58 = vld [vmem:[#allocation3 + $0x31] sm:$0xff]  ;;  %5173 = vst.msk [vmem:[#allocation3 + $0x51] sm:$0xff] %vm5168_vm2, %v11699_v11  ;;  %v11717_v2 = vadd.f32 %v8930_v9, %v8929_v55  ;;  %v11719_v32 = vpack.c.bf16 %v5275_v25, %v5274_v22  ;;  %v9623_v22 = vld [vmem:[%s12350_s6 + $0x1f0] sm:$0xff]   ;;  %v5265_v55 = vpack.c.bf16 %v11732_v4, %v11668_v33  ;;  %v9619_v9 = vld [vmem:[%s12350_s6 + $0x138] sm:$0xff]  }
 0x522   : > { %9021 = vmatpush3.bf16.msra.mxu1 %v9595_v61  ;;  %v11715_v12 = vpack.c.bf16 %v11709_v58, %v11707_v35  ;;  %v11724_v3 = vld [vmem:[#allocation3 + $0x32] sm:$0xff]  ;;  %v5181_v51 = vld [vmem:[#allocation3 + $0x40] sm:$0xff]  ;;  %v9617_v61 = vld [vmem:[%s12350_s6 + $0x178] sm:$0xff]  }
 0x523   : > { %9022 = vmatprep.subr.bf16.mxu1 %v9598_v0  ;;  %5174 = vst.msk [vmem:[#allocation3 + $0x61] sm:$0xff] %vm5168_vm2, %v11717_v2  ;;  %9061 = vmatpush3.bf16.msra.mxu0 %v9606_v16  ;;  %v5234_v17 = vpack.c.bf16 %v5181_v51, %v5275_v25  ;;  %v11740_v10 = vpack.c.bf16 %v11724_v3, %v11732_v4  ;;  %v11760_v15 = vld [vmem:[#allocation3 + $0x41] sm:$0xff]  ;;  %v9625_v4 = vld [vmem:[%s12350_s6 + $0x208] sm:$0xff]  }
 0x524   : > { %5981 = vmatprep.mubr.bf16.mxu1 %v11715_v12  ;;  %9062 = vmatprep.subr.bf16.mxu0 %v9608_v37  ;;  %v5308_v41 = vld [vmem:[#allocation3 + $0x42] sm:$0xff] }
 0x525   : > { %5982 = vmatmul.mubr.bf16.gmra.mrb[36].mxu1 %v11719_v32  ;;  %v8932_v60 = vpop.f32.mrb[44].mxu0  ;;  %6046 = vmatprep.mubr.bf16.mxu0 %v5234_v17  ;;  %v9624_v25 = vld [vmem:[%s12350_s6 + $0x1b0] sm:$0xff]   ;;  %v9626_v33 = vld [vmem:[%s12350_s6 + $0x1f8] sm:$0xff]   ;;  %v5249_v17 = vpack.c.bf16 %v11707_v35, %v11666_v57  ;;  %v5250_v57 = vpack.c.bf16 %v11760_v15, %v11709_v58 }
 0x526   : > { %9023 = vmatpush3.bf16.msra.mxu1 %v9599_v45  ;;  %v8933_v24 = vpop.f32.mrb[45].mxu0  ;;  %6047 = vmatmul.mubr.bf16.gmra.mrb[52].mxu0 %v11740_v10  ;;  %v9629_v35 = vld [vmem:[%s12350_s6 + $0x218] sm:$0xff]  }
 0x527   : > { %9024 = vmatprep.subr.bf16.mxu1 %v9601_v46  ;;  %v11752_v56 = vadd.f32 %v8933_v24, %v8932_v60  ;;  %v8935_v5 = vpop.f32.mrb[46].mxu0  ;;  %9063 = vmatpush3.bf16.msra.mxu0 %v9610_v43  ;;  %v9622_v46 = vld [vmem:[%s12350_s6 + $0x200] sm:$0xff]   ;;  %v5266_v43 = vpack.c.bf16 %v5308_v41, %v11724_v3  ;;  %v9631_v60 = vld [vmem:[%s12350_s6 + $0x228] sm:$0xff]  }
 0x528   : > { %v11762_v36 = vld [vmem:[#allocation3 + $0x51] sm:$0xff]  ;;  %v8936_v27 = vpop.f32.mrb[47].mxu0  ;;  %9064 = vmatprep.subr.bf16.mxu0 %v9612_v28 }
 0x529   : > { %v5182_v48 = vld [vmem:[#allocation3 + $0x50] sm:$0xff]  ;;  %5175 = vst.msk [vmem:[#allocation3 + $0x71] sm:$0xff] %vm5168_vm2, %v11752_v56  ;;  %v11770_v14 = vpack.c.bf16 %v11762_v36, %v11760_v15  ;;  %v11777_v1 = vadd.f32 %v8936_v27, %v8935_v5  ;;  %v9632_v5 = vld [vmem:[%s12350_s6 + $0x230] sm:$0xff]   ;;  %v9633_v15 = vld [vmem:[%s12350_s6 + $0x238] sm:$0xff]  }
 0x52a   : > { %v11764_v52 = vld [vmem:[#allocation3 + $0x52] sm:$0xff]  ;;  %9025 = vmatpush3.bf16.msra.mxu1 %v9603_v6  ;;  %v11772_v63 = vpack.c.bf16 %v5182_v48, %v5181_v51  ;;  %v5183_v7 = vld [vmem:[#allocation3 + $0x60] sm:$0xff]  ;;  %v9627_v51 = vld [vmem:[%s12350_s6 + $0x1b8] sm:$0xff]  }
 0x52b   : > { %9026 = vmatprep.subr.bf16.mxu1 %v9605_v40  ;;  %5989 = vmatprep.mubr.bf16.mxu1 %v11770_v14  ;;  %5176 = vst.msk [vmem:[#allocation3 + $0x81] sm:$0xff] %vm5168_vm2, %v11777_v1  ;;  %v5235_v44 = vpack.c.bf16 %v5183_v7, %v5182_v48  ;;  %v11790_v59 = vpack.c.bf16 %v11764_v52, %v5308_v41  ;;  %v11808_v42 = vld [vmem:[#allocation3 + $0x61] sm:$0xff]  ;;  %v5297_v40 = vld [vmem:[#allocation3 + $0x91] sm:$0xff] }
 0x52c   : > { %9065 = vmatpush3.bf16.msra.mxu0 %v9614_v50  ;;  %v5215_v37 = vld [vmem:[#allocation3 + $0x62] sm:$0xff]  ;;  %v5251_v58 = vpack.c.bf16 %v11808_v42, %v11762_v36  ;;  %v5313_v48 = vld [vmem:[#allocation3 + $0x92] sm:$0xff] }
 0x52d   : > { %5990 = vmatmul.mubr.bf16.gmra.mrb[40].mxu1 %v11772_v63  ;;  %9066 = vmatprep.subr.bf16.mxu0 %v9616_v30  ;;  %v5267_v3 = vpack.c.bf16 %v5215_v37, %v11764_v52  ;;  %v7767_v52 = vld [vmem:[%s12351_s7] ss:$0 sm:$0xff] }
 0x52e   : > { %9027 = vmatpush3.bf16.msra.mxu1 %v9607_v54  ;;  %6054 = vmatprep.mubr.bf16.mxu0 %v5235_v44 }
 0x52f   : > { %9028 = vmatprep.subr.bf16.mxu1 %v9609_v39  ;;  %6055 = vmatmul.mubr.bf16.gmra.mrb[56].mxu0 %v11790_v59 }
 0x530   : > { %9067 = vmatpush3.bf16.msra.mxu0 %v9618_v26  ;;  %v11810_v29 = vld [vmem:[#allocation3 + $0x71] sm:$0xff] }
 0x531   : > { %v5184_v20 = vld [vmem:[#allocation3 + $0x70] sm:$0xff]  ;;  %9068 = vmatprep.subr.bf16.mxu0 %v9620_v13  ;;  %v5204_v34 = vpack.c.bf16 %v11810_v29, %v11808_v42 }
 0x532   : > { %9029 = vmatpush3.bf16.msra.mxu1 %v9611_v31  ;;  %v11814_v19 = vpack.c.bf16 %v5184_v20, %v5183_v7  ;;  %v11822_v62 = vld [vmem:[#allocation3 + $0x80] sm:$0xff]  ;;  %v5216_v0 = vld [vmem:[#allocation3 + $0x72] sm:$0xff] }
 0x533   : > { %9030 = vmatprep.subr.bf16.mxu1 %v9613_v8  ;;  %5997 = vmatprep.mubr.bf16.mxu1 %v5204_v34  ;;  %v5236_v16 = vpack.c.bf16 %v11822_v62, %v5184_v20  ;;  %v11834_v45 = vpack.c.bf16 %v5216_v0, %v5215_v37  ;;  %v5264_v28 = vld [vmem:[#allocation3 + $0x82] sm:$0xff]  ;;  %v5285_v36 = vpack.c.bf16 %v11675_v23, %v11822_v62 }
 0x534   : > { %9069 = vmatpush3.bf16.msra.mxu0 %v9621_v38  ;;  %v5268_v6 = vpack.c.bf16 %v5264_v28, %v5216_v0  ;;  %v5248_v24 = vld [vmem:[#allocation3 + $0x81] sm:$0xff]  ;;  %v5317_v27 = vpack.c.bf16 %v5313_v48, %v5264_v28 }
 0x535   : > { %5998 = vmatmul.mubr.bf16.gmra.mrb[44].mxu1 %v11814_v19  ;;  %9070 = vmatprep.subr.bf16.mxu0 %v9623_v22  ;;  %v5301_v50 = vpack.c.bf16 %v5297_v40, %v5248_v24  ;;  %v5252_v30 = vpack.c.bf16 %v5248_v24, %v11810_v29 }
 0x536   : > { %9031 = vmatpush3.bf16.msra.mxu1 %v9615_v21  ;;  %6103 = vmatprep.mubr.bf16.mxu1 %v5265_v55 }
 0x537   : > { %9032 = vmatprep.subr.bf16.mxu1 %v9617_v61  ;;  %6062 = vmatprep.mubr.bf16.mxu0 %v5236_v16 }
 0x538   : > { %6063 = vmatmul.mubr.bf16.gmra.mrb[60].mxu0 %v11834_v45 }
 0x539   : > { %9071 = vmatpush3.bf16.msra.mxu0 %v9624_v25  ;;  %6168 = vmatprep.mubr.bf16.mxu0 %v11715_v12  ;;  %v9628_v12 = vld [vmem:[%s12350_s6 + $0x210] sm:$0xff]  }
 0x53a   : > { %9033 = vmatpush3.bf16.msra.mxu1 %v9619_v9  ;;  %9072 = vmatprep.subr.bf16.mxu0 %v9626_v33 }
 0x53b   : > { %9308 = vmatprep.subr.bf16.mxu1 %v9622_v46 }
 0x53d   : > { %6104 = vmatmul.mubr.bf16.vlgmr.msra.gmra.mrb[48].mxu1 %v5249_v17  ;;  %9073 = vmatpush3.bf16.msra.mxu0 %v9627_v51 }
 0x53e   : > { %9309 = vmatpush3.bf16.msra.mxu1 %v9622_v46  ;;  %6111 = vmatprep.mubr.bf16.mxu1 %v5266_v43 }
 0x53f   : > { %9310 = vmatprep.subr.bf16.mxu1 %v9625_v4 }
 0x540   : > { %6169 = vmatmul.mubr.bf16.vlgmr.msra.gmra.mrb[64].mxu0 %v11719_v32  ;;  %v9630_v32 = vld [vmem:[%s12350_s6 + $0x220] sm:$0xff]  }
 0x541   : > { %6176 = vmatprep.mubr.bf16.mxu0 %v11770_v14 }
 0x542   : > { %9311 = vmatpush3.bf16.msra.mxu1 %v9625_v4 }
 0x543   : > { %9312 = vmatprep.subr.bf16.mxu1 %v9628_v12 }
 0x545   : > { %6112 = vmatmul.mubr.bf16.gmra.mrb[52].mxu1 %v5250_v57 }
 0x546   : > { %9313 = vmatpush3.bf16.msra.mxu1 %v9628_v12  ;;  %6119 = vmatprep.mubr.bf16.mxu1 %v5267_v3 }
 0x547   : > { %9314 = vmatprep.subr.bf16.mxu1 %v9629_v35 }
 0x548   : > { %6177 = vmatmul.mubr.bf16.gmra.mrb[68].mxu0 %v11772_v63 }
 0x549   : > { %6184 = vmatprep.mubr.bf16.mxu0 %v5204_v34 }
 0x54a   : > { %9315 = vmatpush3.bf16.msra.mxu1 %v9629_v35 }
 0x54b   : > { %9316 = vmatprep.subr.bf16.mxu1 %v9630_v32 }
 0x54d   : > { %6120 = vmatmul.mubr.bf16.gmra.mrb[56].mxu1 %v5251_v58 }
 0x54e   : > { %9317 = vmatpush3.bf16.msra.mxu1 %v9630_v32  ;;  %6127 = vmatprep.mubr.bf16.mxu1 %v5268_v6 }
 0x54f   : > { %9318 = vmatprep.subr.bf16.mxu1 %v9631_v60 }
 0x550   : > { %6185 = vmatmul.mubr.bf16.gmra.mrb[72].mxu0 %v11814_v19 }
 0x551   : > { %6192 = vmatprep.mubr.bf16.mxu0 %v5301_v50 }
 0x552   : > { %9319 = vmatpush3.bf16.msra.mxu1 %v9631_v60 }
 0x553   : > { %9320 = vmatprep.subr.bf16.mxu1 %v9632_v5 }
 0x555   : > { %6128 = vmatmul.mubr.bf16.gmra.mrb[60].mxu1 %v5252_v30 }
 0x556   : > { %9321 = vmatpush3.bf16.msra.mxu1 %v9632_v5  ;;  %9324 = vmatprep.mubr.bf16.mxu1 %v11740_v10 }
 0x557   : > { %9322 = vmatprep.subr.bf16.mxu1 %v9633_v15 }
 0x558   : > { %6193 = vmatmul.mubr.bf16.gmra.mrb[76].mxu0 %v5285_v36 }
 0x55a   : > { %9323 = vmatpush3.bf16.msra.mxu1 %v9633_v15 }
 0x55b   : > { %9332 = vmatprep.subr.bf16.mxu1 %v11675_v23 }
 0x55d   : > { %9325 = vmatmul.mubr.bf16.vlgmr.msra.gmra.mrb[64].mxu1 %v11790_v59 }
 0x55e   : > { %9328 = vmatprep.mubr.bf16.mxu1 %v11834_v45 }
 0x565   : > { %9329 = vmatmul.mubr.bf16.gmra.mrb[68].mxu1 %v5317_v27 }
 0x566   : > { %9340 = vmatprep.mubr.msk.bf16.mxu1 %vm9777_vm3, %v11675_v23 }
 0x5f0   : > { %v8954_v10 = vpop.f32.mrb[32].mxu1 }
 0x5f1   : > { %v8955_v14 = vpop.f32.mrb[33].mxu1  ;;  %v8994_v39 = vpop.f32.mrb[48].mxu0 }
 0x5f2   : > { %v8956_v63 = vadd.f32 %v8955_v14, %v8954_v10  ;;  %v8957_v54 = vpop.f32.mrb[34].mxu1  ;;  %v8995_v41 = vpop.f32.mrb[49].mxu0 }
 0x5f3   : > { %v8958_v7 = vpop.f32.mrb[35].mxu1  ;;  %v8996_v59 = vadd.f32 %v8995_v41, %v8994_v39  ;;  %v8997_v13 = vpop.f32.mrb[50].mxu0 }
 0x5f4   : > { %v5976_v44 = vadd.f32 %v8956_v63, %v7767_v52  ;;  %v8959_v26 = vadd.f32 %v8958_v7, %v8957_v54  ;;  %v8998_v31 = vpop.f32.mrb[51].mxu0 }
 0x5f5   : > { %v8999_v22 = vadd.f32 %v8998_v31, %v8997_v13 }
 0x5f6   : > { %v5979_v8 = vadd.f32 %v8959_v26, %v7767_v52  ;;  %v6041_v38 = vadd.f32 %v8996_v59, %v5976_v44 }
 0x5f8   : > { %v8960_v42 = vpop.f32.mrb[36].mxu1  ;;  %v6044_v29 = vadd.f32 %v8999_v22, %v5979_v8 }
 0x5f9   : > { %v8961_v20 = vpop.f32.mrb[37].mxu1  ;;  %v9000_v21 = vpop.f32.mrb[52].mxu0 }
 0x5fa   : > { %v8962_v34 = vadd.f32 %v8961_v20, %v8960_v42  ;;  %v8963_v19 = vpop.f32.mrb[38].mxu1  ;;  %v9001_v62 = vpop.f32.mrb[53].mxu0 }
 0x5fb   : > { %v8964_v61 = vpop.f32.mrb[39].mxu1  ;;  %v9002_v16 = vadd.f32 %v9001_v62, %v9000_v21  ;;  %v9003_v37 = vpop.f32.mrb[54].mxu0 }
 0x5fc   : > { %v5984_v0 = vadd.f32 %v8962_v34, %v7767_v52  ;;  %v8965_v55 = vadd.f32 %v8964_v61, %v8963_v19  ;;  %v9004_v25 = vpop.f32.mrb[55].mxu0 }
 0x5fd   : > { %v9005_v33 = vadd.f32 %v9004_v25, %v9003_v37 }
 0x5fe   : > { %v5987_v9 = vadd.f32 %v8965_v55, %v7767_v52  ;;  %v6049_v45 = vadd.f32 %v9002_v16, %v5984_v0 }
 0x600   : > { %v8966_v46 = vpop.f32.mrb[40].mxu1  ;;  %v6052_v51 = vadd.f32 %v9005_v33, %v5987_v9 }
 0x601   : > { %v8967_v17 = vpop.f32.mrb[41].mxu1 }
 0x602   : > { %v8968_v4 = vadd.f32 %v8967_v17, %v8966_v46  ;;  %v8969_v43 = vpop.f32.mrb[42].mxu1  ;;  %v9006_v12 = vpop.f32.mrb[56].mxu0 }
 0x603   : > { %v8970_v57 = vpop.f32.mrb[43].mxu1  ;;  %v9007_v35 = vpop.f32.mrb[57].mxu0 }
 0x604   : > { %v5992_v3 = vadd.f32 %v8968_v4, %v7767_v52  ;;  %v8971_v32 = vadd.f32 %v8970_v57, %v8969_v43  ;;  %v9008_v28 = vadd.f32 %v9007_v35, %v9006_v12  ;;  %v9009_v58 = vpop.f32.mrb[58].mxu0 }
 0x605   : > { %v9010_v60 = vpop.f32.mrb[59].mxu0 }
 0x606   : > { %v5995_v6 = vadd.f32 %v8971_v32, %v7767_v52  ;;  %v6057_v24 = vadd.f32 %v9008_v28, %v5992_v3  ;;  %v9011_v40 = vadd.f32 %v9010_v60, %v9009_v58 }
 0x608   : > { %v8972_v5 = vpop.f32.mrb[44].mxu1  ;;  %v6060_v50 = vadd.f32 %v9011_v40, %v5995_v6 }
 0x609   : > { %v8973_v30 = vpop.f32.mrb[45].mxu1 }
 0x60a   : > { %v8974_v15 = vadd.f32 %v8973_v30, %v8972_v5  ;;  %v8975_v36 = vpop.f32.mrb[46].mxu1 }
 0x60b   : > { %v8976_v48 = vpop.f32.mrb[47].mxu1  ;;  %v9012_v27 = vpop.f32.mrb[60].mxu0 }
 0x60c   : > { %v6000_v10 = vadd.f32 %v8974_v15, %v7767_v52  ;;  %v8977_v14 = vadd.f32 %v8976_v48, %v8975_v36  ;;  %v9013_v63 = vpop.f32.mrb[61].mxu0 }
 0x60d   : > { %v9014_v54 = vadd.f32 %v9013_v63, %v9012_v27  ;;  %v9015_v39 = vpop.f32.mrb[62].mxu0 }
 0x60e   : > { %v6003_v7 = vadd.f32 %v8977_v14, %v7767_v52  ;;  %v9016_v41 = vpop.f32.mrb[63].mxu0 }
 0x60f   : > { %v6065_v44 = vadd.f32 %v9014_v54, %v6000_v10  ;;  %v9017_v26 = vadd.f32 %v9016_v41, %v9015_v39 }
 0x610   : > { %v9034_v59 = vpop.f32.mrb[48].mxu1 }
 0x611   : > { %v9035_v13 = vpop.f32.mrb[49].mxu1  ;;  %v6068_v31 = vadd.f32 %v9017_v26, %v6003_v7 }
 0x612   : > { %v9036_v8 = vadd.f32 %v9035_v13, %v9034_v59  ;;  %v9037_v22 = vpop.f32.mrb[50].mxu1 }
 0x613   : > { %v9038_v42 = vpop.f32.mrb[51].mxu1  ;;  %v9074_v20 = vpop.f32.mrb[64].mxu0 }
 0x614   : > { %v6106_v34 = vadd.f32 %v9036_v8, %v6041_v38  ;;  %v9039_v19 = vadd.f32 %v9038_v42, %v9037_v22  ;;  %v9075_v21 = vpop.f32.mrb[65].mxu0 }
 0x615   : > { %v9076_v61 = vadd.f32 %v9075_v21, %v9074_v20  ;;  %v9077_v62 = vpop.f32.mrb[66].mxu0 }
 0x616   : > { %v6109_v0 = vadd.f32 %v9039_v19, %v6044_v29  ;;  %v9078_v55 = vpop.f32.mrb[67].mxu0 }
 0x617   : > { %v9079_v16 = vadd.f32 %v9078_v55, %v9077_v62  ;;  %v6171_v37 = vadd.f32 %v9076_v61, %v6106_v34 }
 0x618   : > { %v9040_v52 = vpop.f32.mrb[52].mxu1 }
 0x619   : > { %v9041_v25 = vpop.f32.mrb[53].mxu1  ;;  %v6174_v9 = vadd.f32 %v9079_v16, %v6109_v0 }
 0x61a   : > { %v9042_v33 = vadd.f32 %v9041_v25, %v9040_v52  ;;  %v9043_v46 = vpop.f32.mrb[54].mxu1 }
 0x61b   : > { %v9044_v17 = vpop.f32.mrb[55].mxu1  ;;  %v9080_v4 = vpop.f32.mrb[68].mxu0 }
 0x61c   : > { %v6114_v43 = vadd.f32 %v9042_v33, %v6049_v45  ;;  %v9045_v12 = vadd.f32 %v9044_v17, %v9043_v46  ;;  %v9081_v57 = vpop.f32.mrb[69].mxu0 }
 0x61d   : > { %v9082_v35 = vadd.f32 %v9081_v57, %v9080_v4  ;;  %v9083_v38 = vpop.f32.mrb[70].mxu0 }
 0x61e   : > { %v6117_v3 = vadd.f32 %v9045_v12, %v6052_v51  ;;  %v9084_v32 = vpop.f32.mrb[71].mxu0 }
 0x61f   : > { %v9085_v28 = vadd.f32 %v9084_v32, %v9083_v38  ;;  %v6179_v58 = vadd.f32 %v9082_v35, %v6114_v43 }
 0x620   : > { %v9046_v29 = vpop.f32.mrb[56].mxu1 }
 0x621   : > { %v9047_v60 = vpop.f32.mrb[57].mxu1  ;;  %v6182_v6 = vadd.f32 %v9085_v28, %v6117_v3 }
 0x622   : > { %v9048_v40 = vadd.f32 %v9047_v60, %v9046_v29  ;;  %v9049_v5 = vpop.f32.mrb[58].mxu1 }
 0x623   : > { %v9050_v30 = vpop.f32.mrb[59].mxu1  ;;  %v9086_v15 = vpop.f32.mrb[72].mxu0 }
 0x624   : > { %v6122_v36 = vadd.f32 %v9048_v40, %v6057_v24  ;;  %v9051_v48 = vadd.f32 %v9050_v30, %v9049_v5  ;;  %v9087_v27 = vpop.f32.mrb[73].mxu0 }
 0x625   : > { %v9088_v10 = vadd.f32 %v9087_v27, %v9086_v15  ;;  %v9089_v45 = vpop.f32.mrb[74].mxu0  ;;  %v6346_v27 = vld [vmem:[%s12354_s10 + $0x40] sm:$0xff] }
 0x626   : > { %v6125_v14 = vadd.f32 %v9051_v48, %v6060_v50  ;;  %v9090_v63 = vpop.f32.mrb[75].mxu0 }
 0x627   : > { %v9091_v54 = vadd.f32 %v9090_v63, %v9089_v45  ;;  %v6187_v39 = vadd.f32 %v9088_v10, %v6122_v36  ;;  %v6350_v10 = vld [vmem:[%s12354_s10 + $0x60] sm:$0xff] }
 0x628   : > { %v9052_v51 = vpop.f32.mrb[60].mxu1  ;;  %v9634_v45 = vld [vmem:[%s12353_s9] sm:$0xff]   ;;  %v7851_v63 = vcombine.high %v6346_v27, %v6350_v10 }
 0x629   : > { %v9053_v7 = vpop.f32.mrb[61].mxu1  ;;  %v6190_v41 = vadd.f32 %v9091_v54, %v6125_v14  ;;  %v6358_v54 = vld [vmem:[%s12354_s10 + $0xa0] sm:$0xff] }
 0x62a   : > { %v9054_v26 = vadd.f32 %v9053_v7, %v9052_v51  ;;  %v9055_v59 = vpop.f32.mrb[62].mxu1 }
 0x62b   : > { %v9056_v13 = vpop.f32.mrb[63].mxu1  ;;  %v9092_v8 = vpop.f32.mrb[76].mxu0 }
 0x62c   : > { %v6130_v22 = vadd.f32 %v9054_v26, %v6065_v44  ;;  %v9057_v42 = vadd.f32 %v9056_v13, %v9055_v59  ;;  %v9093_v20 = vpop.f32.mrb[77].mxu0  ;;  %v6344_v26 = vld [vmem:[%s12354_s10 + $0x30] sm:$0xff] }
 0x62d   : > { %v9094_v34 = vadd.f32 %v9093_v20, %v9092_v8  ;;  %v9095_v24 = vpop.f32.mrb[78].mxu0  ;;  %v6348_v8 = vld [vmem:[%s12354_s10 + $0x50] sm:$0xff] }
 0x62e   : > { %v6133_v19 = vadd.f32 %v9057_v42, %v6068_v31  ;;  %v9096_v21 = vpop.f32.mrb[79].mxu0 }
 0x62f   : > { %v9097_v61 = vadd.f32 %v9096_v21, %v9095_v24  ;;  %v6195_v62 = vadd.f32 %v9094_v34, %v6130_v22  ;;  %v6352_v22 = vld [vmem:[%s12354_s10 + $0x70] sm:$0xff]  ;;  %v6362_v34 = vld [vmem:[%s12354_s10 + $0xc0] sm:$0xff] }
 0x630   : > { %v9326_v50 = vpop.f32.mrb[64].mxu1  ;;  %v7855_v42 = vcombine.high %v6348_v8, %v6352_v22  ;;  %v7854_v20 = vcombine.low %v6348_v8, %v6352_v22  ;;  %v6366_v24 = vld [vmem:[%s12354_s10 + $0xe0] sm:$0xff] }
 0x631   : > { %v6244_v0 = vadd.f32 %v9326_v50, %v6179_v58  ;;  %v6235_v55 = vpop.f32.mrb[65].mxu1  ;;  %v6198_v16 = vadd.f32 %v9097_v61, %v6133_v19  ;;  %v6356_v19 = vld [vmem:[%s12354_s10 + $0x90] sm:$0xff]  ;;  %v7866_v21 = vcombine.low %v6362_v34, %v6366_v24  ;;  %v7867_v61 = vcombine.high %v6362_v34, %v6366_v24  ;;  %v9641_v34 = vld [vmem:[%s12356_s12 + $0xc8] sm:$0xff]  }
 0x632   : > { %v6236_v52 = vadd.f32 %v6235_v55, %v6171_v37  ;;  %v9327_v25 = vpop.f32.mrb[66].mxu1  ;;  %v6339_v55 = vld [vmem:[%s12354_s10 + $0x8] sm:$0xff] }
 0x633   : > { %v6268_v33 = vadd.f32 %v11664_v47, %v6244_v0  ;;  %v6247_v46 = vadd.f32 %v9327_v25, %v6182_v6  ;;  %v6238_v17 = vpop.f32.mrb[67].mxu1  ;;  %v9642_v24 = vld [vmem:[%s12356_s12 + $0x88] sm:$0xff]  }
 0x634   : > { %v6266_v44 = vadd.f32 %v11656_v18, %v6236_v52  ;;  %v6239_v4 = vadd.f32 %v6238_v17, %v6174_v9  ;;  %v9778_v52 = vmov 0   ;;  %v6368_v17 = vld [vmem:[%s12354_s10 + $0xf0] sm:$0xff] }
 0x635   : > { %v6269_v43 = vadd.f32 %v11673_v49, %v6247_v46  ;;  %v6276_v12 = vmax.f32 %v6268_v33, 0.0  ;;  %v6364_v46 = vld [vmem:[%s12354_s10 + $0xd0] sm:$0xff]  ;;  %6651 = vmatprep.mubr.bf16.mxu0 %v9778_v52 }
 0x636   : > { %v6267_v31 = vadd.f32 %v11660_v53, %v6239_v4  ;;  %v6274_v35 = vmax.f32 %v6266_v44, 0.0  ;;  %v7871_v44 = vcombine.high %v6364_v46, %v6368_v17  ;;  %v7870_v4 = vcombine.low %v6364_v46, %v6368_v17  ;;  %v9664_v46 = vld [vmem:[%s12356_s12 + $0x38] sm:$0xff]   ;;  %v9667_v17 = vld [vmem:[%s12356_s12 + $0x140] sm:$0xff]  }
 0x637   : > { %v6277_v57 = vmax.f32 %v6269_v43, 0.0  ;;  %v9635_v43 = vld [vmem:[%s12356_s12 + $0x40] sm:$0xff]  }
 0x638   : > { %v6275_v38 = vmax.f32 %v6267_v31, 0.0  ;;  %v9330_v3 = vpop.f32.mrb[68].mxu1 }
 0x639   : > { %v6285_v32 = vpack.c.bf16 %v6277_v57, %v6276_v12  ;;  %v6260_v28 = vadd.f32 %v9330_v3, %v6195_v62  ;;  %v6251_v37 = vpop.f32.mrb[69].mxu1  ;;  %v6360_v62 = vld [vmem:[%s12354_s10 + $0xb0] sm:$0xff]  ;;  %v6347_v12 = vld [vmem:[%s12354_s10 + $0x48] sm:$0xff] }
 0x63a   : > { %v6284_v58 = vpack.c.bf16 %v6275_v38, %v6274_v35  ;;  %v6252_v29 = vadd.f32 %v6251_v37, %v6187_v39  ;;  %v9331_v47 = vpop.f32.mrb[70].mxu1  ;;  %v7850_v39 = vcombine.low %v6346_v27, %v6350_v10  ;;  %v7862_v50 = vcombine.low %v6356_v19, %v6360_v62  ;;  %v6351_v57 = vld [vmem:[%s12354_s10 + $0x68] sm:$0xff]  ;;  %v9636_v37 = vld [vmem:[%s12356_s12] sm:$0xff]   ;;  %v6353_v27 = vld [vmem:[%s12354_s10 + $0x78] sm:$0xff] }
 0x63b   : > { %v6272_v60 = vadd.f32 %v11752_v56, %v6260_v28  ;;  %v6263_v6 = vadd.f32 %v9331_v47, %v6198_v16  ;;  %v6254_v18 = vpop.f32.mrb[71].mxu1  ;;  %v7863_v0 = vcombine.high %v6356_v19, %v6360_v62  ;;  %v6343_v16 = vld [vmem:[%s12354_s10 + $0x28] sm:$0xff]  ;;  %v9651_v10 = vld [vmem:[%s12356_s12 + $0x60] sm:$0xff]   ;;  %v9645_v19 = vld [vmem:[%s12356_s12 + $0xd0] sm:$0xff]  }
 0x63c   : > { %v6270_v9 = vadd.f32 %v11699_v11, %v6252_v29  ;;  %v6255_v49 = vadd.f32 %v6254_v18, %v6190_v41  ;;  %9333 = vmatpush3.bf16.msra.mxu1 %v6284_v58  ;;  %v6338_v11 = vld [vmem:[%s12354_s10] sm:$0xff]  ;;  %v6340_v41 = vld [vmem:[%s12354_s10 + $0x10] sm:$0xff]  ;;  %v7844_v25 = vcombine.low %v6339_v55, %v6343_v16  ;;  %v7845_v33 = vcombine.high %v6339_v55, %v6343_v16  ;;  %v6355_v58 = vld [vmem:[%s12354_s10 + $0x88] sm:$0xff] }
 0x63d   : > { %v6273_v53 = vadd.f32 %v11777_v1, %v6263_v6  ;;  %9334 = vmatprep.subr.bf16.mxu1 %v11675_v23  ;;  %v6280_v5 = vmax.f32 %v6272_v60, 0.0  ;;  %v6342_v1 = vld [vmem:[%s12354_s10 + $0x20] sm:$0xff]  ;;  %v7847_v59 = vcombine.high %v6340_v41, %v6344_v26  ;;  %v7846_v13 = vcombine.low %v6340_v41, %v6344_v26  ;;  %v6359_v29 = vld [vmem:[%s12354_s10 + $0xa8] sm:$0xff]  ;;  %v6365_v26 = vld [vmem:[%s12354_s10 + $0xd8] sm:$0xff] }
 0x63e   : > { %v6271_v40 = vadd.f32 %v11717_v2, %v6255_v49  ;;  %v6278_v15 = vmax.f32 %v6270_v9, 0.0  ;;  %v7843_v2 = vcombine.high %v6338_v11, %v6342_v1  ;;  %v7842_v14 = vcombine.low %v6338_v11, %v6342_v1  ;;  %v9639_v47 = vld [vmem:[%s12356_s12 + $0x48] sm:$0xff]   ;;  %v9648_v1 = vld [vmem:[%s12356_s12 + $0x18] sm:$0xff]  }
 0x63f   : > { %v6281_v30 = vmax.f32 %v6273_v53, 0.0  ;;  %6619 = vmatprep.subr.bf16.mxu0 %v7847_v59  ;;  %v7852_v60 = vcombine.low %v6347_v12, %v6351_v57  ;;  %v7861_v6 = vcombine.high %v6355_v58, %v6359_v29  ;;  %v9640_v18 = vld [vmem:[%s12356_s12 + $0x8] sm:$0xff]   ;;  %v9643_v53 = vld [vmem:[%s12356_s12 + $0x50] sm:$0xff]   ;;  %v6369_v59 = vld [vmem:[%s12354_s10 + $0xf8] sm:$0xff] }
 0x640   : > { %v6279_v36 = vmax.f32 %v6271_v40, 0.0  ;;  %9335 = vmatpush3.bf16.msra.mxu1 %v6285_v32  ;;  %6620 = vmatpush1.bf16.msra.mxu0 %v7846_v13  ;;  %v7853_v32 = vcombine.high %v6347_v12, %v6351_v57  ;;  %v6363_v9 = vld [vmem:[%s12354_s10 + $0xc8] sm:$0xff]  ;;  %v7860_v40 = vcombine.low %v6355_v58, %v6359_v29  ;;  %v7873_v8 = vcombine.high %v6365_v26, %v6369_v59  ;;  %v9650_v62 = vld [vmem:[%s12356_s12 + $0x98] sm:$0xff]   ;;  %v9669_v12 = vld [vmem:[%s12356_s12 + $0x1c0] sm:$0xff]  }
 0x641   : > { %v6287_v48 = vpack.c.bf16 %v6281_v30, %v6280_v5  ;;  %9336 = vmatprep.subr.bf16.mxu1 %v11675_v23  ;;  %6621 = vmatprep.subr.bf16.mxu0 %v7855_v42  ;;  %v6367_v49 = vld [vmem:[%s12354_s10 + $0xe8] sm:$0xff]  ;;  %v9644_v30 = vld [vmem:[%s12356_s12 + $0x10] sm:$0xff]   ;;  %v7872_v22 = vcombine.low %v6365_v26, %v6369_v59  ;;  %v9637_v42 = vld [vmem:[%s12356_s12 + $0xc0] sm:$0xff]  }
 0x642   : > { %v6286_v56 = vpack.c.bf16 %v6279_v36, %v6278_v15  ;;  %v7869_v5 = vcombine.high %v6363_v9, %v6367_v49  ;;  %v6341_v15 = vld [vmem:[%s12354_s10 + $0x18] sm:$0xff]  ;;  %v9656_v41 = vld [vmem:[%s12356_s12 + $0x28] sm:$0xff]   ;;  %v6705_v57 = vld [vmem:[%s12355_s11] sm:$0xff] }
 0x643   : > { %v6345_v36 = vld [vmem:[%s12354_s10 + $0x38] sm:$0xff]  ;;  %v9657_v55 = vld [vmem:[%s12356_s12 + $0xe8] sm:$0xff]  }
 0x644   : > { %9337 = vmatpush3.bf16.msra.mxu1 %v6286_v56  ;;  %6622 = vmatpush1.bf16.msra.mxu0 %v7854_v20  ;;  %v7868_v56 = vcombine.low %v6363_v9, %v6367_v49  ;;  %v7849_v11 = vcombine.high %v6341_v15, %v6345_v36  ;;  %v9638_v20 = vld [vmem:[%s12356_s12 + $0x80] sm:$0xff]   ;;  %v9658_v16 = vld [vmem:[%s12356_s12 + $0xa8] sm:$0xff]   ;;  %v6708_v59 = vld [vmem:[%s12355_s11 + $0x18] sm:$0xff] }
 0x645   : > { %9338 = vmatprep.subr.bf16.mxu1 %v11675_v23  ;;  %v6354_v23 = vld [vmem:[%s12354_s10 + $0x80] sm:$0xff]  ;;  %6623 = vmatprep.subr.bf16.mxu0 %v7863_v0  ;;  %v6714_v29 = vld [vmem:[%s12355_s11 + $0x48] sm:$0xff] }
 0x646   : > { %v7859_v51 = vcombine.high %v6354_v23, %v6358_v54  ;;  %v7858_v7 = vcombine.low %v6354_v23, %v6358_v54  ;;  %v6357_v23 = vld [vmem:[%s12354_s10 + $0x98] sm:$0xff]  ;;  %v9654_v0 = vld [vmem:[%s12356_s12 + $0xa0] sm:$0xff]  }
 0x647   : > { %v6361_v54 = vld [vmem:[%s12354_s10 + $0xb8] sm:$0xff] }
 0x648   : > { %9339 = vmatpush3.bf16.msra.mxu1 %v6287_v48  ;;  %6624 = vmatpush1.bf16.msra.mxu0 %v7862_v50  ;;  %v9647_v48 = vld [vmem:[%s12356_s12 + $0x58] sm:$0xff]   ;;  %v7864_v13 = vcombine.low %v6357_v23, %v6361_v54  ;;  %v9653_v50 = vld [vmem:[%s12356_s12 + $0xe0] sm:$0xff]  }
 0x649   : > { %6533 = vmatprep.subr.bf16.mxu1 %v7843_v2  ;;  %6625 = vmatprep.subr.bf16.mxu0 %v7871_v44  ;;  %v6349_v2 = vld [vmem:[%s12354_s10 + $0x58] sm:$0xff]  ;;  %v9661_v44 = vld [vmem:[%s12356_s12 + $0xf0] sm:$0xff]  }
 0x64b   : > { %9341 = vmatmul.mubr.msk.bf16.vlgmr.msra.gmra.mrb[72].mxu1 %vm5168_vm2, %v9634_v45  ;;  %v7848_v45 = vcombine.low %v6341_v15, %v6345_v36 }
 0x64c   : > { %6534 = vmatpush1.bf16.msra.mxu1 %v7842_v14  ;;  %6565 = vmatprep.mubr.bf16.mxu1 %v9778_v52  ;;  %v7857_v14 = vcombine.high %v6349_v2, %v6353_v27 }
 0x64d   : > { %6535 = vmatprep.subr.bf16.mxu1 %v7851_v63  ;;  %6626 = vmatpush1.bf16.msra.mxu0 %v7870_v4  ;;  %v9652_v63 = vld [vmem:[%s12356_s12 + $0x20] sm:$0xff]   ;;  %v9662_v4 = vld [vmem:[%s12356_s12 + $0xb0] sm:$0xff]  }
 0x64e   : > { %9115 = vmatprep.subr.bf16.mxu0 %v9635_v43  ;;  %v9665_v43 = vld [vmem:[%s12356_s12 + $0xf8] sm:$0xff]  }
 0x650   : > { %6536 = vmatpush1.bf16.msra.mxu1 %v7850_v39  ;;  %v9655_v39 = vld [vmem:[%s12356_s12 + $0x68] sm:$0xff]  }
 0x651   : > { %6537 = vmatprep.subr.bf16.mxu1 %v7859_v51  ;;  %v7856_v51 = vcombine.low %v6349_v2, %v6353_v27 }
 0x654   : > { %6538 = vmatpush1.bf16.msra.mxu1 %v7858_v7  ;;  %v7865_v7 = vcombine.high %v6357_v23, %v6361_v54  ;;  %v9675_v23 = vld [vmem:[%s12356_s12 + $0x150] sm:$0xff]  }
 0x655   : > { %6539 = vmatprep.subr.bf16.mxu1 %v7867_v61  ;;  %v9649_v61 = vld [vmem:[%s12356_s12 + $0xd8] sm:$0xff]   ;;  %v9676_v54 = vld [vmem:[%s12356_s12 + $0x110] sm:$0xff]  }
 0x658   : > { %6540 = vmatpush1.bf16.msra.mxu1 %v7866_v21  ;;  %v9646_v21 = vld [vmem:[%s12356_s12 + $0x90] sm:$0xff]  }
 0x659   : > { %6576 = vmatprep.subr.bf16.mxu1 %v7845_v33  ;;  %v9663_v33 = vld [vmem:[%s12356_s12 + $0x78] sm:$0xff]  }
 0x71e   : > { %v6330_v31 = vpop.f32.mrb[72].mxu1 }
 0x71f   : > { %v9342_v35 = vpop.f32.mrb[73].mxu1 }
 0x720   : > { %v6333_v38 = vpop.f32.mrb[74].mxu1  ;;  %v6706_v35 = vld [vmem:[%s12355_s11 + $0x8] sm:$0xff] }
 0x721   : > { %v11972_v3 = vpack.c.bf16 %v6333_v38, %v6330_v31  ;;  %v9343_v28 = vpop.f32.mrb[75].mxu1  ;;  %v9666_v31 = vld [vmem:[%s12356_s12 + $0xb8] sm:$0xff]  }
 0x722   : > { %v6709_v28 = vld [vmem:[%s12355_s11 + $0x20] sm:$0xff] }
 0x723   : > { %7874 = vmatmul.mubr.msk.bf16.vlgmr.msra.gmra.mrb[76].mxu1 %vm5168_vm2, %v11972_v3  ;;  %7876 = vmatmul.mubr.msk.bf16.vlgmr.msra.gmra.mrb[80].mxu0 %vm5168_vm2, %v11972_v3 }
 0x724   : > { %6577 = vmatpush1.bf16.msra.mxu1 %v7844_v25  ;;  %6608 = vmatprep.mubr.bf16.mxu1 %v9778_v52  ;;  %v9660_v25 = vld [vmem:[%s12356_s12 + $0x30] sm:$0xff]  }
 0x725   : > { %6578 = vmatprep.subr.bf16.mxu1 %v7853_v32  ;;  %9116 = vmatpush3.bf16.msra.mxu0 %v9636_v37  ;;  %v6717_v37 = vld [vmem:[%s12355_s11 + $0x60] sm:$0xff] }
 0x726   : > { %9117 = vmatprep.subr.bf16.mxu0 %v9639_v47 }
 0x728   : > { %6579 = vmatpush1.bf16.msra.mxu1 %v7852_v60  ;;  %v6710_v60 = vld [vmem:[%s12355_s11 + $0x28] sm:$0xff] }
 0x729   : > { %6580 = vmatprep.subr.bf16.mxu1 %v7861_v6  ;;  %9118 = vmatpush3.bf16.msra.mxu0 %v9640_v18  ;;  %v6718_v6 = vld [vmem:[%s12355_s11 + $0x68] sm:$0xff] }
 0x72a   : > { %9119 = vmatprep.subr.bf16.mxu0 %v9643_v53 }
 0x72c   : > { %6581 = vmatpush1.bf16.msra.mxu1 %v7860_v40 }
 0x72d   : > { %6582 = vmatprep.subr.bf16.mxu1 %v7869_v5  ;;  %9120 = vmatpush3.bf16.msra.mxu0 %v9644_v30 }
 0x72e   : > { %9121 = vmatprep.subr.bf16.mxu0 %v9647_v48 }
 0x730   : > { %6583 = vmatpush1.bf16.msra.mxu1 %v7868_v56 }
 0x731   : > { %6662 = vmatprep.subr.bf16.mxu1 %v7849_v11  ;;  %9122 = vmatpush3.bf16.msra.mxu0 %v9648_v1 }
 0x732   : > { %9123 = vmatprep.subr.bf16.mxu0 %v9651_v10  ;;  %v9668_v10 = vld [vmem:[%s12356_s12 + $0x100] sm:$0xff]  }
 0x733   : > { %7875 = vmatmul.mubr.msk.bf16.vlgmr.msra.gmra.mrb[80].mxu1 %vm5168_vm2, %v11972_v3 }
 0x734   : > { %6663 = vmatpush1.bf16.msra.mxu1 %v7848_v45  ;;  %6694 = vmatprep.mubr.bf16.mxu1 %v9778_v52  ;;  %v9659_v52 = vld [vmem:[%s12356_s12 + $0x70] sm:$0xff]  }
 0x735   : > { %6664 = vmatprep.subr.bf16.mxu1 %v7857_v14  ;;  %9124 = vmatpush3.bf16.msra.mxu0 %v9652_v63  ;;  %v9671_v14 = vld [vmem:[%s12356_s12 + $0x148] sm:$0xff]  }
 0x736   : > { %9125 = vmatprep.subr.bf16.mxu0 %v9655_v39  ;;  %v9672_v63 = vld [vmem:[%s12356_s12 + $0x108] sm:$0xff]   ;;  %v9679_v39 = vld [vmem:[%s12356_s12 + $0x158] sm:$0xff]  }
 0x738   : > { %6665 = vmatpush1.bf16.msra.mxu1 %v7856_v51 }
 0x739   : > { %6666 = vmatprep.subr.bf16.mxu1 %v7865_v7  ;;  %9126 = vmatpush3.bf16.msra.mxu0 %v9656_v41  ;;  %v6707_v7 = vld [vmem:[%s12355_s11 + $0x10] sm:$0xff] }
 0x73a   : > { %9127 = vmatprep.subr.bf16.mxu0 %v9659_v52  ;;  %v6715_v41 = vld [vmem:[%s12355_s11 + $0x50] sm:$0xff]  ;;  %v9674_v52 = vld [vmem:[%s12356_s12 + $0x188] sm:$0xff]  }
 0x73c   : > { %6667 = vmatpush1.bf16.msra.mxu1 %v7864_v13  ;;  %v6716_v13 = vld [vmem:[%s12355_s11 + $0x58] sm:$0xff] }
 0x73d   : > { %6668 = vmatprep.subr.bf16.mxu1 %v7873_v8  ;;  %9128 = vmatpush3.bf16.msra.mxu0 %v9660_v25  ;;  %v9688_v25 = vld [vmem:[%s12356_s12 + $0x128] sm:$0xff]  }
 0x73e   : > { %9129 = vmatprep.subr.bf16.mxu0 %v9663_v33  ;;  %v9677_v33 = vld [vmem:[%s12356_s12 + $0x1d0] sm:$0xff]  }
 0x740   : > { %6669 = vmatpush1.bf16.msra.mxu1 %v7872_v22  ;;  %v9680_v22 = vld [vmem:[%s12356_s12 + $0x118] sm:$0xff]  }
 0x741   : > { %9137 = vmatprep.subr.bf16.mxu1 %v9637_v42  ;;  %9130 = vmatpush3.bf16.msra.mxu0 %v9664_v46  ;;  %v9691_v46 = vld [vmem:[%s12356_s12 + $0x170] sm:$0xff]  }
 0x742   : > { %9159 = vmatprep.subr.bf16.mxu0 %v9667_v17  ;;  %v9678_v17 = vld [vmem:[%s12356_s12 + $0x190] sm:$0xff]  }
 0x743   : > { %7877 = vmatmul.mubr.msk.bf16.vlgmr.msra.gmra.mrb[84].mxu1 %vm5168_vm2, %v11972_v3  ;;  %v6713_v3 = vld [vmem:[%s12355_s11 + $0x40] sm:$0xff] }
 0x744   : > { %9138 = vmatpush3.bf16.msra.mxu1 %v9638_v20 }
 0x745   : > { %9139 = vmatprep.subr.bf16.mxu1 %v9641_v34 }
 0x748   : > { %9140 = vmatpush3.bf16.msra.mxu1 %v9642_v24  ;;  %v9683_v24 = vld [vmem:[%s12356_s12 + $0x160] sm:$0xff]  }
 0x749   : > { %9141 = vmatprep.subr.bf16.mxu1 %v9645_v19 }
 0x74c   : > { %9142 = vmatpush3.bf16.msra.mxu1 %v9646_v21 }
 0x74d   : > { %9143 = vmatprep.subr.bf16.mxu1 %v9649_v61 }
 0x750   : > { %9144 = vmatpush3.bf16.msra.mxu1 %v9650_v62 }
 0x751   : > { %9145 = vmatprep.subr.bf16.mxu1 %v9653_v50  ;;  %v9670_v50 = vld [vmem:[%s12356_s12 + $0x180] sm:$0xff]  }
 0x754   : > { %9146 = vmatpush3.bf16.msra.mxu1 %v9654_v0  ;;  %v9684_v0 = vld [vmem:[%s12356_s12 + $0x120] sm:$0xff]  }
 0x755   : > { %9147 = vmatprep.subr.bf16.mxu1 %v9657_v55  ;;  %v9673_v55 = vld [vmem:[%s12356_s12 + $0x1c8] sm:$0xff]  }
 0x758   : > { %9148 = vmatpush3.bf16.msra.mxu1 %v9658_v16  ;;  %v9687_v16 = vld [vmem:[%s12356_s12 + $0x168] sm:$0xff]  }
 0x759   : > { %9149 = vmatprep.subr.bf16.mxu1 %v9661_v44  ;;  %v9692_v44 = vld [vmem:[%s12356_s12 + $0x130] sm:$0xff]  }
 0x75c   : > { %9150 = vmatpush3.bf16.msra.mxu1 %v9662_v4  ;;  %v9681_v4 = vld [vmem:[%s12356_s12 + $0x1d8] sm:$0xff]  }
 0x75d   : > { %9151 = vmatprep.subr.bf16.mxu1 %v9665_v43  ;;  %v9695_v43 = vld [vmem:[%s12356_s12 + $0x178] sm:$0xff]  }
 0x760   : > { %9152 = vmatpush3.bf16.msra.mxu1 %v9666_v31 }
 0x761   : > { %9181 = vmatprep.subr.bf16.mxu1 %v9669_v12  ;;  %v6711_v12 = vld [vmem:[%s12355_s11 + $0x30] sm:$0xff] }
 0x7f6   : > { %v6567_v38 = vpop.f32.mrb[76].mxu1  ;;  %v6653_v32 = vpop.f32.mrb[80].mxu0 }
 0x7f7   : > { %v6569_v58 = vpop.f32.mrb[77].mxu1  ;;  %v6655_v47 = vpop.f32.mrb[81].mxu0  ;;  %v6721_v49 = vmul.f32 %v6705_v57, %v6567_v38  ;;  %v12143_v5 = vmul.f32 %v6709_v28, %v6653_v32  ;;  %v6719_v57 = vld [vmem:[%s12355_s11 + $0x70] sm:$0xff]  ;;  %v6712_v38 = vld [vmem:[%s12355_s11 + $0x38] sm:$0xff] }
 0x7f8   : > { %v6571_v18 = vpop.f32.mrb[78].mxu1  ;;  %v6657_v9 = vpop.f32.mrb[82].mxu0  ;;  %v6722_v36 = vmul.f32 %v6706_v35, %v6569_v58  ;;  %v6726_v56 = vmul.f32 %v6710_v60, %v6655_v47  ;;  %v9682_v32 = vld [vmem:[%s12356_s12 + $0x198] sm:$0xff]   ;;  %v9685_v58 = vld [vmem:[%s12356_s12 + $0x1e0] sm:$0xff]  }
 0x7f9   : > { %v6729_v53 = vmul.f32 %v6713_v3, %v6571_v18  ;;  %v6573_v40 = vpop.f32.mrb[79].mxu1  ;;  %v12145_v30 = vmul.f32 %v6717_v37, %v6657_v9  ;;  %v6659_v15 = vpop.f32.mrb[83].mxu0  ;;  %v6720_v3 = vld [vmem:[%s12355_s11 + $0x78] sm:$0xff] }
 0x7fa   : > { %v6730_v48 = vmul.f32 %v6714_v29, %v6573_v40  ;;  %v6734_v11 = vmul.f32 %v6718_v6, %v6659_v15  ;;  %v9696_v37 = vld [vmem:[%s12356_s12 + $0x138] sm:$0xff]   ;;  %v9689_v40 = vld [vmem:[%s12356_s12 + $0x1e8] sm:$0xff]   ;;  %v9710_v15 = vld [vmem:[#allocation2] sm:$0xff] }
 0x7fb   : > { %v6737_v1 = vpack.c.bf16 %v6729_v53, %v6721_v49  ;;  %v6741_v2 = vpack.c.bf16 %v12145_v30, %v12143_v5  ;;  %v9686_v49 = vld [vmem:[%s12356_s12 + $0x1a0] sm:$0xff]   ;;  %v9697_v5 = vld [vmem:[%s12356_s12 + $0x1f8] sm:$0xff]  }
 0x7fc   : > { %v6738_v27 = vpack.c.bf16 %v6730_v48, %v6722_v36  ;;  %v6742_v45 = vpack.c.bf16 %v6734_v11, %v6726_v56  ;;  %v9690_v36 = vld [vmem:[%s12356_s12 + $0x1a8] sm:$0xff]   ;;  %v9693_v48 = vld [vmem:[%s12356_s12 + $0x1f0] sm:$0xff]   ;;  %v9698_v30 = vld [vmem:[%s12356_s12 + $0x1b8] sm:$0xff]  }
 0x7fd   : > { %v9694_v56 = vld [vmem:[%s12356_s12 + $0x1b0] sm:$0xff]   ;;  %v9699_v11 = vld [vmem:[%s12358_s14] sm:$0xff]  }
 0x7fe   : > { %7289 = vmatprep.mubr.bf16.mxu0 %v6738_v27  ;;  %v9702_v27 = vld [vmem:[%s12358_s14 + $0x18] sm:$0xff]  }
 0x7ff   : > { %7290 = vmatmul.mubr.bf16.vlgmr.msra.gmra.mrb[84].mxu0 %v6737_v1  ;;  %v9700_v1 = vld [vmem:[%s12358_s14 + $0x8] sm:$0xff]  }
 0x800   : > { %9160 = vmatpush3.bf16.msra.mxu0 %v9668_v10  ;;  %7371 = vmatprep.mubr.bf16.mxu0 %v6742_v45  ;;  %v9703_v10 = vld [vmem:[%s12358_s14 + $0x20] sm:$0xff]   ;;  %v9704_v45 = vld [vmem:[%s12358_s14 + $0x28] sm:$0xff]  }
 0x801   : > { %9161 = vmatprep.subr.bf16.mxu0 %v9671_v14  ;;  %v9705_v14 = vld [vmem:[%s12358_s14 + $0x30] sm:$0xff]  }
 0x804   : > { %9162 = vmatpush3.bf16.msra.mxu0 %v9672_v63  ;;  %v9706_v63 = vld [vmem:[%s12358_s14 + $0x38] sm:$0xff]  }
 0x805   : > { %9163 = vmatprep.subr.bf16.mxu0 %v9675_v23 }
 0x806   : > { %v6610_v51 = vpop.f32.mrb[80].mxu1 }
 0x807   : > { %v6612_v26 = vpop.f32.mrb[81].mxu1  ;;  %v6723_v42 = vmul.f32 %v6707_v7, %v6610_v51 }
 0x808   : > { %v6614_v8 = vpop.f32.mrb[82].mxu1  ;;  %9164 = vmatpush3.bf16.msra.mxu0 %v9676_v54  ;;  %v6724_v19 = vmul.f32 %v6708_v59, %v6612_v26 }
 0x809   : > { %v6731_v20 = vmul.f32 %v6715_v41, %v6614_v8  ;;  %v6616_v34 = vpop.f32.mrb[83].mxu1  ;;  %9165 = vmatprep.subr.bf16.mxu0 %v9679_v39 }
 0x80a   : > { %v6732_v21 = vmul.f32 %v6716_v13, %v6616_v34 }
 0x80b   : > { %v6739_v61 = vpack.c.bf16 %v6731_v20, %v6723_v42 }
 0x80c   : > { %v6740_v62 = vpack.c.bf16 %v6732_v21, %v6724_v19  ;;  %9166 = vmatpush3.bf16.msra.mxu0 %v9680_v22 }
 0x80d   : > { %9167 = vmatprep.subr.bf16.mxu0 %v9683_v24 }
 0x80e   : > { %7330 = vmatprep.mubr.bf16.mxu1 %v6740_v62 }
 0x80f   : > { %7331 = vmatmul.mubr.bf16.vlgmr.msra.gmra.mrb[88].mxu1 %v6739_v61 }
 0x810   : > { %9182 = vmatpush3.bf16.msra.mxu1 %v9670_v50  ;;  %9168 = vmatpush3.bf16.msra.mxu0 %v9684_v0 }
 0x811   : > { %9183 = vmatprep.subr.bf16.mxu1 %v9673_v55  ;;  %9169 = vmatprep.subr.bf16.mxu0 %v9687_v16 }
 0x814   : > { %9184 = vmatpush3.bf16.msra.mxu1 %v9674_v52  ;;  %9170 = vmatpush3.bf16.msra.mxu0 %v9688_v25 }
 0x815   : > { %9185 = vmatprep.subr.bf16.mxu1 %v9677_v33  ;;  %9171 = vmatprep.subr.bf16.mxu0 %v9691_v46 }
 0x816   : > { %v6696_v31 = vpop.f32.mrb[84].mxu1 }
 0x817   : > { %v6698_v35 = vpop.f32.mrb[85].mxu1  ;;  %v6727_v29 = vmul.f32 %v6711_v12, %v6696_v31 }
 0x818   : > { %9186 = vmatpush3.bf16.msra.mxu1 %v9678_v17  ;;  %9172 = vmatpush3.bf16.msra.mxu0 %v9692_v44  ;;  %v6700_v28 = vpop.f32.mrb[86].mxu1  ;;  %v6728_v6 = vmul.f32 %v6712_v38, %v6698_v35 }
 0x819   : > { %9187 = vmatprep.subr.bf16.mxu1 %v9681_v4  ;;  %v6735_v47 = vmul.f32 %v6719_v57, %v6700_v28  ;;  %v6702_v60 = vpop.f32.mrb[87].mxu1  ;;  %9173 = vmatprep.subr.bf16.mxu0 %v9695_v43 }
 0x81a   : > { %v6736_v18 = vmul.f32 %v6720_v3, %v6702_v60  ;;  %v7428_v3 = vld [vmem:[%s12357_s13] sm:$0x1] }
 0x81b   : > { %v6743_v9 = vpack.c.bf16 %v6735_v47, %v6727_v29  ;;  %v7448_v29 = vld [vmem:[%s12359_s15] sm:$0x1] }
 0x81c   : > { %9188 = vmatpush3.bf16.msra.mxu1 %v9682_v32  ;;  %v6744_v53 = vpack.c.bf16 %v6736_v18, %v6728_v6  ;;  %9174 = vmatpush3.bf16.msra.mxu0 %v9696_v37 }
 0x81d   : > { %9189 = vmatprep.subr.bf16.mxu1 %v9685_v58  ;;  %9344 = vmatprep.subr.bf16.mxu0 %v9710_v15 }
 0x81e   : > { %7412 = vmatprep.mubr.bf16.mxu1 %v6744_v53 }
 0x81f   : > { %7372 = vmatmul.mubr.bf16.vlgmr.msra.gmra.mrb[88].mxu0 %v6741_v2  ;;  %v9701_v2 = vld [vmem:[%s12358_s14 + $0x10] sm:$0xff]  }
 0x820   : > { %9190 = vmatpush3.bf16.msra.mxu1 %v9686_v49  ;;  %9360 = vmatprep.mubr.msk.bf16.mxu0 %vm9777_vm3, %v9710_v15 }
 0x821   : > { %9191 = vmatprep.subr.bf16.mxu1 %v9689_v40  ;;  %9345 = vmatpush3.bf16.msra.mxu0 %v9699_v11 }
 0x822   : > { %9346 = vmatprep.subr.bf16.mxu0 %v9710_v15 }
 0x824   : > { %9192 = vmatpush3.bf16.msra.mxu1 %v9690_v36 }
 0x825   : > { %9193 = vmatprep.subr.bf16.mxu1 %v9693_v48  ;;  %9347 = vmatpush3.bf16.msra.mxu0 %v9700_v1 }
 0x826   : > { %9348 = vmatprep.subr.bf16.mxu0 %v9710_v15 }
 0x828   : > { %9194 = vmatpush3.bf16.msra.mxu1 %v9694_v56 }
 0x829   : > { %9195 = vmatprep.subr.bf16.mxu1 %v9697_v5  ;;  %9349 = vmatpush3.bf16.msra.mxu0 %v9701_v2 }
 0x82a   : > { %9350 = vmatprep.subr.bf16.mxu0 %v9710_v15 }
 0x82c   : > { %9196 = vmatpush3.bf16.msra.mxu1 %v9698_v30 }
 0x82d   : > { %9351 = vmatpush3.bf16.msra.mxu0 %v9702_v27 }
 0x82e   : > { %9352 = vmatprep.subr.bf16.mxu0 %v9710_v15 }
 0x82f   : > { %7413 = vmatmul.mubr.bf16.vlgmr.msra.gmra.mrb[92].mxu1 %v6743_v9 }
 0x831   : > { %9353 = vmatpush3.bf16.msra.mxu0 %v9703_v10 }
 0x832   : > { %9354 = vmatprep.subr.bf16.mxu0 %v9710_v15 }
 0x835   : > { %9355 = vmatpush3.bf16.msra.mxu0 %v9704_v45 }
 0x836   : > { %9356 = vmatprep.subr.bf16.mxu0 %v9710_v15 }
 0x839   : > { %9357 = vmatpush3.bf16.msra.mxu0 %v9705_v14 }
 0x83a   : > { %9358 = vmatprep.subr.bf16.mxu0 %v9710_v15 }
 0x83d   : > { %9359 = vmatpush3.bf16.msra.mxu0 %v9706_v63 }
 0x8d2   : > { %v9131_v23 = vpop.f32.mrb[84].mxu0 }
 0x8d3   : > { %v9132_v54 = vpop.f32.mrb[85].mxu0 }
 0x8d4   : > { %v9133_v39 = vadd.f32 %v9132_v54, %v9131_v23  ;;  %v9134_v51 = vpop.f32.mrb[86].mxu0 }
 0x8d5   : > { %v9135_v7 = vpop.f32.mrb[87].mxu0 }
 0x8d6   : > { %v9136_v41 = vadd.f32 %v9135_v7, %v9134_v51 }
 0x8e2   : > { %v9153_v26 = vpop.f32.mrb[88].mxu1 }
 0x8e3   : > { %v9154_v59 = vpop.f32.mrb[89].mxu1 }
 0x8e4   : > { %v9155_v13 = vadd.f32 %v9154_v59, %v9153_v26  ;;  %v9156_v8 = vpop.f32.mrb[90].mxu1 }
 0x8e5   : > { %v9157_v22 = vpop.f32.mrb[91].mxu1 }
 0x8e6   : > { %v7333_v42 = vadd.f32 %v9155_v13, %v9133_v39  ;;  %v9158_v20 = vadd.f32 %v9157_v22, %v9156_v8 }
 0x8e8   : > { %v7336_v34 = vadd.f32 %v9158_v20, %v9136_v41 }
 0x8f2   : > { %v9175_v24 = vpop.f32.mrb[88].mxu0 }
 0x8f3   : > { %v9176_v19 = vpop.f32.mrb[89].mxu0 }
 0x8f4   : > { %v9177_v21 = vadd.f32 %v9176_v19, %v9175_v24  ;;  %v9178_v61 = vpop.f32.mrb[90].mxu0 }
 0x8f5   : > { %v9179_v62 = vpop.f32.mrb[91].mxu0 }
 0x8f6   : > { %v7374_v50 = vadd.f32 %v9177_v21, %v7333_v42  ;;  %v9180_v0 = vadd.f32 %v9179_v62, %v9178_v61 }
 0x8f8   : > { %v7377_v55 = vadd.f32 %v9180_v0, %v7336_v34 }
 0x902   : > { %v9197_v16 = vpop.f32.mrb[92].mxu1 }
 0x903   : > { %v9198_v52 = vpop.f32.mrb[93].mxu1 }
 0x904   : > { %v9199_v25 = vadd.f32 %v9198_v52, %v9197_v16  ;;  %v9200_v33 = vpop.f32.mrb[94].mxu1 }
 0x905   : > { %v9201_v46 = vpop.f32.mrb[95].mxu1 }
 0x906   : > { %v7415_v17 = vadd.f32 %v9199_v25, %v7374_v50  ;;  %v9202_v44 = vadd.f32 %v9201_v46, %v9200_v33 }
 0x908   : > { %v7418_v4 = vadd.f32 %v9202_v44, %v7377_v55 }
 0x90a   : > { %v7421_v43 = vadd.f32 %v7418_v4, %v7415_v17 }
 0x90c   : > { %v7422_v31 = vrot.slane %v7421_v43, 4 }
 0x90e   : > { %v7423_v12 = vadd.f32 %v7422_v31, %v7421_v43 }
 0x910   : > { %v7424_v57 = vrot.slane %v7423_v12, 2 }
 0x912   : > { %v7425_v35 = vadd.f32 %v7424_v57, %v7423_v12 }
 0x914   : > { %v7426_v38 = vrot.slane %v7425_v35, 1 }
 0x916   : > { %v7427_v32 = vadd.f32 %v7426_v38, %v7425_v35 }
 0x918   : > { %v7429_v28 = vadd.f32 %v7428_v3, %v7427_v32 }
 0x91a   : > { %v7430_v37 = vmax.f32 %v7429_v28, 0.0 }
 0x91c   : > { %v7431_v58 = vpack.c.bf16 %v7430_v37, %v7430_v37 }
 0x91e   : > { %9361 = vmatmul.mubr.bf16.vlgmr.msra.gmra.mrb[92].mxu0 %v7431_v58 }
 0x9f1   : > { %v7531_v47 = vpop.f32.mrb[92].mxu0 }
 0x9f2   : > { %v7532_v60 = vadd.f32 %v7531_v47, %v7448_v29  ;;  %v9362_v6 = vpop.f32.mrb[93].mxu0 }
 0x9f3   : > { %v7534_v18 = vpop.f32.mrb[94].mxu0 }
 0x9f4   : > { %v9363_v9 = vpop.f32.mrb[95].mxu0  ;;  %7538 = vst.msk [vmem:[%s513_s17] sm:$0x1] %vm7537_vm4, %v7532_v60 }
 0x9f5   : > { %9724 = shalt.err (!%p9721_p3)
}
 0x9f6   : > { %s9725_s28 = scalar_lea.hbm %s12302_s26, 16  ;;  %s9729_s17 = scalar_lea.hbm %s12360_s16, 32 }
 0x9f7   : > { %p9726_p4 = scmp.ne.s32.totalorder %s12302_s26, %s9725_s28  ;;  %p9730_p9 = scmp.lt.u32.totalorder %s12302_s26, %s12360_s16 }
 0x9f8   : > { %p9731_p10 = scmp.lt.u32.totalorder %s9729_s17, %s9725_s28  ;;  %p9733_p12 = scmp.lt.u32.totalorder %s9725_s28, %s12302_s26 }
 0x9f9   : > { %p9727_p7 = pnand %p9726_p4, %p9903_p5 }
 0x9fa   : > { %p9732_p11 = por %p9731_p10, %p9730_p9 }
 0x9fb   : > { %p9728_p8 = pneg %p9727_p7 }
 0x9fc   : > { %p9734_p13 = por %p9733_p12, %p9732_p11 }
 0x9fe   : > { %p9735_p0 = pnand %p9734_p13, %p9728_p8 }
 0xa00   : > { %9738 = shalt.err (!%p9735_p0)
}
 0xa01   : > { %9364 = dma.vmem_to_hbm [thread:$0]  (%p9903_p5), %s12304_s29, 16, %s12302_s26, %s7540_s25  }
 0xa02 PF: > { %s12377_s23 = sld [smem:[#allocation10_spill]]  ;;  %s12378_s30 = sld [smem:[#allocation8_spill]] }
 0xa08   : > { %p9370_p1 = scmp.ge.s32.totalorder %s12377_s23, 2  ;;  %s7564_s21 = sand.u32 1, %s12378_s30  }
 0xa09   : > { %s7565_s18 = scalar_lea.sflag [#allocation6], %s7564_s21 }
 0xa0a   : > { %p9367_p2 = pnand %p9370_p1, %p9907_p6 }
 0xa0c   : > { %9756 = dma.done.wait (!%p9367_p2), %s7565_s18, 16  }
 0xa0d   : > { %9758 = vsyncadd (!%p9367_p2), %s7565_s18, 4294967280  ;;  %s12380_s24 = sld [smem:[#allocation11_spill]]  ;;  %s12381_s28 = sld [smem:[#allocation9_spill]] }
 0xa0e   : > { %s12382_s23 = sld [smem:[#allocation12_spill]]  ;;  %s12383_s21 = smov %s9765_s22 }
 0xa13   : > { %p26_p3 = scmp.ge.s32.totalorder %s12380_s24, 4   ;;  %s12384_s22 = smov %s12381_s28 }
 0xa15   :  { %28 = sbr.rel (!%p26_p3) target bundleno = 5 (0x5), region = 123 }
 0xa1c   :  { %7569 = vsyncpa [#allocation6], 1 }
 0xa1d   :  { %7571 = vsyncpa [#allocation6 + $0x1], 1 }

</bundles_post_ra>
